<compile_context>
chip_gen: v5e
topology: v5e:2x2
jax: 0.10.0
libtpu: 0.0.40
codegen_flags: <defaults>
</compile_context>

<pallas_src>
import jax
import jax.numpy as jnp
import numpy as np
from jax.experimental import pallas as pl
from jax.experimental.pallas import tpu as pltpu

# ----- model config (matches original_NeRF defaults) -----
D = 8
W = 256
IN_XYZ = 60
IN_DIR = 24
SKIPS = (4,)
IN_TOTAL = IN_XYZ + IN_DIR  # 84

COMPUTE_DTYPE = jnp.bfloat16  # MXU-native; accumulate in f32


def _nerf_kernel(xyz_ref, dir_ref, *refs):
    out_ref = refs[-1]
    p = iter(refs[:-1])

    input_xyz = xyz_ref[...]  # (bb, 60) bf16
    input_dir = dir_ref[...]  # (bb, 24) bf16

    # ---- density (sigma) encoder with skip connection at layer 4 ----
    h = input_xyz
    for i in range(D):
        if i in SKIPS:
            # concat([input_xyz, h], -1) @ W  ==  input_xyz @ W[:60] + h @ W[60:]
            w_xyz = next(p)[...]
            w_h = next(p)[...]
            b = next(p)[...]
            acc = (jnp.dot(input_xyz, w_xyz, preferred_element_type=jnp.float32)
                   + jnp.dot(h, w_h, preferred_element_type=jnp.float32)
                   + b)
        else:
            w = next(p)[...]
            b = next(p)[...]
            acc = jnp.dot(h, w, preferred_element_type=jnp.float32) + b
        h = jnp.maximum(acc, 0.0).astype(COMPUTE_DTYPE)  # ReLU

    wf, bf = next(p)[...], next(p)[...]                          # xyz_encoding_final
    wd_f, wd_d, bd = next(p)[...], next(p)[...], next(p)[...]    # dir_encoding (split)
    ws_pad, wr_pad, b_out = next(p)[...], next(p)[...], next(p)[...]  # fused heads

    # color branch
    final = (jnp.dot(h, wf, preferred_element_type=jnp.float32) + bf
             ).astype(COMPUTE_DTYPE)
    # concat([final, input_dir], -1) @ Wd == final @ Wd[:256] + input_dir @ Wd[256:]
    d = jnp.maximum(
        jnp.dot(final, wd_f, preferred_element_type=jnp.float32)
        + jnp.dot(input_dir, wd_d, preferred_element_type=jnp.float32)
        + bd, 0.0).astype(COMPUTE_DTYPE)

    # Fused heads: cols 0..2 = rgb(d), col 3 = sigma(h); padded columns are
    # exact zeros, so the shared sigmoid matches the two separate heads
    # (the original module applies Sigmoid to both rgb and sigma).
    out = jax.nn.sigmoid(
        jnp.dot(d, wr_pad, preferred_element_type=jnp.float32)
        + jnp.dot(h, ws_pad, preferred_element_type=jnp.float32)
        + b_out)
    out_ref[...] = out.astype(out_ref.dtype)


def init_params(key):
    """Deterministic PyTorch-Linear-like init: U(-1/sqrt(fan_in), 1/sqrt(fan_in)).
    Weights stored as (in_features, out_features); biases as (1, out_features)."""
    dims = []
    for i in range(D):
        fin = IN_XYZ if i == 0 else (W + IN_XYZ if i in SKIPS else W)
        dims.append((fin, W))
    dims.append((W, W))                # xyz_encoding_final
    dims.append((W + IN_DIR, W // 2))  # dir_encoding
    dims.append((W, 1))                # sigma
    dims.append((W // 2, 3))           # rgb
    params = []
    for i, (fin, fout) in enumerate(dims):
        kw, kb = jax.random.split(jax.random.fold_in(key, i))
        bound = 1.0 / float(np.sqrt(fin))
        w = jax.random.uniform(kw, (fin, fout), jnp.float32, -bound, bound)
        b = jax.random.uniform(kb, (1, fout), jnp.float32, -bound, bound)
        params.append((w, b))
    return params


def _prepare_kernel_params(params):
    """Flatten params in kernel order; cast weights to bf16, keep biases f32,
    split the skip-layer / dir-layer weights into lane-aligned pieces, and
    build the zero-padded fused head weights (output layout [rgb(3)|sigma(1)])."""
    cd = COMPUTE_DTYPE
    flat = []
    for i in range(D):
        w, b = params[i]
        b = b.astype(jnp.float32)
        if i in SKIPS:
            flat += [w[:IN_XYZ].astype(cd), w[IN_XYZ:].astype(cd), b]
        else:
            flat += [w.astype(cd), b]
    wf, bf = params[D]
    wd, bd = params[D + 1]
    ws, bs = params[D + 2]
    wr, br = params[D + 3]
    flat += [wf.astype(cd), bf.astype(jnp.float32)]
    flat += [wd[:W].astype(cd), wd[W:].astype(cd), bd.astype(jnp.float32)]
    ws_pad = jnp.pad(ws, ((0, 0), (3, 0))).astype(cd)   # (W, 4): col 3 = sigma
    wr_pad = jnp.pad(wr, ((0, 0), (0, 1))).astype(cd)   # (W//2, 4): cols 0..2 = rgb
    b_out = jnp.concatenate([br, bs], axis=-1).astype(jnp.float32)  # (1, 4)
    flat += [ws_pad, wr_pad, b_out]
    return flat


def _pick_block_b(B):
    # Large M tiles keep the 256-wide MXU busy; shrink only so that big
    # batches still give >= 2 grid steps (keeps both v7x TensorCores fed).
    bb = 1024
    while bb > 128 and bb * 2 > B:
        bb //= 2
    return max(8, min(bb, -(-B // 8) * 8))


def _cost_estimate(Bp):
    per_row_mac = (IN_XYZ * W                 # layer 0
                   + (W + IN_XYZ) * W          # skip layer
                   + (D - 2) * W * W           # remaining encoder layers
                   + W * W                     # xyz_encoding_final
                   + (W + IN_DIR) * (W // 2)   # dir_encoding
                   + W * 4 + (W // 2) * 4)     # fused sigma/rgb heads
    weight_elems = per_row_mac + (D + 2) * W + (W // 2) + 4
    return pl.CostEstimate(
        flops=int(Bp) * 2 * per_row_mac,
        transcendentals=int(Bp) * 4,
        bytes_accessed=int(Bp) * (IN_TOTAL * 2 + 4 * 4) + weight_elems * 2)


def nerf_forward(x, params, *, block_b=None):
    """Pallas forward for original_NeRF (sigma_only=False).

    x: (B, 84) = [xyz_embed(60) | dir_embed(24)]  ->  (B, 4) f32 [rgb | sigma].
    """
    # TODO(synk): sigma_only=True path ((B, 60) input -> (B, 1) sigma) is not
    # wired up as a separate kernel; this implements the default path.
    B = x.shape[0]
    if block_b is None:
        block_b = _pick_block_b(B)

    # Host-side split of the packed input + padding to a whole number of tiles.
    x_xyz = x[:, :IN_XYZ].astype(COMPUTE_DTYPE)
    x_dir = x[:, IN_XYZ:].astype(COMPUTE_DTYPE)
    n_blocks = pl.cdiv(B, block_b)
    Bp = n_blocks * block_b
    if Bp != B:
        pad = ((0, Bp - B), (0, 0))
        x_xyz = jnp.pad(x_xyz, pad)
        x_dir = jnp.pad(x_dir, pad)

    flat = _prepare_kernel_params(params)
    # Weights/biases are full blocks with constant index_maps -> resident in
    # VMEM across grid steps (~1.2 MB bf16), no per-step re-DMA.
    param_specs = [
        pl.BlockSpec(a.shape, lambda i, nd=a.ndim: (0,) * nd) for a in flat
    ]

    out = pl.pallas_call(
        _nerf_kernel,
        out_shape=jax.ShapeDtypeStruct((Bp, 4), jnp.float32),
        grid_spec=pltpu.PrefetchScalarGridSpec(
            num_scalar_prefetch=0,
            grid=(n_blocks,),
            in_specs=[pl.BlockSpec((block_b, IN_XYZ), lambda i: (i, 0)),
                      pl.BlockSpec((block_b, IN_DIR), lambda i: (i, 0))]
                     + param_specs,
            out_specs=pl.BlockSpec((block_b, 4), lambda i: (i, 0)),
        ),
        compiler_params=pltpu.CompilerParams(
            dimension_semantics=("parallel",),
            vmem_limit_bytes=64 * 1024 * 1024,
        ),
        cost_estimate=_cost_estimate(Bp),
    )(x_xyz, x_dir, *flat)

    return out[:B] if Bp != B else out


def nerf_reference(x, params):
    """Pure-JAX reference mirroring the PyTorch forward with the same numerics
    as the kernel (bf16 MXU inputs, f32 accumulation, f32 bias/sigmoid)."""
    cd = COMPUTE_DTYPE
    input_xyz = x[:, :IN_XYZ].astype(cd)
    input_dir = x[:, IN_XYZ:].astype(cd)
    h = input_xyz
    for i in range(D):
        w, b = params[i]
        if i in SKIPS:
            h = jnp.concatenate([input_xyz, h], axis=-1)
        z = jnp.dot(h, w.astype(cd), preferred_element_type=jnp.float32) + b
        h = jnp.maximum(z, 0.0).astype(cd)
    wf, bf = params[D]
    wd, bd = params[D + 1]
    ws, bs = params[D + 2]
    wr, br = params[D + 3]
    sigma = jax.nn.sigmoid(
        jnp.dot(h, ws.astype(cd), preferred_element_type=jnp.float32) + bs)
    final = (jnp.dot(h, wf.astype(cd), preferred_element_type=jnp.float32) + bf
             ).astype(cd)
    d_in = jnp.concatenate([final, input_dir], axis=-1)
    d = jnp.maximum(
        jnp.dot(d_in, wd.astype(cd), preferred_element_type=jnp.float32) + bd,
        0.0).astype(cd)
    rgb = jax.nn.sigmoid(
        jnp.dot(d, wr.astype(cd), preferred_element_type=jnp.float32) + br)
    return jnp.concatenate([rgb, sigma], axis=-1)


if __name__ == "__main__":
    key = jax.random.PRNGKey(0)
    kx, kp = jax.random.split(key)

    B = 200  # not a multiple of the tile size -> exercises padding path
    x = jax.random.normal(kx, (B, IN_TOTAL), dtype=jnp.float32)
    params = init_params(kp)

    out = jax.block_until_ready(nerf_forward(x, params))
    ref = jax.block_until_ready(nerf_reference(x, params))

    assert out.shape == (B, 4)
    np.testing.assert_allclose(np.asarray(out), np.asarray(ref),
                               rtol=1e-3, atol=1e-3)

    print("KERNEL_OK")
</pallas_src>

<mosaic_0001>
module attributes {stable_mosaic.version = 11 : i64} {
  func.func @_nerf_kernel(%arg0: i32, %arg1: memref<128x60xbf16, #tpu.memory_space<vmem>>, %arg2: memref<128x24xbf16, #tpu.memory_space<vmem>>, %arg3: memref<60x256xbf16, #tpu.memory_space<vmem>>, %arg4: memref<1x256xf32, #tpu.memory_space<vmem>>, %arg5: memref<256x256xbf16, #tpu.memory_space<vmem>>, %arg6: memref<1x256xf32, #tpu.memory_space<vmem>>, %arg7: memref<256x256xbf16, #tpu.memory_space<vmem>>, %arg8: memref<1x256xf32, #tpu.memory_space<vmem>>, %arg9: memref<256x256xbf16, #tpu.memory_space<vmem>>, %arg10: memref<1x256xf32, #tpu.memory_space<vmem>>, %arg11: memref<60x256xbf16, #tpu.memory_space<vmem>>, %arg12: memref<256x256xbf16, #tpu.memory_space<vmem>>, %arg13: memref<1x256xf32, #tpu.memory_space<vmem>>, %arg14: memref<256x256xbf16, #tpu.memory_space<vmem>>, %arg15: memref<1x256xf32, #tpu.memory_space<vmem>>, %arg16: memref<256x256xbf16, #tpu.memory_space<vmem>>, %arg17: memref<1x256xf32, #tpu.memory_space<vmem>>, %arg18: memref<256x256xbf16, #tpu.memory_space<vmem>>, %arg19: memref<1x256xf32, #tpu.memory_space<vmem>>, %arg20: memref<256x256xbf16, #tpu.memory_space<vmem>>, %arg21: memref<1x256xf32, #tpu.memory_space<vmem>>, %arg22: memref<256x128xbf16, #tpu.memory_space<vmem>>, %arg23: memref<24x128xbf16, #tpu.memory_space<vmem>>, %arg24: memref<1x128xf32, #tpu.memory_space<vmem>>, %arg25: memref<256x4xbf16, #tpu.memory_space<vmem>>, %arg26: memref<128x4xbf16, #tpu.memory_space<vmem>>, %arg27: memref<1x4xf32, #tpu.memory_space<vmem>>, %arg28: memref<128x4xf32, #tpu.memory_space<vmem>>) attributes {dimension_semantics = [#tpu.dimension_semantics<parallel>], iteration_bounds = array<i64: 2>, scalar_prefetch = 0 : i64, scratch_operands = 0 : i64, tpu.core_type = #tpu.core_type<tc>, window_params = [{transform_indices = @transform_0, window_bounds = array<i64: 128, 60>}, {transform_indices = @transform_1, window_bounds = array<i64: 128, 24>}, {pipeline_mode = #tpu.pipeline_mode<synchronous>, transform_indices = @transform_2, window_bounds = array<i64: 60, 256>}, {pipeline_mode = #tpu.pipeline_mode<synchronous>, transform_indices = @transform_3, window_bounds = array<i64: 1, 256>}, {pipeline_mode = #tpu.pipeline_mode<synchronous>, transform_indices = @transform_4, window_bounds = array<i64: 256, 256>}, {pipeline_mode = #tpu.pipeline_mode<synchronous>, transform_indices = @transform_5, window_bounds = array<i64: 1, 256>}, {pipeline_mode = #tpu.pipeline_mode<synchronous>, transform_indices = @transform_6, window_bounds = array<i64: 256, 256>}, {pipeline_mode = #tpu.pipeline_mode<synchronous>, transform_indices = @transform_7, window_bounds = array<i64: 1, 256>}, {pipeline_mode = #tpu.pipeline_mode<synchronous>, transform_indices = @transform_8, window_bounds = array<i64: 256, 256>}, {pipeline_mode = #tpu.pipeline_mode<synchronous>, transform_indices = @transform_9, window_bounds = array<i64: 1, 256>}, {pipeline_mode = #tpu.pipeline_mode<synchronous>, transform_indices = @transform_10, window_bounds = array<i64: 60, 256>}, {pipeline_mode = #tpu.pipeline_mode<synchronous>, transform_indices = @transform_11, window_bounds = array<i64: 256, 256>}, {pipeline_mode = #tpu.pipeline_mode<synchronous>, transform_indices = @transform_12, window_bounds = array<i64: 1, 256>}, {pipeline_mode = #tpu.pipeline_mode<synchronous>, transform_indices = @transform_13, window_bounds = array<i64: 256, 256>}, {pipeline_mode = #tpu.pipeline_mode<synchronous>, transform_indices = @transform_14, window_bounds = array<i64: 1, 256>}, {pipeline_mode = #tpu.pipeline_mode<synchronous>, transform_indices = @transform_15, window_bounds = array<i64: 256, 256>}, {pipeline_mode = #tpu.pipeline_mode<synchronous>, transform_indices = @transform_16, window_bounds = array<i64: 1, 256>}, {pipeline_mode = #tpu.pipeline_mode<synchronous>, transform_indices = @transform_17, window_bounds = array<i64: 256, 256>}, {pipeline_mode = #tpu.pipeline_mode<synchronous>, transform_indices = @transform_18, window_bounds = array<i64: 1, 256>}, {pipeline_mode = #tpu.pipeline_mode<synchronous>, transform_indices = @transform_19, window_bounds = array<i64: 256, 256>}, {pipeline_mode = #tpu.pipeline_mode<synchronous>, transform_indices = @transform_20, window_bounds = array<i64: 1, 256>}, {pipeline_mode = #tpu.pipeline_mode<synchronous>, transform_indices = @transform_21, window_bounds = array<i64: 256, 128>}, {pipeline_mode = #tpu.pipeline_mode<synchronous>, transform_indices = @transform_22, window_bounds = array<i64: 24, 128>}, {pipeline_mode = #tpu.pipeline_mode<synchronous>, transform_indices = @transform_23, window_bounds = array<i64: 1, 128>}, {pipeline_mode = #tpu.pipeline_mode<synchronous>, transform_indices = @transform_24, window_bounds = array<i64: 256, 4>}, {pipeline_mode = #tpu.pipeline_mode<synchronous>, transform_indices = @transform_25, window_bounds = array<i64: 128, 4>}, {pipeline_mode = #tpu.pipeline_mode<synchronous>, transform_indices = @transform_26, window_bounds = array<i64: 1, 4>}, {transform_indices = @transform_27, window_bounds = array<i64: 128, 4>}]} {
    %c0 = arith.constant 0 : index
    %c0_0 = arith.constant 0 : index
    %0 = vector.load %arg1[%c0, %c0_0] : memref<128x60xbf16, #tpu.memory_space<vmem>>, vector<128x60xbf16>
    %c0_1 = arith.constant 0 : index
    %c0_2 = arith.constant 0 : index
    %1 = vector.load %arg2[%c0_1, %c0_2] : memref<128x24xbf16, #tpu.memory_space<vmem>>, vector<128x24xbf16>
    %c0_3 = arith.constant 0 : index
    %c0_4 = arith.constant 0 : index
    %2 = vector.load %arg3[%c0_3, %c0_4] : memref<60x256xbf16, #tpu.memory_space<vmem>>, vector<60x256xbf16>
    %c0_5 = arith.constant 0 : index
    %c0_6 = arith.constant 0 : index
    %3 = vector.load %arg4[%c0_5, %c0_6] : memref<1x256xf32, #tpu.memory_space<vmem>>, vector<1x256xf32>
    %cst = arith.constant dense<0.000000e+00> : vector<128x256xf32>
    %4 = tpu.matmul %0, %2, %cst {dimension_numbers = #tpu.dot_dimension_numbers<[1], [0], [0], [1], [0, 0, 1, 1], [], []>} : vector<128x60xbf16>, vector<60x256xbf16>, vector<128x256xf32> -> vector<128x256xf32>
    %5 = vector.broadcast %3 : vector<1x256xf32> to vector<128x256xf32>
    %6 = arith.addf %4, %5 : vector<128x256xf32>
    %cst_7 = arith.constant 0.000000e+00 : f32
    %7 = vector.broadcast %cst_7 : f32 to vector<128x256xf32>
    %8 = arith.maximumf %6, %7 : vector<128x256xf32>
    %9 = arith.truncf %8 : vector<128x256xf32> to vector<128x256xbf16>
    %c0_8 = arith.constant 0 : index
    %c0_9 = arith.constant 0 : index
    %10 = vector.load %arg5[%c0_8, %c0_9] : memref<256x256xbf16, #tpu.memory_space<vmem>>, vector<256x256xbf16>
    %c0_10 = arith.constant 0 : index
    %c0_11 = arith.constant 0 : index
    %11 = vector.load %arg6[%c0_10, %c0_11] : memref<1x256xf32, #tpu.memory_space<vmem>>, vector<1x256xf32>
    %cst_12 = arith.constant dense<0.000000e+00> : vector<128x256xf32>
    %12 = tpu.matmul %9, %10, %cst_12 {dimension_numbers = #tpu.dot_dimension_numbers<[1], [0], [0], [1], [0, 0, 1, 1], [], []>} : vector<128x256xbf16>, vector<256x256xbf16>, vector<128x256xf32> -> vector<128x256xf32>
    %13 = vector.broadcast %11 : vector<1x256xf32> to vector<128x256xf32>
    %14 = arith.addf %12, %13 : vector<128x256xf32>
    %cst_13 = arith.constant 0.000000e+00 : f32
    %15 = vector.broadcast %cst_13 : f32 to vector<128x256xf32>
    %16 = arith.maximumf %14, %15 : vector<128x256xf32>
    %17 = arith.truncf %16 : vector<128x256xf32> to vector<128x256xbf16>
    %c0_14 = arith.constant 0 : index
    %c0_15 = arith.constant 0 : index
    %18 = vector.load %arg7[%c0_14, %c0_15] : memref<256x256xbf16, #tpu.memory_space<vmem>>, vector<256x256xbf16>
    %c0_16 = arith.constant 0 : index
    %c0_17 = arith.constant 0 : index
    %19 = vector.load %arg8[%c0_16, %c0_17] : memref<1x256xf32, #tpu.memory_space<vmem>>, vector<1x256xf32>
    %cst_18 = arith.constant dense<0.000000e+00> : vector<128x256xf32>
    %20 = tpu.matmul %17, %18, %cst_18 {dimension_numbers = #tpu.dot_dimension_numbers<[1], [0], [0], [1], [0, 0, 1, 1], [], []>} : vector<128x256xbf16>, vector<256x256xbf16>, vector<128x256xf32> -> vector<128x256xf32>
    %21 = vector.broadcast %19 : vector<1x256xf32> to vector<128x256xf32>
    %22 = arith.addf %20, %21 : vector<128x256xf32>
    %cst_19 = arith.constant 0.000000e+00 : f32
    %23 = vector.broadcast %cst_19 : f32 to vector<128x256xf32>
    %24 = arith.maximumf %22, %23 : vector<128x256xf32>
    %25 = arith.truncf %24 : vector<128x256xf32> to vector<128x256xbf16>
    %c0_20 = arith.constant 0 : index
    %c0_21 = arith.constant 0 : index
    %26 = vector.load %arg9[%c0_20, %c0_21] : memref<256x256xbf16, #tpu.memory_space<vmem>>, vector<256x256xbf16>
    %c0_22 = arith.constant 0 : index
    %c0_23 = arith.constant 0 : index
    %27 = vector.load %arg10[%c0_22, %c0_23] : memref<1x256xf32, #tpu.memory_space<vmem>>, vector<1x256xf32>
    %cst_24 = arith.constant dense<0.000000e+00> : vector<128x256xf32>
    %28 = tpu.matmul %25, %26, %cst_24 {dimension_numbers = #tpu.dot_dimension_numbers<[1], [0], [0], [1], [0, 0, 1, 1], [], []>} : vector<128x256xbf16>, vector<256x256xbf16>, vector<128x256xf32> -> vector<128x256xf32>
    %29 = vector.broadcast %27 : vector<1x256xf32> to vector<128x256xf32>
    %30 = arith.addf %28, %29 : vector<128x256xf32>
    %cst_25 = arith.constant 0.000000e+00 : f32
    %31 = vector.broadcast %cst_25 : f32 to vector<128x256xf32>
    %32 = arith.maximumf %30, %31 : vector<128x256xf32>
    %33 = arith.truncf %32 : vector<128x256xf32> to vector<128x256xbf16>
    %c0_26 = arith.constant 0 : index
    %c0_27 = arith.constant 0 : index
    %34 = vector.load %arg11[%c0_26, %c0_27] : memref<60x256xbf16, #tpu.memory_space<vmem>>, vector<60x256xbf16>
    %c0_28 = arith.constant 0 : index
    %c0_29 = arith.constant 0 : index
    %35 = vector.load %arg12[%c0_28, %c0_29] : memref<256x256xbf16, #tpu.memory_space<vmem>>, vector<256x256xbf16>
    %c0_30 = arith.constant 0 : index
    %c0_31 = arith.constant 0 : index
    %36 = vector.load %arg13[%c0_30, %c0_31] : memref<1x256xf32, #tpu.memory_space<vmem>>, vector<1x256xf32>
    %cst_32 = arith.constant dense<0.000000e+00> : vector<128x256xf32>
    %37 = tpu.matmul %0, %34, %cst_32 {dimension_numbers = #tpu.dot_dimension_numbers<[1], [0], [0], [1], [0, 0, 1, 1], [], []>} : vector<128x60xbf16>, vector<60x256xbf16>, vector<128x256xf32> -> vector<128x256xf32>
    %cst_33 = arith.constant dense<0.000000e+00> : vector<128x256xf32>
    %38 = tpu.matmul %33, %35, %cst_33 {dimension_numbers = #tpu.dot_dimension_numbers<[1], [0], [0], [1], [0, 0, 1, 1], [], []>} : vector<128x256xbf16>, vector<256x256xbf16>, vector<128x256xf32> -> vector<128x256xf32>
    %39 = arith.addf %37, %38 : vector<128x256xf32>
    %40 = vector.broadcast %36 : vector<1x256xf32> to vector<128x256xf32>
    %41 = arith.addf %39, %40 : vector<128x256xf32>
    %cst_34 = arith.constant 0.000000e+00 : f32
    %42 = vector.broadcast %cst_34 : f32 to vector<128x256xf32>
    %43 = arith.maximumf %41, %42 : vector<128x256xf32>
    %44 = arith.truncf %43 : vector<128x256xf32> to vector<128x256xbf16>
    %c0_35 = arith.constant 0 : index
    %c0_36 = arith.constant 0 : index
    %45 = vector.load %arg14[%c0_35, %c0_36] : memref<256x256xbf16, #tpu.memory_space<vmem>>, vector<256x256xbf16>
    %c0_37 = arith.constant 0 : index
    %c0_38 = arith.constant 0 : index
    %46 = vector.load %arg15[%c0_37, %c0_38] : memref<1x256xf32, #tpu.memory_space<vmem>>, vector<1x256xf32>
    %cst_39 = arith.constant dense<0.000000e+00> : vector<128x256xf32>
    %47 = tpu.matmul %44, %45, %cst_39 {dimension_numbers = #tpu.dot_dimension_numbers<[1], [0], [0], [1], [0, 0, 1, 1], [], []>} : vector<128x256xbf16>, vector<256x256xbf16>, vector<128x256xf32> -> vector<128x256xf32>
    %48 = vector.broadcast %46 : vector<1x256xf32> to vector<128x256xf32>
    %49 = arith.addf %47, %48 : vector<128x256xf32>
    %cst_40 = arith.constant 0.000000e+00 : f32
    %50 = vector.broadcast %cst_40 : f32 to vector<128x256xf32>
    %51 = arith.maximumf %49, %50 : vector<128x256xf32>
    %52 = arith.truncf %51 : vector<128x256xf32> to vector<128x256xbf16>
    %c0_41 = arith.constant 0 : index
    %c0_42 = arith.constant 0 : index
    %53 = vector.load %arg16[%c0_41, %c0_42] : memref<256x256xbf16, #tpu.memory_space<vmem>>, vector<256x256xbf16>
    %c0_43 = arith.constant 0 : index
    %c0_44 = arith.constant 0 : index
    %54 = vector.load %arg17[%c0_43, %c0_44] : memref<1x256xf32, #tpu.memory_space<vmem>>, vector<1x256xf32>
    %cst_45 = arith.constant dense<0.000000e+00> : vector<128x256xf32>
    %55 = tpu.matmul %52, %53, %cst_45 {dimension_numbers = #tpu.dot_dimension_numbers<[1], [0], [0], [1], [0, 0, 1, 1], [], []>} : vector<128x256xbf16>, vector<256x256xbf16>, vector<128x256xf32> -> vector<128x256xf32>
    %56 = vector.broadcast %54 : vector<1x256xf32> to vector<128x256xf32>
    %57 = arith.addf %55, %56 : vector<128x256xf32>
    %cst_46 = arith.constant 0.000000e+00 : f32
    %58 = vector.broadcast %cst_46 : f32 to vector<128x256xf32>
    %59 = arith.maximumf %57, %58 : vector<128x256xf32>
    %60 = arith.truncf %59 : vector<128x256xf32> to vector<128x256xbf16>
    %c0_47 = arith.constant 0 : index
    %c0_48 = arith.constant 0 : index
    %61 = vector.load %arg18[%c0_47, %c0_48] : memref<256x256xbf16, #tpu.memory_space<vmem>>, vector<256x256xbf16>
    %c0_49 = arith.constant 0 : index
    %c0_50 = arith.constant 0 : index
    %62 = vector.load %arg19[%c0_49, %c0_50] : memref<1x256xf32, #tpu.memory_space<vmem>>, vector<1x256xf32>
    %cst_51 = arith.constant dense<0.000000e+00> : vector<128x256xf32>
    %63 = tpu.matmul %60, %61, %cst_51 {dimension_numbers = #tpu.dot_dimension_numbers<[1], [0], [0], [1], [0, 0, 1, 1], [], []>} : vector<128x256xbf16>, vector<256x256xbf16>, vector<128x256xf32> -> vector<128x256xf32>
    %64 = vector.broadcast %62 : vector<1x256xf32> to vector<128x256xf32>
    %65 = arith.addf %63, %64 : vector<128x256xf32>
    %cst_52 = arith.constant 0.000000e+00 : f32
    %66 = vector.broadcast %cst_52 : f32 to vector<128x256xf32>
    %67 = arith.maximumf %65, %66 : vector<128x256xf32>
    %68 = arith.truncf %67 : vector<128x256xf32> to vector<128x256xbf16>
    %c0_53 = arith.constant 0 : index
    %c0_54 = arith.constant 0 : index
    %69 = vector.load %arg20[%c0_53, %c0_54] : memref<256x256xbf16, #tpu.memory_space<vmem>>, vector<256x256xbf16>
    %c0_55 = arith.constant 0 : index
    %c0_56 = arith.constant 0 : index
    %70 = vector.load %arg21[%c0_55, %c0_56] : memref<1x256xf32, #tpu.memory_space<vmem>>, vector<1x256xf32>
    %c0_57 = arith.constant 0 : index
    %c0_58 = arith.constant 0 : index
    %71 = vector.load %arg22[%c0_57, %c0_58] : memref<256x128xbf16, #tpu.memory_space<vmem>>, vector<256x128xbf16>
    %c0_59 = arith.constant 0 : index
    %c0_60 = arith.constant 0 : index
    %72 = vector.load %arg23[%c0_59, %c0_60] : memref<24x128xbf16, #tpu.memory_space<vmem>>, vector<24x128xbf16>
    %c0_61 = arith.constant 0 : index
    %c0_62 = arith.constant 0 : index
    %73 = vector.load %arg24[%c0_61, %c0_62] : memref<1x128xf32, #tpu.memory_space<vmem>>, vector<1x128xf32>
    %c0_63 = arith.constant 0 : index
    %c0_64 = arith.constant 0 : index
    %74 = vector.load %arg25[%c0_63, %c0_64] : memref<256x4xbf16, #tpu.memory_space<vmem>>, vector<256x4xbf16>
    %c0_65 = arith.constant 0 : index
    %c0_66 = arith.constant 0 : index
    %75 = vector.load %arg26[%c0_65, %c0_66] : memref<128x4xbf16, #tpu.memory_space<vmem>>, vector<128x4xbf16>
    %c0_67 = arith.constant 0 : index
    %c0_68 = arith.constant 0 : index
    %76 = vector.load %arg27[%c0_67, %c0_68] : memref<1x4xf32, #tpu.memory_space<vmem>>, vector<1x4xf32>
    %cst_69 = arith.constant dense<0.000000e+00> : vector<128x256xf32>
    %77 = tpu.matmul %68, %69, %cst_69 {dimension_numbers = #tpu.dot_dimension_numbers<[1], [0], [0], [1], [0, 0, 1, 1], [], []>} : vector<128x256xbf16>, vector<256x256xbf16>, vector<128x256xf32> -> vector<128x256xf32>
    %78 = vector.broadcast %70 : vector<1x256xf32> to vector<128x256xf32>
    %79 = arith.addf %77, %78 : vector<128x256xf32>
    %80 = arith.truncf %79 : vector<128x256xf32> to vector<128x256xbf16>
    %cst_70 = arith.constant dense<0.000000e+00> : vector<128x128xf32>
    %81 = tpu.matmul %80, %71, %cst_70 {dimension_numbers = #tpu.dot_dimension_numbers<[1], [0], [0], [1], [0, 0, 1, 1], [], []>} : vector<128x256xbf16>, vector<256x128xbf16>, vector<128x128xf32> -> vector<128x128xf32>
    %cst_71 = arith.constant dense<0.000000e+00> : vector<128x128xf32>
    %82 = tpu.matmul %1, %72, %cst_71 {dimension_numbers = #tpu.dot_dimension_numbers<[1], [0], [0], [1], [0, 0, 1, 1], [], []>} : vector<128x24xbf16>, vector<24x128xbf16>, vector<128x128xf32> -> vector<128x128xf32>
    %83 = arith.addf %81, %82 : vector<128x128xf32>
    %84 = vector.broadcast %73 : vector<1x128xf32> to vector<128x128xf32>
    %85 = arith.addf %83, %84 : vector<128x128xf32>
    %cst_72 = arith.constant 0.000000e+00 : f32
    %86 = vector.broadcast %cst_72 : f32 to vector<128x128xf32>
    %87 = arith.maximumf %85, %86 : vector<128x128xf32>
    %88 = arith.truncf %87 : vector<128x128xf32> to vector<128x128xbf16>
    %cst_73 = arith.constant dense<0.000000e+00> : vector<128x4xf32>
    %89 = tpu.matmul %88, %75, %cst_73 {dimension_numbers = #tpu.dot_dimension_numbers<[1], [0], [0], [1], [0, 0, 1, 1], [], []>} : vector<128x128xbf16>, vector<128x4xbf16>, vector<128x4xf32> -> vector<128x4xf32>
    %cst_74 = arith.constant dense<0.000000e+00> : vector<128x4xf32>
    %90 = tpu.matmul %68, %74, %cst_74 {dimension_numbers = #tpu.dot_dimension_numbers<[1], [0], [0], [1], [0, 0, 1, 1], [], []>} : vector<128x256xbf16>, vector<256x4xbf16>, vector<128x4xf32> -> vector<128x4xf32>
    %91 = arith.addf %89, %90 : vector<128x4xf32>
    %92 = vector.broadcast %76 : vector<1x4xf32> to vector<128x4xf32>
    %93 = arith.addf %91, %92 : vector<128x4xf32>
    %94 = arith.negf %93 : vector<128x4xf32>
    %95 = math.exp %94 : vector<128x4xf32>
    %cst_75 = arith.constant 1.000000e+00 : f32
    %96 = vector.broadcast %cst_75 : f32 to vector<128x4xf32>
    %97 = arith.addf %96, %95 : vector<128x4xf32>
    %98 = arith.divf %96, %97 : vector<128x4xf32>
    %c0_76 = arith.constant 0 : index
    %c0_77 = arith.constant 0 : index
    %99 = vector.load %arg28[%c0_76, %c0_77] : memref<128x4xf32, #tpu.memory_space<vmem>>, vector<128x4xf32>
    tpu.vector_store %arg28[%c0_76, %c0_77], %98 {strides = array<i32>} : memref<128x4xf32, #tpu.memory_space<vmem>>, vector<128x4xf32>,
    return
  }
  func.func @transform_0(%arg0: i32) -> (i32, i32) {
    %c0_i32 = arith.constant 0 : i32
    %c0_i32_0 = arith.constant 0 : i32
    return %arg0, %c0_i32 : i32, i32
  }
  func.func @transform_1(%arg0: i32) -> (i32, i32) {
    %c0_i32 = arith.constant 0 : i32
    %c0_i32_0 = arith.constant 0 : i32
    return %arg0, %c0_i32 : i32, i32
  }
  func.func @transform_2(%arg0: i32) -> (i32, i32) {
    %c0_i32 = arith.constant 0 : i32
    %c0_i32_0 = arith.constant 0 : i32
    %c0_i32_1 = arith.constant 0 : i32
    return %c0_i32, %c0_i32_0 : i32, i32
  }
  func.func @transform_3(%arg0: i32) -> (i32, i32) {
    %c0_i32 = arith.constant 0 : i32
    %c0_i32_0 = arith.constant 0 : i32
    %c0_i32_1 = arith.constant 0 : i32
    return %c0_i32, %c0_i32_0 : i32, i32
  }
  func.func @transform_4(%arg0: i32) -> (i32, i32) {
    %c0_i32 = arith.constant 0 : i32
    %c0_i32_0 = arith.constant 0 : i32
    %c0_i32_1 = arith.constant 0 : i32
    return %c0_i32, %c0_i32_0 : i32, i32
  }
  func.func @transform_5(%arg0: i32) -> (i32, i32) {
    %c0_i32 = arith.constant 0 : i32
    %c0_i32_0 = arith.constant 0 : i32
    %c0_i32_1 = arith.constant 0 : i32
    return %c0_i32, %c0_i32_0 : i32, i32
  }
  func.func @transform_6(%arg0: i32) -> (i32, i32) {
    %c0_i32 = arith.constant 0 : i32
    %c0_i32_0 = arith.constant 0 : i32
    %c0_i32_1 = arith.constant 0 : i32
    return %c0_i32, %c0_i32_0 : i32, i32
  }
  func.func @transform_7(%arg0: i32) -> (i32, i32) {
    %c0_i32 = arith.constant 0 : i32
    %c0_i32_0 = arith.constant 0 : i32
    %c0_i32_1 = arith.constant 0 : i32
    return %c0_i32, %c0_i32_0 : i32, i32
  }
  func.func @transform_8(%arg0: i32) -> (i32, i32) {
    %c0_i32 = arith.constant 0 : i32
    %c0_i32_0 = arith.constant 0 : i32
    %c0_i32_1 = arith.constant 0 : i32
    return %c0_i32, %c0_i32_0 : i32, i32
  }
  func.func @transform_9(%arg0: i32) -> (i32, i32) {
    %c0_i32 = arith.constant 0 : i32
    %c0_i32_0 = arith.constant 0 : i32
    %c0_i32_1 = arith.constant 0 : i32
    return %c0_i32, %c0_i32_0 : i32, i32
  }
  func.func @transform_10(%arg0: i32) -> (i32, i32) {
    %c0_i32 = arith.constant 0 : i32
    %c0_i32_0 = arith.constant 0 : i32
    %c0_i32_1 = arith.constant 0 : i32
    return %c0_i32, %c0_i32_0 : i32, i32
  }
  func.func @transform_11(%arg0: i32) -> (i32, i32) {
    %c0_i32 = arith.constant 0 : i32
    %c0_i32_0 = arith.constant 0 : i32
    %c0_i32_1 = arith.constant 0 : i32
    return %c0_i32, %c0_i32_0 : i32, i32
  }
  func.func @transform_12(%arg0: i32) -> (i32, i32) {
    %c0_i32 = arith.constant 0 : i32
    %c0_i32_0 = arith.constant 0 : i32
    %c0_i32_1 = arith.constant 0 : i32
    return %c0_i32, %c0_i32_0 : i32, i32
  }
  func.func @transform_13(%arg0: i32) -> (i32, i32) {
    %c0_i32 = arith.constant 0 : i32
    %c0_i32_0 = arith.constant 0 : i32
    %c0_i32_1 = arith.constant 0 : i32
    return %c0_i32, %c0_i32_0 : i32, i32
  }
  func.func @transform_14(%arg0: i32) -> (i32, i32) {
    %c0_i32 = arith.constant 0 : i32
    %c0_i32_0 = arith.constant 0 : i32
    %c0_i32_1 = arith.constant 0 : i32
    return %c0_i32, %c0_i32_0 : i32, i32
  }
  func.func @transform_15(%arg0: i32) -> (i32, i32) {
    %c0_i32 = arith.constant 0 : i32
    %c0_i32_0 = arith.constant 0 : i32
    %c0_i32_1 = arith.constant 0 : i32
    return %c0_i32, %c0_i32_0 : i32, i32
  }
  func.func @transform_16(%arg0: i32) -> (i32, i32) {
    %c0_i32 = arith.constant 0 : i32
    %c0_i32_0 = arith.constant 0 : i32
    %c0_i32_1 = arith.constant 0 : i32
    return %c0_i32, %c0_i32_0 : i32, i32
  }
  func.func @transform_17(%arg0: i32) -> (i32, i32) {
    %c0_i32 = arith.constant 0 : i32
    %c0_i32_0 = arith.constant 0 : i32
    %c0_i32_1 = arith.constant 0 : i32
    return %c0_i32, %c0_i32_0 : i32, i32
  }
  func.func @transform_18(%arg0: i32) -> (i32, i32) {
    %c0_i32 = arith.constant 0 : i32
    %c0_i32_0 = arith.constant 0 : i32
    %c0_i32_1 = arith.constant 0 : i32
    return %c0_i32, %c0_i32_0 : i32, i32
  }
  func.func @transform_19(%arg0: i32) -> (i32, i32) {
    %c0_i32 = arith.constant 0 : i32
    %c0_i32_0 = arith.constant 0 : i32
    %c0_i32_1 = arith.constant 0 : i32
    return %c0_i32, %c0_i32_0 : i32, i32
  }
  func.func @transform_20(%arg0: i32) -> (i32, i32) {
    %c0_i32 = arith.constant 0 : i32
    %c0_i32_0 = arith.constant 0 : i32
    %c0_i32_1 = arith.constant 0 : i32
    return %c0_i32, %c0_i32_0 : i32, i32
  }
  func.func @transform_21(%arg0: i32) -> (i32, i32) {
    %c0_i32 = arith.constant 0 : i32
    %c0_i32_0 = arith.constant 0 : i32
    %c0_i32_1 = arith.constant 0 : i32
    return %c0_i32, %c0_i32_0 : i32, i32
  }
  func.func @transform_22(%arg0: i32) -> (i32, i32) {
    %c0_i32 = arith.constant 0 : i32
    %c0_i32_0 = arith.constant 0 : i32
    %c0_i32_1 = arith.constant 0 : i32
    return %c0_i32, %c0_i32_0 : i32, i32
  }
  func.func @transform_23(%arg0: i32) -> (i32, i32) {
    %c0_i32 = arith.constant 0 : i32
    %c0_i32_0 = arith.constant 0 : i32
    %c0_i32_1 = arith.constant 0 : i32
    return %c0_i32, %c0_i32_0 : i32, i32
  }
  func.func @transform_24(%arg0: i32) -> (i32, i32) {
    %c0_i32 = arith.constant 0 : i32
    %c0_i32_0 = arith.constant 0 : i32
    %c0_i32_1 = arith.constant 0 : i32
    return %c0_i32, %c0_i32_0 : i32, i32
  }
  func.func @transform_25(%arg0: i32) -> (i32, i32) {
    %c0_i32 = arith.constant 0 : i32
    %c0_i32_0 = arith.constant 0 : i32
    %c0_i32_1 = arith.constant 0 : i32
    return %c0_i32, %c0_i32_0 : i32, i32
  }
  func.func @transform_26(%arg0: i32) -> (i32, i32) {
    %c0_i32 = arith.constant 0 : i32
    %c0_i32_0 = arith.constant 0 : i32
    %c0_i32_1 = arith.constant 0 : i32
    return %c0_i32, %c0_i32_0 : i32, i32
  }
  func.func @transform_27(%arg0: i32) -> (i32, i32) {
    %c0_i32 = arith.constant 0 : i32
    %c0_i32_0 = arith.constant 0 : i32
    return %arg0, %c0_i32 : i32, i32
  }
}

</mosaic_0001>

<bundles_post_ra>
// kernel: tpu_custom_call.1
= control target key start
LH: loop header
LB: loop body
LE: loop exit
PB: predicated region body
PF: predicated region fallthrough
CT: control target
= control target key end

     0   :  { %s9891_s0 = inlined_call_operand.vmem [shape: bf16[256,60], index: 0, kind: input, shape index: {}]   ;;  %s9892_s1 = inlined_call_operand.vmem [shape: bf16[256,24], index: 1, kind: input, shape index: {}]   ;;  %s9893_s2 = inlined_call_operand.hbm [shape: bf16[60,256], index: 2, kind: input, shape index: {}]   ;;  %s9894_s3 = inlined_call_operand.vmem [shape: f32[1,256], index: 3, kind: input, shape index: {}]   ;;  %s9895_s4 = inlined_call_operand.vmem [shape: bf16[256,256], index: 4, kind: input, shape index: {}]   ;;  %s9896_s5 = inlined_call_operand.vmem [shape: f32[1,256], index: 5, kind: input, shape index: {}]   ;;  %s9897_s6 = inlined_call_operand.vmem [shape: bf16[256,256], index: 6, kind: input, shape index: {}]   ;;  %s9898_s7 = inlined_call_operand.vmem [shape: f32[1,256], index: 7, kind: input, shape index: {}]   ;;  %s9899_s8 = inlined_call_operand.hbm [shape: bf16[256,256], index: 8, kind: input, shape index: {}]   ;;  %s9900_s9 = inlined_call_operand.vmem [shape: f32[1,256], index: 9, kind: input, shape index: {}]   ;;  %s9901_s10 = inlined_call_operand.hbm [shape: bf16[60,256], index: 10, kind: input, shape index: {}]   ;;  %s9902_s11 = inlined_call_operand.hbm [shape: bf16[256,256], index: 11, kind: input, shape index: {}]   ;;  %s9903_s12 = inlined_call_operand.vmem [shape: f32[1,256], index: 12, kind: input, shape index: {}]   ;;  %s9904_s13 = inlined_call_operand.hbm [shape: bf16[256,256], index: 13, kind: input, shape index: {}]   ;;  %s9905_s14 = inlined_call_operand.vmem [shape: f32[1,256], index: 14, kind: input, shape index: {}]   ;;  %s9906_s15 = inlined_call_operand.hbm [shape: bf16[256,256], index: 15, kind: input, shape index: {}]   ;;  %s9907_s16 = inlined_call_operand.vmem [shape: f32[1,256], index: 16, kind: input, shape index: {}]   ;;  %s9908_s17 = inlined_call_operand.hbm [shape: bf16[256,256], index: 17, kind: input, shape index: {}]   ;;  %s9909_s18 = inlined_call_operand.vmem [shape: f32[1,256], index: 18, kind: input, shape index: {}]   ;;  %s9910_s19 = inlined_call_operand.hbm [shape: bf16[256,256], index: 19, kind: input, shape index: {}]   ;;  %s9911_s20 = inlined_call_operand.vmem [shape: f32[1,256], index: 20, kind: input, shape index: {}]   ;;  %s9912_s21 = inlined_call_operand.hbm [shape: bf16[256,128], index: 21, kind: input, shape index: {}]   ;;  %s9913_s22 = inlined_call_operand.vmem [shape: bf16[24,128], index: 22, kind: input, shape index: {}]   ;;  %s9914_s23 = inlined_call_operand.vmem [shape: f32[1,128], index: 23, kind: input, shape index: {}]   ;;  %s9915_s24 = inlined_call_operand.vmem [shape: bf16[256,4], index: 24, kind: input, shape index: {}]   ;;  %s9916_s25 = inlined_call_operand.vmem [shape: bf16[128,4], index: 25, kind: input, shape index: {}]   ;;  %s9917_s26 = inlined_call_operand.vmem [shape: f32[1,4], index: 26, kind: input, shape index: {}]   ;;  %s9918_s27 = inlined_call_operand.vmem [shape: f32[256,4], index: 27, kind: output, shape index: {}]  }
   0x1   :  { %9922 = sst [smem:[#allocation21_spill]] %s9891_s0 }
   0x2   :  { %9923 = sst [smem:[#allocation22_spill]] %s9892_s1 }
   0x3   :  { %9924 = sst [smem:[#allocation23_spill]] %s9893_s2 }
   0x4   :  { %9925 = sst [smem:[#allocation24_spill]] %s9894_s3 }
   0x5   :  { %9926 = sst [smem:[#allocation25_spill]] %s9895_s4 }
   0x6   :  { %9927 = sst [smem:[#allocation26_spill]] %s9896_s5 }
   0x7   :  { %9928 = sst [smem:[#allocation27_spill]] %s9897_s6 }
   0x8   :  { %9929 = sst [smem:[#allocation28_spill]] %s9898_s7 }
   0x9   :  { %9930 = sst [smem:[#allocation29_spill]] %s9899_s8 }
   0xa   :  { %9931 = sst [smem:[#allocation30_spill]] %s9900_s9 }
   0xb   :  { %9932 = sst [smem:[#allocation31_spill]] %s9901_s10 }
   0xc   :  { %9933 = sst [smem:[#allocation32_spill]] %s9902_s11 }
   0xd   :  { %9934 = sst [smem:[#allocation33_spill]] %s9906_s15 }
   0xe   :  { %9935 = sst [smem:[#allocation34_spill]] %s9910_s19 }
   0xf   :  { %9936 = sst [smem:[#allocation35_spill]] %s9914_s23 }
  0x10   :  { %9937 = sst [smem:[#allocation36_spill]] %s9917_s26 }
  0x11   :  { %9938 = sst [smem:[#allocation37_spill]] %s9918_s27 }
  0x12   :  { %32 = vsyncpa [#allocation3], 0 }
  0x13   :  { %33 = vsyncpa [#allocation5], 0 }
  0x14   :  { %34 = vsyncpa [#allocation8], 0 }
  0x15   :  { %35 = vsyncpa [#allocation11], 0 }
  0x16   :  { %36 = vsyncpa [#allocation14], 0  ;;  %s8594_s7 = smov 0  }
  0x17 LB: > { %s9921_s4 = sadd.s32 4294967295, %s8439_s7   ;;  %p6220_p0 = scmp.ge.s32.totalorder %s8439_s7, 1  ;;  %s8439_s7 = sphi %s8594_s7, %s42_s7  }
  0x18   : > { %p650_p1 = scmp.lt.s32.totalorder %s8439_s7, 3  ;;  %p8604_p2 = scmp.eq.s32.totalorder %s9921_s4, 0 }
  0x19   : > { %s9940_s5 = sld [smem:[#allocation29_spill]]  ;;  %s8441_s11 = smov [#allocation4]  }
  0x1a   : > { %p8611_p3 = pnand %p6220_p0, %p650_p1  ;;  %s9942_s1 = sld [smem:[#allocation32_spill]] }
  0x1b   : > { %s692_s2 = sshll.u32 %s8441_s11, 4  ;;  %s8442_s30 = smov [#allocation7]   ;;  %s693_s2 = int_to_ptr.vmem [resolvable:$true] %s692_s2 }
  0x1c   : > { %p8002_p4 = pneg %p8611_p3  ;;  %s723_s9 = sshll.u32 %s8442_s30, 4  ;;  %s724_s9 = int_to_ptr.vmem [resolvable:$true] %s723_s9 }
  0x1d   : > { %s9944_s15 = sld [smem:[#allocation33_spill]]  ;;  %s8443_s29 = smov 128  }
  0x1e   : > { %p8622_p5 = pnand %p8604_p2, %p8002_p4  ;;  %s8445_s11 = smov [#allocation10]  }
  0x1f   : > { %s690_s28 = sshll.u32 %s9940_s5, 4  ;;  %s757_s30 = sshll.u32 %s8445_s11, 4  ;;  %s691_s28 = int_to_ptr.hbm [resolvable:$true] %s690_s28  ;;  %s758_s30 = int_to_ptr.vmem [resolvable:$true] %s757_s30 }
  0x20   : > { %s721_s6 = sshll.u32 %s9942_s1, 4  ;;  %s8444_s1 = smov 8   ;;  %s722_s6 = int_to_ptr.hbm [resolvable:$true] %s721_s6 }
  0x21   : > { %8008 = dma.hbm_to_vmem [thread:$0]  (!%p8622_p5), %s691_s28, 4096, %s693_s2, [#allocation5], %s8443_s29, %s8443_s29, %s8444_s1  }
  0x22   : > { %8014 = dma.hbm_to_vmem [thread:$0]  (!%p8622_p5), %s722_s6, 4096, %s724_s9, [#allocation8], %s8443_s29, %s8443_s29, %s8444_s1  }
  0x23   : > { %s755_s10 = sshll.u32 %s9944_s15, 4  ;;  %s9945_s19 = sld [smem:[#allocation34_spill]]  ;;  %s756_s10 = int_to_ptr.hbm [resolvable:$true] %s755_s10 }
  0x24   : > { %8020 = dma.hbm_to_vmem [thread:$0]  (!%p8622_p5), %s756_s10, 4096, %s758_s30, [#allocation11], %s8443_s29, %s8443_s29, %s8444_s1  }
  0x25   : > { %s9946_s15 = sld [smem:[#allocation23_spill]]  ;;  %s8446_s6 = smov [#allocation13]  }
  0x26   : > { %s791_s9 = sshll.u32 %s8446_s6, 4  ;;  %s8447_s27 = smov [#allocation2]   ;;  %s792_s9 = int_to_ptr.vmem [resolvable:$true] %s791_s9 }
  0x27   : > { %s663_s11 = sshll.u32 %s8447_s27, 4  ;;  %s9947_s23 = sld [smem:[#allocation31_spill]]  ;;  %s664_s11 = int_to_ptr.vmem [resolvable:$true] %s663_s11 }
  0x28   : > { %s738_s28 = sshll.u32 %s9904_s13, 4  ;;  %s8448_s2 = smov [#allocation6]   ;;  %s739_s28 = int_to_ptr.hbm [resolvable:$true] %s738_s28 }
  0x29   : > { %s789_s5 = sshll.u32 %s9945_s19, 4  ;;  %s8449_s19 = smov [#allocation9]   ;;  %s790_s5 = int_to_ptr.hbm [resolvable:$true] %s789_s5 }
  0x2a   : > { %8026 = dma.hbm_to_vmem [thread:$0]  (!%p8622_p5), %s790_s5, 4096, %s792_s9, [#allocation14], %s8443_s29, %s8443_s29, %s8444_s1  }
  0x2b   : > { %s661_s26 = sshll.u32 %s9946_s15, 4  ;;  %s709_s5 = sshll.u32 %s8448_s2, 4  ;;  %s662_s26 = int_to_ptr.hbm [resolvable:$true] %s661_s26  ;;  %s710_s5 = int_to_ptr.vmem [resolvable:$true] %s709_s5 }
  0x2c   : > { %8005 = dma.hbm_to_vmem [thread:$0]  (!%p8622_p5), %s662_s26, 1024, %s664_s11, [#allocation3], %s8443_s29, %s8443_s29, %s8444_s1  }
  0x2d   : > { %s707_s10 = sshll.u32 %s9947_s23, 4  ;;  %s740_s23 = sshll.u32 %s8449_s19, 4  ;;  %s708_s10 = int_to_ptr.hbm [resolvable:$true] %s707_s10  ;;  %s741_s23 = int_to_ptr.vmem [resolvable:$true] %s740_s23 }
  0x2e   : > { %8011 = dma.hbm_to_vmem [thread:$0]  (!%p8622_p5), %s708_s10, 1024, %s710_s5, [#allocation5], %s8443_s29, %s8443_s29, %s8444_s1  }
  0x2f   : > { %s772_s26 = sshll.u32 %s9908_s17, 4  ;;  %s806_s4 = sshll.u32 %s9912_s21, 4  ;;  %s773_s26 = int_to_ptr.hbm [resolvable:$true] %s772_s26  ;;  %s807_s4 = int_to_ptr.hbm [resolvable:$true] %s806_s4 }
  0x30   : > { %8017 = dma.hbm_to_vmem [thread:$0]  (!%p8622_p5), %s739_s28, 4096, %s741_s23, [#allocation8], %s8443_s29, %s8443_s29, %s8444_s1  }
  0x31   : > { %s8450_s15 = smov [#allocation12]   ;;  %s8451_s30 = smov [#allocation15]  }
  0x32   : > { %s774_s10 = sshll.u32 %s8450_s15, 4  ;;  %s808_s2 = sshll.u32 %s8451_s30, 4  ;;  %s775_s10 = int_to_ptr.vmem [resolvable:$true] %s774_s10  ;;  %s809_s2 = int_to_ptr.vmem [resolvable:$true] %s808_s2 }
  0x33   : > { %8023 = dma.hbm_to_vmem [thread:$0]  (!%p8622_p5), %s773_s26, 4096, %s775_s10, [#allocation11], %s8443_s29, %s8443_s29, %s8444_s1  }
  0x34   : > { %s8452_s5 = smov 64   ;;  %s8453_s19 = smov 4  }
  0x35   : > { %8029 = dma.hbm_to_vmem [thread:$0]  (!%p8622_p5), %s807_s4, 2048, %s809_s2, [#allocation14], %s8452_s5, %s8452_s5, %s8453_s19  }
  0x36   : > { %857 = sbr.rel (%p8611_p3) target bundleno = 1975 (0x7b7), region = 128 }
  0x3b   : > { %8418 = dma.done.wait (%p8604_p2), [#allocation3], 1024  }
  0x3c   : > { %8420 = vsyncadd (%p8604_p2), [#allocation3], 4294966272 }
  0x3d   : > { %8422 = dma.done.wait (%p8604_p2), [#allocation5], 5120  }
  0x3e   : > { %8424 = vsyncadd (%p8604_p2), [#allocation5], 4294962176 }
  0x3f   : > { %8426 = dma.done.wait (%p8604_p2), [#allocation8], 8192  }
  0x40   : > { %8428 = vsyncadd (%p8604_p2), [#allocation8], 4294959104 }
  0x41   : > { %8430 = dma.done.wait (%p8604_p2), [#allocation11], 8192  }
  0x42   : > { %8432 = vsyncadd (%p8604_p2), [#allocation11], 4294959104 }
  0x43   : > { %8434 = dma.done.wait (%p8604_p2), [#allocation14], 6144  }
  0x44   : > { %8436 = vsyncadd (%p8604_p2), [#allocation14], 4294961152  ;;  %s9948_s0 = sadd.s32 4294967295, %s8439_s7   ;;  %vm1143_vm0 = vcmask 1045504   ;;  %v6305_v0 = vld [vmem:[#allocation2 + $0x30] sm:$0xf] }
  0x45   : > { %s6241_s3 = sshll.u32 %s9948_s0, 4  ;;  %v7644_v1 = vld [vmem:[#allocation2 + $0x34] sm:$0x30]  ;;  %v7643_v2 = vld [vmem:[#allocation2 + $0x34] sm:$0xf]  ;;  %s9949_s28 = sld [smem:[#allocation21_spill]] }
  0x46   : > { %p976_p6 = scmp.lt.s32.totalorder %s6241_s3, 31  ;;  %v6306_v3 = vor.u32 %v7644_v1, %v6305_v0  ;;  %v6307_v4 = vld [vmem:[#allocation2 + $0x38] sm:$0x30]  ;;  %v6297_v5 = vld [vmem:[#allocation2 + $0x20] sm:$0xf]  ;;  %vm1118_vm1 = vcmask 490496  }
  0x47   : > { %v7642_v6 = vld [vmem:[#allocation2 + $0x24] sm:$0xf0]  ;;  %v6310_v7 = vor.u32 %v7643_v2, %v6307_v4  ;;  %v7641_v8 = vld [vmem:[#allocation2 + $0x24] sm:$0xf]  ;;  %v6299_v9 = vld [vmem:[#allocation2 + $0x28] sm:$0xf0] }
  0x48   : > { %v1145_v10 = vsel %vm1143_vm0, %v6306_v3, 0  ;;  %v6298_v12 = vor.u32 %v7642_v6, %v6297_v5  ;;  %s9961_s3 = smov (!%p976_p6, %s6241_s3), 31  ;;  %v6302_v13 = vor.u32 %v7641_v8, %v6299_v9  ;;  %v6289_v14 = vld [vmem:[#allocation2 + $0x10] sm:$0xf]  ;;  %v7640_v15 = vld [vmem:[#allocation2 + $0x14] sm:$0xf0] }
  0x49   : > { %1154 = vmatpush.bf16.msra.mxu0 %v1145_v10  ;;  %v1148_v11 = vsel %vm1143_vm0, %v6310_v7, 0  ;;  %7950 = vmatpush.bf16.msra.mxu2 %v1145_v10  ;;  %v7639_v16 = vld [vmem:[#allocation2 + $0x14] sm:$0xf]  ;;  %v6291_v17 = vld [vmem:[#allocation2 + $0x18] sm:$0xf0]  ;;  %v6290_v18 = vor.u32 %v7640_v15, %v6289_v14  ;;  %s6242_s8 = sshll.u32 %s9961_s3, 2 }
  0x4a   : > { %1203 = vmatpush.bf16.msra.mxu1 %v1148_v11  ;;  %7954 = vmatpush.bf16.msra.mxu3 %v1148_v11  ;;  %v6294_v19 = vor.u32 %v7639_v16, %v6291_v17  ;;  %v6281_v20 = vld [vmem:[#allocation2] sm:$0xf]  ;;  %v7638_v21 = vld [vmem:[#allocation2 + $0x4] sm:$0xf0]  ;;  %v7637_v22 = vld [vmem:[#allocation2 + $0x4] sm:$0xf] }
  0x4b   : > { %v6283_v23 = vld [vmem:[#allocation2 + $0x8] sm:$0xf0]  ;;  %v6282_v24 = vor.u32 %v7638_v21, %v6281_v20  ;;  %s8724_s23 = scalar_lea.vmem %s9949_s28, %s6242_s8  ;;  %s9950_s26 = sld [smem:[#allocation25_spill]]  ;;  %vm5141_vm2 = vcmask 1043456   ;;  %vm5116_vm3 = vcmask 195584   ;;  %vm6045_vm7 = vcmask 31744  }
  0x4c   : > { %v6286_v25 = vor.u32 %v7637_v22, %v6283_v23  ;;  %v7621_v26 = vld [vmem:[%s8724_s23] sm:$0xff]  ;;  %v7622_v27 = vld [vmem:[%s8724_s23 + $0x8] sm:$0xff]  ;;  %v7623_v29 = vld [vmem:[%s8724_s23 + $0x10] sm:$0xff]  ;;  %s9951_s19 = sld [smem:[#allocation24_spill]]  ;;  %s6246_s11 = sshll.u32 %s9961_s3, 3 }
  0x4d   : > { %1155 = vmatpush.bf16.msra.mxu0 %v6298_v12  ;;  %7951 = vmatpush.bf16.msra.mxu2 %v6298_v12  ;;  %v8733_v28 = vld [vmem:[%s8724_s23 + $0x20] sm:$0xff]  ;;  %v7626_v30 = vld [vmem:[%s8724_s23 + $0x28] sm:$0xff]  ;;  %v7624_v6 = vld [vmem:[%s8724_s23 + $0x18] sm:$0xff]  ;;  %s9952_s1 = sld [smem:[#allocation27_spill]] }
  0x4e   : > { %1204 = vmatpush.bf16.msra.mxu1 %v6302_v13  ;;  %7955 = vmatpush.bf16.msra.mxu3 %v6302_v13  ;;  %v7627_v16 = vld [vmem:[%s8724_s23 + $0x30] sm:$0xff]  ;;  %s9953_s9 = sld [smem:[#allocation26_spill]] }
  0x4f   : > { %s9954_s4 = sld [smem:[#allocation28_spill]] }
  0x50   : > { %s9955_s30 = sld [smem:[#allocation30_spill]] }
  0x51   : > { %1156 = vmatpush.bf16.msra.mxu0 %v6290_v18  ;;  %7952 = vmatpush.bf16.msra.mxu2 %v6290_v18  ;;  %v7659_v31 = vld [vmem:[%s9950_s26 + $0x74] sm:$0xf]  ;;  %v6387_v32 = vld [vmem:[%s9950_s26 + $0x78] sm:$0xf0]  ;;  %v6449_v34 = vld [vmem:[%s9950_s26 + $0xf0] sm:$0xf] }
  0x52   : > { %1205 = vmatpush.bf16.msra.mxu1 %v6294_v19  ;;  %7956 = vmatpush.bf16.msra.mxu3 %v6294_v19  ;;  %v6390_v33 = vor.u32 %v7659_v31, %v6387_v32  ;;  %v7676_v35 = vld [vmem:[%s9950_s26 + $0xf4] sm:$0xf0]  ;;  %v7657_v36 = vld [vmem:[%s9950_s26 + $0x64] sm:$0xf]  ;;  %v6379_v38 = vld [vmem:[%s9950_s26 + $0x68] sm:$0xf0] }
  0x53   : > { %v6450_v37 = vor.u32 %v7676_v35, %v6449_v34  ;;  %v6441_v39 = vld [vmem:[%s9950_s26 + $0xe0] sm:$0xf]  ;;  %v6382_v40 = vor.u32 %v7657_v36, %v6379_v38  ;;  %v7674_v41 = vld [vmem:[%s9950_s26 + $0xe4] sm:$0xf0]  ;;  %v7675_v42 = vld [vmem:[%s9950_s26 + $0xf4] sm:$0xf] }
  0x54   : > { %v6451_v43 = vld [vmem:[%s9950_s26 + $0xf8] sm:$0xf0]  ;;  %v6442_v44 = vor.u32 %v7674_v41, %v6441_v39  ;;  %v7655_v46 = vld [vmem:[%s9950_s26 + $0x54] sm:$0xf]  ;;  %v6385_v48 = vld [vmem:[%s9950_s26 + $0x70] sm:$0xf] }
  0x55   : > { %1157 = vmatpush.bf16.msra.mxu0 %v6282_v24  ;;  %7953 = vmatpush.bf16.msra.mxu2 %v6282_v24  ;;  %v6454_v45 = vor.u32 %v7675_v42, %v6451_v43  ;;  %v6371_v47 = vld [vmem:[%s9950_s26 + $0x58] sm:$0xf0]  ;;  %v7660_v49 = vld [vmem:[%s9950_s26 + $0x74] sm:$0xf0]  ;;  %v6433_v50 = vld [vmem:[%s9950_s26 + $0xd0] sm:$0xf] }
  0x56   : > { %1206 = vmatpush.bf16.msra.mxu1 %v6286_v25  ;;  %7957 = vmatpush.bf16.msra.mxu3 %v6286_v25  ;;  %v7672_v51 = vld [vmem:[%s9950_s26 + $0xd4] sm:$0xf0]  ;;  %v6386_v52 = vor.u32 %v7660_v49, %v6385_v48  ;;  %v7673_v53 = vld [vmem:[%s9950_s26 + $0xe4] sm:$0xf]  ;;  %v6443_v54 = vld [vmem:[%s9950_s26 + $0xe8] sm:$0xf0]  ;;  %v6374_v55 = vor.u32 %v7655_v46, %v6371_v47 }
  0x57   : > { %v6446_v56 = vor.u32 %v7673_v53, %v6443_v54  ;;  %v6377_v57 = vld [vmem:[%s9950_s26 + $0x60] sm:$0xf]  ;;  %v7658_v58 = vld [vmem:[%s9950_s26 + $0x64] sm:$0xf0]  ;;  %v6434_v59 = vor.u32 %v7672_v51, %v6433_v50  ;;  %v7653_v61 = vld [vmem:[%s9950_s26 + $0x44] sm:$0xf] }
  0x58   : > { %6311 = vmatmul.msk.bf16.vlgmr.msra.gmra.mxu0 %vm1118_vm1, %v7621_v26  ;;  %6316 = vmatmul.msk.bf16.vlgmr.msra.gmra.mxu2 %vm1118_vm1, %v7626_v30  ;;  %v6378_v60 = vor.u32 %v7658_v58, %v6377_v57  ;;  %v6363_v62 = vld [vmem:[%s9950_s26 + $0x48] sm:$0xf0]  ;;  %v6425_v63 = vld [vmem:[%s9950_s26 + $0xc0] sm:$0xf]  ;;  %v7670_v0 = vld [vmem:[%s9950_s26 + $0xc4] sm:$0xf0] }
  0x59   : > { %6319 = vmatmul.msk.bf16.vlgmr.msra.gmra.mxu1 %vm1118_vm1, %v7621_v26  ;;  %6323 = vmatmul.msk.bf16.vlgmr.msra.gmra.mxu3 %vm1118_vm1, %v8733_v28  ;;  %v7671_v1 = vld [vmem:[%s9950_s26 + $0xd4] sm:$0xf]  ;;  %v6435_v2 = vld [vmem:[%s9950_s26 + $0xd8] sm:$0xf0]  ;;  %v6369_v4 = vld [vmem:[%s9950_s26 + $0x50] sm:$0xf]  ;;  %v6366_v7 = vor.u32 %v7653_v61, %v6363_v62  ;;  %v6426_v9 = vor.u32 %v7670_v0, %v6425_v63 }
  0x5a   : > { %1592 = vmatpush.bf16.msrb.mxu0 %v6390_v33  ;;  %1543 = vmatpush.bf16.msrb.mxu3 %v6450_v37  ;;  %v6438_v3 = vor.u32 %v7671_v1, %v6435_v2  ;;  %v7656_v5 = vld [vmem:[%s9950_s26 + $0x54] sm:$0xf0]  ;;  %v7651_v8 = vld [vmem:[%s9950_s26 + $0x34] sm:$0xf]  ;;  %v6355_v10 = vld [vmem:[%s9950_s26 + $0x38] sm:$0xf0] }
  0x5b   : > { %1641 = vmatpush.bf16.msrb.mxu1 %v6454_v45  ;;  %1494 = vmatpush.bf16.msrb.mxu2 %v6386_v52  ;;  %v7669_v11 = vld [vmem:[%s9950_s26 + $0xc4] sm:$0xf]  ;;  %v6427_v12 = vld [vmem:[%s9950_s26 + $0xc8] sm:$0xf0]  ;;  %v6370_v13 = vor.u32 %v7656_v5, %v6369_v4  ;;  %v6417_v14 = vld [vmem:[%s9950_s26 + $0xb0] sm:$0xf]  ;;  %v6358_v20 = vor.u32 %v7651_v8, %v6355_v10 }
  0x5c   : > { %v7668_v15 = vld [vmem:[%s9950_s26 + $0xb4] sm:$0xf0]  ;;  %v6361_v17 = vld [vmem:[%s9950_s26 + $0x40] sm:$0xf]  ;;  %v7654_v18 = vld [vmem:[%s9950_s26 + $0x44] sm:$0xf0]  ;;  %v6430_v19 = vor.u32 %v7669_v11, %v6427_v12 }
  0x5d   : > { %v7667_v21 = vld [vmem:[%s9950_s26 + $0xb4] sm:$0xf]  ;;  %v6419_v22 = vld [vmem:[%s9950_s26 + $0xb8] sm:$0xf0]  ;;  %v6418_v23 = vor.u32 %v7668_v15, %v6417_v14  ;;  %v7649_v24 = vld [vmem:[%s9950_s26 + $0x24] sm:$0xf]  ;;  %v6362_v26 = vor.u32 %v7654_v18, %v6361_v17 }
  0x5e   : > { %1593 = vmatpush.bf16.msrb.mxu0 %v6382_v40  ;;  %1544 = vmatpush.bf16.msrb.mxu3 %v6442_v44  ;;  %v6347_v25 = vld [vmem:[%s9950_s26 + $0x28] sm:$0xf0]  ;;  %v7652_v31 = vld [vmem:[%s9950_s26 + $0x34] sm:$0xf0]  ;;  %v6422_v32 = vor.u32 %v7667_v21, %v6419_v22  ;;  %v6345_v36 = vld [vmem:[%s9950_s26 + $0x20] sm:$0xf] }
  0x5f   : > { %1642 = vmatpush.bf16.msrb.mxu1 %v6446_v56  ;;  %1495 = vmatpush.bf16.msrb.mxu2 %v6378_v60  ;;  %v6350_v33 = vor.u32 %v7649_v24, %v6347_v25  ;;  %v7650_v37 = vld [vmem:[%s9950_s26 + $0x24] sm:$0xf0]  ;;  %v7628_v39 = vld [vmem:[%s8724_s23 + $0x38] sm:$0xff]  ;;  %v7665_v40 = vld [vmem:[%s9950_s26 + $0xa4] sm:$0xf]  ;;  %s9957_s28 = sld [smem:[#allocation35_spill]] }
  0x60   : > { %v6346_v38 = vor.u32 %v7650_v37, %v6345_v36  ;;  %v6411_v41 = vld [vmem:[%s9950_s26 + $0xa8] sm:$0xf0]  ;;  %v6401_v43 = vld [vmem:[%s9950_s26 + $0x90] sm:$0xf]  ;;  %v7648_v46 = vld [vmem:[%s9950_s26 + $0x14] sm:$0xf0] }
  0x61   : > { %v6414_v42 = vor.u32 %v7665_v40, %v6411_v41  ;;  %v6337_v44 = vld [vmem:[%s9950_s26 + $0x10] sm:$0xf]  ;;  %v7647_v47 = vld [vmem:[%s9950_s26 + $0x14] sm:$0xf]  ;;  %v6339_v48 = vld [vmem:[%s9950_s26 + $0x18] sm:$0xf0] }
  0x62   : > { %1594 = vmatpush.bf16.msrb.mxu0 %v6374_v55  ;;  %1545 = vmatpush.bf16.msrb.mxu3 %v6434_v59  ;;  %v6338_v49 = vor.u32 %v7648_v46, %v6337_v44  ;;  %v6342_v50 = vor.u32 %v7647_v47, %v6339_v48  ;;  %v7663_v51 = vld [vmem:[%s9950_s26 + $0x94] sm:$0xf]  ;;  %v6403_v52 = vld [vmem:[%s9950_s26 + $0x98] sm:$0xf0]  ;;  %v6329_v54 = vld [vmem:[%s9950_s26] sm:$0xf] }
  0x63   : > { %1643 = vmatpush.bf16.msrb.mxu1 %v6438_v3  ;;  %1496 = vmatpush.bf16.msrb.mxu2 %v6370_v13  ;;  %v6406_v53 = vor.u32 %v7663_v51, %v6403_v52  ;;  %v7646_v55 = vld [vmem:[%s9950_s26 + $0x4] sm:$0xf0]  ;;  %v6393_v56 = vld [vmem:[%s9950_s26 + $0x80] sm:$0xf]  ;;  %v7645_v59 = vld [vmem:[%s9950_s26 + $0x4] sm:$0xf] }
  0x64   : > { %v6330_v57 = vor.u32 %v7646_v55, %v6329_v54  ;;  %v7662_v58 = vld [vmem:[%s9950_s26 + $0x84] sm:$0xf0]  ;;  %v6331_v60 = vld [vmem:[%s9950_s26 + $0x8] sm:$0xf0]  ;;  %v7661_v63 = vld [vmem:[%s9950_s26 + $0x84] sm:$0xf] }
  0x65   : > { %v6394_v61 = vor.u32 %v7662_v58, %v6393_v56  ;;  %v6334_v62 = vor.u32 %v7645_v59, %v6331_v60  ;;  %v6395_v0 = vld [vmem:[%s9950_s26 + $0x88] sm:$0xf0]  ;;  %v1034_v2 = vld [vmem:[%s9951_s19] sm:$0x3]  ;;  %v7692_v8 = vld [vmem:[%s9952_s1 + $0x74] sm:$0xf0] }
  0x66   : > { %1595 = vmatpush.bf16.msrb.mxu0 %v6366_v7  ;;  %1546 = vmatpush.bf16.msrb.mxu3 %v6426_v9  ;;  %v6398_v1 = vor.u32 %v7661_v63, %v6395_v0  ;;  %v8949_v5 = vperm.slane %v1034_v2, 0  ;;  %v6513_v7 = vld [vmem:[%s9952_s1 + $0x70] sm:$0xf]  ;;  %v7708_v11 = vld [vmem:[%s9952_s1 + $0xf4] sm:$0xf0]  ;;  %s9958_s27 = sld [smem:[#allocation36_spill]] }
  0x67   : > { %1644 = vmatpush.bf16.msrb.mxu1 %v6430_v19  ;;  %1497 = vmatpush.bf16.msrb.mxu2 %v6362_v26  ;;  %v6514_v9 = vor.u32 %v7692_v8, %v6513_v7  ;;  %v6577_v10 = vld [vmem:[%s9952_s1 + $0xf0] sm:$0xf]  ;;  %v6515_v24 = vld [vmem:[%s9952_s1 + $0x78] sm:$0xf0]  ;;  %v6569_v37 = vld [vmem:[%s9952_s1 + $0xe0] sm:$0xf] }
  0x68   : > { %6312 = vmatmul.msk.bf16.gmra.mxu0 %vm1118_vm1, %v7622_v27  ;;  %6317 = vmatmul.msk.bf16.gmra.mxu2 %vm1118_vm1, %v7627_v16  ;;  %v6578_v12 = vor.u32 %v7708_v11, %v6577_v10  ;;  %v6571_v54 = vld [vmem:[%s9952_s1 + $0xe8] sm:$0xf0]  ;;  %v6497_v59 = vld [vmem:[%s9952_s1 + $0x50] sm:$0xf]  ;;  %v7688_v60 = vld [vmem:[%s9952_s1 + $0x54] sm:$0xf0] }
  0x69   : > { %6320 = vmatmul.msk.bf16.gmra.mxu1 %vm1118_vm1, %v7622_v27  ;;  %6324 = vmatmul.msk.bf16.gmra.mxu3 %vm1118_vm1, %v7626_v30  ;;  %v6409_v27 = vld [vmem:[%s9950_s26 + $0xa0] sm:$0xf]  ;;  %v6353_v30 = vld [vmem:[%s9950_s26 + $0x30] sm:$0xf]  ;;  %v7704_v63 = vld [vmem:[%s9952_s1 + $0xd4] sm:$0xf0] }
  0x6a   : > { %1596 = vmatpush.bf16.msrb.mxu0 %v6358_v20  ;;  %1547 = vmatpush.bf16.msrb.mxu3 %v6418_v23  ;;  %v6354_v35 = vor.u32 %v7652_v31, %v6353_v30  ;;  %v7691_v23 = vld [vmem:[%s9952_s1 + $0x74] sm:$0xf]  ;;  %s9959_s10 = sld [smem:[#allocation37_spill]] }
  0x6b   : > { %1645 = vmatpush.bf16.msrb.mxu1 %v6422_v32  ;;  %v6518_v26 = vor.u32 %v7691_v23, %v6515_v24  ;;  %v7687_v11 = vld [vmem:[%s9952_s1 + $0x54] sm:$0xf]  ;;  %v6489_v23 = vld [vmem:[%s9952_s1 + $0x40] sm:$0xf]  ;;  %v7686_v24 = vld [vmem:[%s9952_s1 + $0x44] sm:$0xf0] }
  0x6c   : > { %1498 = vmatpush.bf16.msrb.mxu2 %v6354_v35  ;;  %v7690_v35 = vld [vmem:[%s9952_s1 + $0x64] sm:$0xf0] }
  0x6e   : > { %1597 = vmatpush.bf16.msrb.mxu0 %v6350_v33 }
  0x6f   : > { %1646 = vmatpush.bf16.msrb.mxu1 %v6414_v42 }
  0x70   : > { %1499 = vmatpush.bf16.msrb.mxu2 %v6346_v38  ;;  %v7706_v38 = vld [vmem:[%s9952_s1 + $0xe4] sm:$0xf0] }
  0x72   : > { %1598 = vmatpush.bf16.msrb.mxu0 %v6342_v50  ;;  %v6507_v50 = vld [vmem:[%s9952_s1 + $0x68] sm:$0xf0] }
  0x73   : > { %1647 = vmatpush.bf16.msrb.mxu1 %v6406_v53  ;;  %v7705_v53 = vld [vmem:[%s9952_s1 + $0xe4] sm:$0xf] }
  0x74   : > { %1500 = vmatpush.bf16.msrb.mxu2 %v6338_v49  ;;  %v7689_v49 = vld [vmem:[%s9952_s1 + $0x64] sm:$0xf]  ;;  %v6574_v56 = vor.u32 %v7705_v53, %v6571_v54  ;;  %v6545_v53 = vld [vmem:[%s9952_s1 + $0xb0] sm:$0xf] }
  0x75   : > { %v6510_v52 = vor.u32 %v7689_v49, %v6507_v50 }
  0x76   : > { %1599 = vmatpush.bf16.msrb.mxu0 %v6334_v62  ;;  %v6561_v62 = vld [vmem:[%s9952_s1 + $0xd0] sm:$0xf] }
  0x77   : > { %1648 = vmatpush.bf16.msrb.mxu1 %v6398_v1  ;;  %v6562_v0 = vor.u32 %v7704_v63, %v6561_v62  ;;  %v6547_v62 = vld [vmem:[%s9952_s1 + $0xb8] sm:$0xf0] }
  0x78   : > { %6313 = vmatmul.msk.bf16.gmra.mxu0 %vm1118_vm1, %v7623_v29  ;;  %6318 = vmatmul.msk.bf16.gmra.mxu2 %vm1118_vm1, %v7628_v39 }
  0x79   : > { %6321 = vmatmul.msk.bf16.gmra.mxu1 %vm1118_vm1, %v7623_v29  ;;  %v7666_v29 = vld [vmem:[%s9950_s26 + $0xa4] sm:$0xf0]  ;;  %6325 = vmatmul.msk.bf16.gmra.mxu3 %vm1118_vm1, %v7627_v16 }
  0x7a   : > { %v6410_v34 = vor.u32 %v7666_v29, %v6409_v27  ;;  %1501 = vmatpush.bf16.msrb.mxu2 %v6330_v57  ;;  %v7707_v27 = vld [vmem:[%s9952_s1 + $0xf4] sm:$0xf]  ;;  %v6579_v29 = vld [vmem:[%s9952_s1 + $0xf8] sm:$0xf0]  ;;  %2034 = vmatpush.bf16.msra.mxu0 %v6518_v26 }
  0x7b   : > { %v6582_v31 = vor.u32 %v7707_v27, %v6579_v29  ;;  %v6490_v27 = vor.u32 %v7686_v24, %v6489_v23  ;;  %v7702_v29 = vld [vmem:[%s9952_s1 + $0xc4] sm:$0xf0]  ;;  %v7697_v24 = vld [vmem:[%s9952_s1 + $0xa4] sm:$0xf] }
  0x7c   : > { %1548 = vmatpush.bf16.msrb.mxu3 %v6410_v34  ;;  %v6505_v34 = vld [vmem:[%s9952_s1 + $0x60] sm:$0xf] }
  0x7d   : > { %2083 = vmatpush.bf16.msra.mxu1 %v6582_v31  ;;  %v6506_v36 = vor.u32 %v7690_v35, %v6505_v34  ;;  %v6491_v31 = vld [vmem:[%s9952_s1 + $0x48] sm:$0xf0]  ;;  %v7701_v34 = vld [vmem:[%s9952_s1 + $0xc4] sm:$0xf] }
  0x7e   : > { %1936 = vmatpush.bf16.msra.mxu2 %v6514_v9  ;;  %2035 = vmatpush.bf16.msra.mxu0 %v6510_v52  ;;  %v6555_v35 = vld [vmem:[%s9952_s1 + $0xc8] sm:$0xf0]  ;;  %v7684_v52 = vld [vmem:[%s9952_s1 + $0x34] sm:$0xf0] }
  0x81   : > { %2084 = vmatpush.bf16.msra.mxu1 %v6574_v56  ;;  %v7700_v56 = vld [vmem:[%s9952_s1 + $0xb4] sm:$0xf0] }
  0x82   : > { %1937 = vmatpush.bf16.msra.mxu2 %v6506_v36  ;;  %v6558_v36 = vor.u32 %v7701_v34, %v6555_v35 }
  0x88   : > { %6314 = vmatmul.msk.bf16.gmra.mxu0 %vm1118_vm1, %v7624_v6 }
  0x89   : > { %6322 = vmatmul.msk.bf16.gmra.mxu1 %vm1118_vm1, %v7624_v6  ;;  %6326 = vmatmul.msk.bf16.gmra.mxu3 %vm1118_vm1, %v7628_v39  ;;  %v8951_v6 = vperm.slane %v1034_v2, 1  ;;  %v6570_v39 = vor.u32 %v7706_v38, %v6569_v37 }
  0x98   : > { %6315 = vmatmul.msk.bf16.gmra.mxu0 %vm1118_vm1, %v8733_v28  ;;  %v7664_v28 = vld [vmem:[%s9950_s26 + $0x94] sm:$0xf0] }
  0x99   : > { %v6402_v45 = vor.u32 %v7664_v28, %v6401_v43 }
  0x9b   : > { %1549 = vmatpush.bf16.msrb.mxu3 %v6402_v45 }
  0x9f   : > { %1550 = vmatpush.bf16.msrb.mxu3 %v6394_v61  ;;  %v6498_v61 = vor.u32 %v7688_v60, %v6497_v59  ;;  %v6546_v59 = vor.u32 %v7700_v56, %v6545_v53 }
  0xa1   : > { %1938 = vmatpush.bf16.msra.mxu2 %v6498_v61  ;;  %v7699_v61 = vld [vmem:[%s9952_s1 + $0xb4] sm:$0xf] }
  0xa2   : > { %v6550_v63 = vor.u32 %v7699_v61, %v6547_v62  ;;  %v7695_v62 = vld [vmem:[%s9952_s1 + $0x94] sm:$0xf] }
  0xa3   : > { %1985 = vmatpush.bf16.msra.mxu3 %v6578_v12  ;;  %v6499_v12 = vld [vmem:[%s9952_s1 + $0x58] sm:$0xf0] }
  0xa5   : > { %1939 = vmatpush.bf16.msra.mxu2 %v6490_v27 }
  0xa7   : > { %1986 = vmatpush.bf16.msra.mxu3 %v6570_v39 }
  0xab   : > { %1987 = vmatpush.bf16.msra.mxu3 %v6562_v0 }
  0xd5   : > { %v1159_v3 = vpop.f32.mrf.mxu0 }
  0xd6   : > { %v1208_v4 = vpop.f32.mrf.mxu1  ;;  %v1160_v13 = vadd.f32 %v1159_v3, %v8949_v5 }
  0xd7   : > { %v1209_v14 = vadd.f32 %v1208_v4, %v8951_v6 }
  0xd8   : > { %v1248_v19 = vmax.f32 %v1160_v13, 0.0 }
  0xd9   : > { %v1249_v21 = vmax.f32 %v1209_v14, 0.0 }
  0xdb   : > { %v1184_v50 = vpop.f32.mrf.mxu2 }
  0xdd   : > { %v1161_v15 = vpop.f32.mrf.mxu0 }
  0xde   : > { %v1162_v16 = vadd.f32 %v1161_v15, %v8949_v5  ;;  %v1210_v17 = vpop.f32.mrf.mxu1  ;;  %v6502_v15 = vor.u32 %v7687_v11, %v6499_v12 }
  0xdf   : > { %v1211_v18 = vadd.f32 %v1210_v17, %v8951_v6  ;;  %v6563_v17 = vld [vmem:[%s9952_s1 + $0xd8] sm:$0xf0] }
  0xe0   : > { %v1250_v20 = vmax.f32 %v1162_v16, 0.0  ;;  %v7703_v16 = vld [vmem:[%s9952_s1 + $0xd4] sm:$0xf]  ;;  %2036 = vmatpush.bf16.msra.mxu0 %v6502_v15  ;;  %v6473_v15 = vld [vmem:[%s9952_s1 + $0x20] sm:$0xf] }
  0xe1   : > { %v1251_v22 = vmax.f32 %v1211_v18, 0.0 }
  0xe2   : > { %v1280_v25 = vpack.c.bf16 %v1250_v20, %v1248_v19  ;;  %v9037_v19 = vpop.f32.mrf.mxu3  ;;  %v6566_v20 = vor.u32 %v7703_v16, %v6563_v17  ;;  %v7682_v16 = vld [vmem:[%s9952_s1 + $0x24] sm:$0xf0]  ;;  %v6537_v17 = vld [vmem:[%s9952_s1 + $0xa0] sm:$0xf] }
  0xe3   : > { %v1281_v30 = vpack.c.bf16 %v1251_v22, %v1249_v21  ;;  %v1229_v0 = vadd.f32 %v9037_v19, %v8951_v6  ;;  %v7698_v19 = vld [vmem:[%s9952_s1 + $0xa4] sm:$0xf0] }
  0xe4   : > { %1502 = vmatmul.bf16.vlgmr.msrb.gmra.mxu2 %v1280_v25  ;;  %1600 = vmatmul.bf16.vlgmr.msrb.gmra.mxu0 %v1280_v25  ;;  %v6553_v25 = vld [vmem:[%s9952_s1 + $0xc0] sm:$0xf] }
  0xe5   : > { %1551 = vmatmul.bf16.vlgmr.msrb.gmra.mxu3 %v1281_v30  ;;  %1649 = vmatmul.bf16.vlgmr.msrb.gmra.mxu1 %v1281_v30  ;;  %v1164_v32 = vpop.f32.mrf.mxu0  ;;  %v7685_v30 = vld [vmem:[%s9952_s1 + $0x44] sm:$0xf] }
  0xe6   : > { %v1213_v33 = vpop.f32.mrf.mxu1  ;;  %v1165_v40 = vadd.f32 %v1164_v32, %v8949_v5  ;;  %2085 = vmatpush.bf16.msra.mxu1 %v6566_v20  ;;  %v6554_v32 = vor.u32 %v7702_v29, %v6553_v25  ;;  %v7681_v20 = vld [vmem:[%s9952_s1 + $0x24] sm:$0xf]  ;;  %v6539_v25 = vld [vmem:[%s9952_s1 + $0xa8] sm:$0xf0]  ;;  %v1185_v29 = vadd.f32 %v1184_v50, %v8949_v5 }
  0xe7   : > { %v1214_v41 = vadd.f32 %v1213_v33, %v8951_v6  ;;  %v6494_v33 = vor.u32 %v7685_v30, %v6491_v31 }
  0xe8   : > { %v1252_v45 = vmax.f32 %v1165_v40, 0.0  ;;  %1988 = vmatpush.bf16.msra.mxu3 %v6554_v32  ;;  %v1268_v34 = vmax.f32 %v1185_v29, 0.0 }
  0xe9   : > { %v1253_v47 = vmax.f32 %v1214_v41, 0.0  ;;  %2037 = vmatpush.bf16.msra.mxu0 %v6494_v33 }
  0xea   : > { %2086 = vmatpush.bf16.msra.mxu1 %v6558_v36  ;;  %v1230_v38 = vpop.f32.mrf.mxu3 }
  0xec   : > { %1989 = vmatpush.bf16.msra.mxu3 %v6546_v59 }
  0xed   : > { %v1166_v42 = vpop.f32.mrf.mxu0 }
  0xee   : > { %v1167_v43 = vadd.f32 %v1166_v42, %v8949_v5  ;;  %v1215_v28 = vpop.f32.mrf.mxu1  ;;  %2087 = vmatpush.bf16.msra.mxu1 %v6550_v63  ;;  %v6531_v63 = vld [vmem:[%s9952_s1 + $0x98] sm:$0xf0] }
  0xef   : > { %v1216_v44 = vadd.f32 %v1215_v28, %v8951_v6 }
  0xf0   : > { %v1254_v46 = vmax.f32 %v1167_v43, 0.0 }
  0xf1   : > { %v1255_v48 = vmax.f32 %v1216_v44, 0.0 }
  0xf2   : > { %v1282_v51 = vpack.c.bf16 %v1254_v46, %v1252_v45  ;;  %v1233_v54 = vpop.f32.mrf.mxu3 }
  0xf3   : > { %v1283_v55 = vpack.c.bf16 %v1255_v48, %v1253_v47  ;;  %v1234_v32 = vadd.f32 %v1233_v54, %v8951_v6 }
  0xf4   : > { %1507 = vmatmul.bf16.gmra.mxu2 %v1282_v51  ;;  %1605 = vmatmul.bf16.gmra.mxu0 %v1282_v51  ;;  %v6481_v51 = vld [vmem:[%s9952_s1 + $0x30] sm:$0xf] }
  0xf5   : > { %1556 = vmatmul.bf16.gmra.mxu3 %v1283_v55  ;;  %1654 = vmatmul.bf16.gmra.mxu1 %v1283_v55  ;;  %v1169_v57 = vpop.f32.mrf.mxu0  ;;  %v6482_v55 = vor.u32 %v7684_v52, %v6481_v51  ;;  %v1269_v36 = vmax.f32 %v1234_v32, 0.0 }
  0xf6   : > { %v1218_v58 = vpop.f32.mrf.mxu1  ;;  %v1170_v1 = vadd.f32 %v1169_v57, %v8949_v5  ;;  %v7683_v57 = vld [vmem:[%s9952_s1 + $0x34] sm:$0xf] }
  0xf7   : > { %v1219_v2 = vadd.f32 %v1218_v58, %v8951_v6  ;;  %v6483_v58 = vld [vmem:[%s9952_s1 + $0x38] sm:$0xf0]  ;;  %1940 = vmatpush.bf16.msra.mxu2 %v6482_v55 }
  0xf8   : > { %v1256_v9 = vmax.f32 %v1170_v1, 0.0  ;;  %v6486_v60 = vor.u32 %v7683_v57, %v6483_v58  ;;  %v1231_v1 = vadd.f32 %v1230_v38, %v8951_v6 }
  0xf9   : > { %v1257_v13 = vmax.f32 %v1219_v2, 0.0 }
  0xfa   : > { %2038 = vmatpush.bf16.msra.mxu0 %v6486_v60  ;;  %v1235_v12 = vpop.f32.mrf.mxu3 }
  0xfb   : > { %v1236_v33 = vadd.f32 %v1235_v12, %v8951_v6  ;;  %v6521_v12 = vld [vmem:[%s9952_s1 + $0x80] sm:$0xf] }
  0xfd   : > { %v1171_v3 = vpop.f32.mrf.mxu0 }
  0xfe   : > { %v1172_v4 = vadd.f32 %v1171_v3, %v8949_v5  ;;  %v1220_v7 = vpop.f32.mrf.mxu1 }
  0xff   : > { %v1221_v8 = vadd.f32 %v1220_v7, %v8951_v6  ;;  %v1265_v7 = vmax.f32 %v1229_v0, 0.0 }
 0x100   : > { %v1258_v10 = vmax.f32 %v1172_v4, 0.0 }
 0x101   : > { %v1259_v14 = vmax.f32 %v1221_v8, 0.0  ;;  %v1267_v8 = vmax.f32 %v1231_v1, 0.0  ;;  %v6534_v1 = vor.u32 %v7695_v62, %v6531_v63 }
 0x102   : > { %v1284_v18 = vpack.c.bf16 %v1258_v10, %v1256_v9  ;;  %v1186_v9 = vpop.f32.mrf.mxu2  ;;  %v1238_v31 = vpop.f32.mrf.mxu3 }
 0x103   : > { %v1285_v21 = vpack.c.bf16 %v1259_v14, %v1257_v13  ;;  %v1289_v14 = vpack.c.bf16 %v1267_v8, %v1265_v7  ;;  %v1187_v30 = vadd.f32 %v1186_v9, %v8949_v5  ;;  %v1239_v52 = vadd.f32 %v1238_v31, %v8951_v6  ;;  %v6457_v9 = vld [vmem:[%s9952_s1] sm:$0xf] }
 0x104   : > { %1512 = vmatmul.bf16.gmra.mxu2 %v1284_v18  ;;  %1610 = vmatmul.bf16.gmra.mxu0 %v1284_v18  ;;  %v6474_v18 = vor.u32 %v7682_v16, %v6473_v15  ;;  %v6523_v16 = vld [vmem:[%s9952_s1 + $0x88] sm:$0xf0] }
 0x105   : > { %1561 = vmatmul.bf16.gmra.mxu3 %v1285_v21  ;;  %1659 = vmatmul.bf16.gmra.mxu1 %v1285_v21  ;;  %v1174_v22 = vpop.f32.mrf.mxu0  ;;  %v6475_v21 = vld [vmem:[%s9952_s1 + $0x28] sm:$0xf0]  ;;  %v1270_v35 = vmax.f32 %v1187_v30, 0.0  ;;  %v1273_v58 = vmax.f32 %v1239_v52, 0.0 }
 0x106   : > { %v1223_v26 = vpop.f32.mrf.mxu1  ;;  %v1175_v37 = vadd.f32 %v1174_v22, %v8949_v5  ;;  %v6538_v22 = vor.u32 %v7698_v19, %v6537_v17  ;;  %v6478_v23 = vor.u32 %v7681_v20, %v6475_v21  ;;  %1941 = vmatpush.bf16.msra.mxu2 %v6474_v18 }
 0x107   : > { %v1224_v39 = vadd.f32 %v1223_v26, %v8951_v6  ;;  %v6542_v26 = vor.u32 %v7697_v24, %v6539_v25  ;;  %v1290_v38 = vpack.c.bf16 %v1270_v35, %v1268_v34  ;;  %v1328_v25 = vld [vmem:[%s9953_s9] sm:$0x3] }
 0x108   : > { %v1260_v28 = vmax.f32 %v1175_v37, 0.0  ;;  %1990 = vmatpush.bf16.msra.mxu3 %v6538_v22  ;;  %2039 = vmatpush.bf16.msra.mxu0 %v6478_v23  ;;  %v1271_v37 = vmax.f32 %v1236_v33, 0.0  ;;  %v7677_v22 = vld [vmem:[%s9952_s1 + $0x4] sm:$0xf]  ;;  %v6459_v23 = vld [vmem:[%s9952_s1 + $0x8] sm:$0xf0] }
 0x109   : > { %v1261_v45 = vmax.f32 %v1224_v39, 0.0  ;;  %2088 = vmatpush.bf16.msra.mxu1 %v6542_v26  ;;  %v6462_v24 = vor.u32 %v7677_v22, %v6459_v23  ;;  %v9186_v32 = vperm.slane %v1328_v25, 0  ;;  %v7723_v23 = vld [vmem:[#allocation4 + $0x74] sm:$0xf] }
 0x10a   : > { %v1189_v27 = vpop.f32.mrf.mxu2  ;;  %v1291_v39 = vpack.c.bf16 %v1271_v37, %v1269_v36 }
 0x10b   : > { %v1190_v50 = vadd.f32 %v1189_v27, %v8949_v5  ;;  %v9183_v27 = vperm.slane %v1328_v25, 1 }
 0x10d   : > { %v1176_v40 = vpop.f32.mrf.mxu0  ;;  %v1272_v55 = vmax.f32 %v1190_v50, 0.0  ;;  %2089 = vmatpush.bf16.msra.mxu1 %v6534_v1 }
 0x10e   : > { %v1177_v41 = vadd.f32 %v1176_v40, %v8949_v5  ;;  %v1225_v42 = vpop.f32.mrf.mxu1 }
 0x10f   : > { %v1226_v43 = vadd.f32 %v1225_v42, %v8951_v6  ;;  %v6465_v42 = vld [vmem:[%s9952_s1 + $0x10] sm:$0xf] }
 0x110   : > { %v1262_v44 = vmax.f32 %v1177_v41, 0.0  ;;  %v1240_v41 = vpop.f32.mrf.mxu3 }
 0x111   : > { %v1263_v46 = vmax.f32 %v1226_v43, 0.0  ;;  %v7680_v43 = vld [vmem:[%s9952_s1 + $0x14] sm:$0xf0]  ;;  %v1241_v53 = vadd.f32 %v1240_v41, %v8951_v6 }
 0x112   : > { %v1286_v47 = vpack.c.bf16 %v1262_v44, %v1260_v28  ;;  %v1191_v40 = vpop.f32.mrf.mxu2  ;;  %v6529_v28 = vld [vmem:[%s9952_s1 + $0x90] sm:$0xf]  ;;  %v6466_v44 = vor.u32 %v7680_v43, %v6465_v42  ;;  %v7724_v43 = vld [vmem:[#allocation4 + $0x74] sm:$0xf0] }
 0x113   : > { %v1287_v48 = vpack.c.bf16 %v1263_v46, %v1261_v45  ;;  %v7696_v45 = vld [vmem:[%s9952_s1 + $0x94] sm:$0xf0]  ;;  %v7679_v46 = vld [vmem:[%s9952_s1 + $0x14] sm:$0xf]  ;;  %v1192_v51 = vadd.f32 %v1191_v40, %v8949_v5  ;;  %v1275_v59 = vmax.f32 %v1241_v53, 0.0 }
 0x114   : > { %1517 = vmatmul.bf16.gmra.mxu2 %v1286_v47  ;;  %1615 = vmatmul.bf16.gmra.mxu0 %v1286_v47  ;;  %v6467_v47 = vld [vmem:[%s9952_s1 + $0x18] sm:$0xf0]  ;;  %v6641_v42 = vld [vmem:[#allocation4 + $0x70] sm:$0xf] }
 0x115   : > { %1566 = vmatmul.bf16.gmra.mxu3 %v1287_v48  ;;  %1664 = vmatmul.bf16.gmra.mxu1 %v1287_v48  ;;  %v1179_v49 = vpop.f32.mrf.mxu0  ;;  %v6530_v48 = vor.u32 %v7696_v45, %v6529_v28  ;;  %v1274_v56 = vmax.f32 %v1192_v51, 0.0  ;;  %v1293_v61 = vpack.c.bf16 %v1275_v59, %v1273_v58  ;;  %v6705_v45 = vld [vmem:[#allocation4 + $0xf0] sm:$0xf] }
 0x116   : > { %v1180_v2 = vadd.f32 %v1179_v49, %v8949_v5  ;;  %v6470_v49 = vor.u32 %v7679_v46, %v6467_v47  ;;  %1942 = vmatpush.bf16.msra.mxu2 %v6466_v44  ;;  %v6642_v44 = vor.u32 %v7724_v43, %v6641_v42  ;;  %v7740_v46 = vld [vmem:[#allocation4 + $0xf4] sm:$0xf0]  ;;  %v6625_v42 = vld [vmem:[#allocation4 + $0x50] sm:$0xf] }
 0x117   : > { %1991 = vmatpush.bf16.msra.mxu3 %v6530_v48  ;;  %v1292_v60 = vpack.c.bf16 %v1274_v56, %v1272_v55  ;;  %v6706_v51 = vor.u32 %v7740_v46, %v6705_v45  ;;  %v7720_v43 = vld [vmem:[#allocation4 + $0x54] sm:$0xf0]  ;;  %v6689_v45 = vld [vmem:[#allocation4 + $0xd0] sm:$0xf] }
 0x118   : > { %v1264_v10 = vmax.f32 %v1180_v2, 0.0  ;;  %2040 = vmatpush.bf16.msra.mxu0 %v6470_v49  ;;  %v1243_v57 = vpop.f32.mrf.mxu3  ;;  %v7736_v46 = vld [vmem:[#allocation4 + $0xd4] sm:$0xf0] }
 0x119   : > { %v1244_v7 = vadd.f32 %v1243_v57, %v8951_v6 }
 0x11a   : > { %v1194_v54 = vpop.f32.mrf.mxu2 }
 0x11b   : > { %v1277_v17 = vmax.f32 %v1244_v7, 0.0  ;;  %v6633_v7 = vld [vmem:[#allocation4 + $0x60] sm:$0xf] }
 0x11c   : > { %2041 = vmatpush.bf16.msra.mxu0 %v6462_v24  ;;  %v6643_v24 = vld [vmem:[#allocation4 + $0x78] sm:$0xf0] }
 0x11d   : > { %v1181_v3 = vpop.f32.mrf.mxu0 }
 0x11e   : > { %v1182_v4 = vadd.f32 %v1181_v3, %v8949_v5  ;;  %v1195_v3 = vadd.f32 %v1194_v54, %v8949_v5 }
 0x120   : > { %v1266_v11 = vmax.f32 %v1182_v4, 0.0  ;;  %v1245_v2 = vpop.f32.mrf.mxu3 }
 0x121   : > { %v1246_v8 = vadd.f32 %v1245_v2, %v8951_v6  ;;  %v7693_v6 = vld [vmem:[%s9952_s1 + $0x84] sm:$0xf] }
 0x122   : > { %v1288_v13 = vpack.c.bf16 %v1266_v11, %v1264_v10  ;;  %v1196_v0 = vpop.f32.mrf.mxu2  ;;  %v7678_v10 = vld [vmem:[%s9952_s1 + $0x4] sm:$0xf0]  ;;  %v6526_v19 = vor.u32 %v7693_v6, %v6523_v16 }
 0x123   : > { %v1197_v4 = vadd.f32 %v1196_v0, %v8949_v5  ;;  %v6458_v11 = vor.u32 %v7678_v10, %v6457_v9  ;;  %v7694_v5 = vld [vmem:[%s9952_s1 + $0x84] sm:$0xf0]  ;;  %v1279_v18 = vmax.f32 %v1246_v8, 0.0 }
 0x124   : > { %1522 = vmatmul.bf16.gmra.mxu2 %v1288_v13  ;;  %1620 = vmatmul.bf16.gmra.mxu0 %v1288_v13  ;;  %v1276_v13 = vmax.f32 %v1195_v3, 0.0  ;;  %v6522_v15 = vor.u32 %v7694_v5, %v6521_v12  ;;  %v7722_v8 = vld [vmem:[#allocation4 + $0x64] sm:$0xf0] }
 0x125   : > { %1571 = vmatmul.bf16.gmra.mxu3 %v1289_v14  ;;  %1669 = vmatmul.bf16.gmra.mxu1 %v1289_v14  ;;  %v1278_v14 = vmax.f32 %v1197_v4, 0.0  ;;  %v1295_v21 = vpack.c.bf16 %v1279_v18, %v1277_v17  ;;  %v6634_v10 = vor.u32 %v7722_v8, %v6633_v7  ;;  %v7738_v12 = vld [vmem:[#allocation4 + $0xe4] sm:$0xf0] }
 0x126   : > { %1943 = vmatpush.bf16.msra.mxu2 %v6458_v11  ;;  %1992 = vmatpush.bf16.msra.mxu3 %v6522_v15  ;;  %v6697_v11 = vld [vmem:[#allocation4 + $0xe0] sm:$0xf] }
 0x127   : > { %2090 = vmatpush.bf16.msra.mxu1 %v6526_v19  ;;  %v1294_v20 = vpack.c.bf16 %v1278_v14, %v1276_v13  ;;  %v6698_v15 = vor.u32 %v7738_v12, %v6697_v11 }
 0x12a   : > { %2378 = vmatpush.bf16.msrb.mxu2 %v6642_v44  ;;  %2427 = vmatpush.bf16.msrb.mxu3 %v6706_v51  ;;  %v6626_v44 = vor.u32 %v7720_v43, %v6625_v42  ;;  %v6690_v51 = vor.u32 %v7736_v46, %v6689_v45 }
 0x12e   : > { %2379 = vmatpush.bf16.msrb.mxu2 %v6634_v10  ;;  %2428 = vmatpush.bf16.msrb.mxu3 %v6698_v15  ;;  %v6681_v15 = vld [vmem:[#allocation4 + $0xc0] sm:$0xf] }
 0x132   : > { %2380 = vmatpush.bf16.msrb.mxu2 %v6626_v44  ;;  %2429 = vmatpush.bf16.msrb.mxu3 %v6690_v51  ;;  %v6673_v51 = vld [vmem:[#allocation4 + $0xb0] sm:$0xf] }
 0x134   : > { %1527 = vmatmul.bf16.gmra.mxu2 %v1290_v38  ;;  %1625 = vmatmul.bf16.gmra.mxu0 %v1290_v38 }
 0x135   : > { %1576 = vmatmul.bf16.gmra.mxu3 %v1291_v39  ;;  %1674 = vmatmul.bf16.gmra.mxu1 %v1291_v39 }
 0x144   : > { %1532 = vmatmul.bf16.gmra.mxu2 %v1292_v60  ;;  %1630 = vmatmul.bf16.gmra.mxu0 %v1292_v60 }
 0x145   : > { %1581 = vmatmul.bf16.gmra.mxu3 %v1293_v61  ;;  %1679 = vmatmul.bf16.gmra.mxu1 %v1293_v61 }
 0x154   : > { %1537 = vmatmul.bf16.gmra.mxu2 %v1294_v20  ;;  %1635 = vmatmul.bf16.gmra.mxu0 %v1294_v20 }
 0x155   : > { %1586 = vmatmul.bf16.gmra.mxu3 %v1295_v21  ;;  %1684 = vmatmul.bf16.gmra.mxu1 %v1295_v21 }
 0x161   : > { %v1601_v26 = vpop.f32.mrf.mxu0 }
 0x162   : > { %v1650_v29 = vpop.f32.mrf.mxu1  ;;  %v1602_v30 = vadd.f32 %v1601_v26, %v9183_v27  ;;  %v6646_v26 = vor.u32 %v7723_v23, %v6643_v24 }
 0x164   : > { %v1651_v35 = vadd.f32 %v1650_v29, %v1602_v30  ;;  %v7739_v29 = vld [vmem:[#allocation4 + $0xf4] sm:$0xf]  ;;  %v6707_v30 = vld [vmem:[#allocation4 + $0xf8] sm:$0xf0]  ;;  %2476 = vmatpush.bf16.msrb.mxu0 %v6646_v26 }
 0x166   : > { %v1691_v40 = vmax.f32 %v1651_v35, 0.0 }
 0x167   : > { %v1503_v31 = vpop.f32.mrf.mxu2 }
 0x168   : > { %v1552_v33 = vpop.f32.mrf.mxu3  ;;  %v1504_v38 = vadd.f32 %v1503_v31, %v9186_v32 }
 0x169   : > { %v1603_v34 = vpop.f32.mrf.mxu0 }
 0x16a   : > { %v1604_v36 = vadd.f32 %v1603_v34, %v9183_v27  ;;  %v1652_v37 = vpop.f32.mrf.mxu1  ;;  %v1553_v47 = vadd.f32 %v1552_v33, %v1504_v38  ;;  %v6710_v33 = vor.u32 %v7739_v29, %v6707_v30 }
 0x16c   : > { %v1653_v39 = vadd.f32 %v1652_v37, %v1604_v36  ;;  %v1690_v55 = vmax.f32 %v1553_v47, 0.0  ;;  %2525 = vmatpush.bf16.msrb.mxu1 %v6710_v33  ;;  %v6627_v33 = vld [vmem:[#allocation4 + $0x58] sm:$0xf0] }
 0x16e   : > { %v1693_v41 = vmax.f32 %v1653_v39, 0.0 }
 0x16f   : > { %v1505_v28 = vpop.f32.mrf.mxu2 }
 0x170   : > { %v1723_v48 = vpack.c.bf16 %v1693_v41, %v1691_v40  ;;  %v1506_v49 = vadd.f32 %v1505_v28, %v9186_v32  ;;  %v1554_v50 = vpop.f32.mrf.mxu3 }
 0x171   : > { %v1606_v52 = vpop.f32.mrf.mxu0 }
 0x172   : > { %v1555_v53 = vadd.f32 %v1554_v50, %v1506_v49  ;;  %v1655_v54 = vpop.f32.mrf.mxu1  ;;  %1993 = vmatmul.bf16.vlgmr.msra.gmra.mxu3 %v1723_v48  ;;  %2091 = vmatmul.bf16.vlgmr.msra.gmra.mxu1 %v1723_v48  ;;  %v1607_v58 = vadd.f32 %v1606_v52, %v9183_v27 }
 0x174   : > { %v1692_v56 = vmax.f32 %v1555_v53, 0.0  ;;  %v1656_v62 = vadd.f32 %v1655_v54, %v1607_v58 }
 0x176   : > { %v1722_v57 = vpack.c.bf16 %v1692_v56, %v1690_v55  ;;  %v1695_v3 = vmax.f32 %v1656_v62, 0.0 }
 0x177   : > { %v1508_v59 = vpop.f32.mrf.mxu2 }
 0x178   : > { %v1557_v60 = vpop.f32.mrf.mxu3  ;;  %1944 = vmatmul.bf16.vlgmr.msra.gmra.mxu2 %v1722_v57  ;;  %2042 = vmatmul.bf16.vlgmr.msra.gmra.mxu0 %v1722_v57  ;;  %v1509_v1 = vadd.f32 %v1508_v59, %v9186_v32  ;;  %v7721_v59 = vld [vmem:[#allocation4 + $0x64] sm:$0xf] }
 0x179   : > { %v1608_v61 = vpop.f32.mrf.mxu0 }
 0x17a   : > { %v1609_v63 = vadd.f32 %v1608_v61, %v9183_v27  ;;  %v1657_v0 = vpop.f32.mrf.mxu1  ;;  %v1558_v5 = vadd.f32 %v1557_v60, %v1509_v1  ;;  %v6635_v60 = vld [vmem:[#allocation4 + $0x68] sm:$0xf0] }
 0x17b   : > { %v6638_v62 = vor.u32 %v7721_v59, %v6635_v60 }
 0x17c   : > { %v1658_v2 = vadd.f32 %v1657_v0, %v1609_v63  ;;  %v1694_v19 = vmax.f32 %v1558_v5, 0.0  ;;  %v7737_v63 = vld [vmem:[#allocation4 + $0xe4] sm:$0xf]  ;;  %v6699_v0 = vld [vmem:[#allocation4 + $0xe8] sm:$0xf0] }
 0x17d   : > { %2477 = vmatpush.bf16.msrb.mxu0 %v6638_v62  ;;  %v6617_v5 = vld [vmem:[#allocation4 + $0x40] sm:$0xf] }
 0x17e   : > { %v1697_v4 = vmax.f32 %v1658_v2, 0.0  ;;  %v6702_v2 = vor.u32 %v7737_v63, %v6699_v0 }
 0x17f   : > { %v1510_v9 = vpop.f32.mrf.mxu2 }
 0x180   : > { %v1511_v6 = vadd.f32 %v1510_v9, %v9186_v32  ;;  %v1559_v13 = vpop.f32.mrf.mxu3  ;;  %v1725_v14 = vpack.c.bf16 %v1697_v4, %v1695_v3  ;;  %2526 = vmatpush.bf16.msrb.mxu1 %v6702_v2  ;;  %v6619_v2 = vld [vmem:[#allocation4 + $0x48] sm:$0xf0] }
 0x181   : > { %v1611_v16 = vpop.f32.mrf.mxu0 }
 0x182   : > { %v1560_v17 = vadd.f32 %v1559_v13, %v1511_v6  ;;  %v1660_v18 = vpop.f32.mrf.mxu1  ;;  %1998 = vmatmul.bf16.gmra.mxu3 %v1725_v14  ;;  %2096 = vmatmul.bf16.gmra.mxu1 %v1725_v14  ;;  %v1612_v21 = vadd.f32 %v1611_v16, %v9183_v27  ;;  %v7718_v6 = vld [vmem:[#allocation4 + $0x44] sm:$0xf0] }
 0x183   : > { %v6618_v14 = vor.u32 %v7718_v6, %v6617_v5  ;;  %v7734_v16 = vld [vmem:[#allocation4 + $0xc4] sm:$0xf0] }
 0x184   : > { %v1696_v20 = vmax.f32 %v1560_v17, 0.0  ;;  %v1661_v35 = vadd.f32 %v1660_v18, %v1612_v21  ;;  %v6682_v21 = vor.u32 %v7734_v16, %v6681_v15 }
 0x185   : > { %2381 = vmatpush.bf16.msrb.mxu2 %v6618_v14 }
 0x186   : > { %v1724_v22 = vpack.c.bf16 %v1696_v20, %v1694_v19  ;;  %v1699_v40 = vmax.f32 %v1661_v35, 0.0  ;;  %2430 = vmatpush.bf16.msrb.mxu3 %v6682_v21  ;;  %v6665_v21 = vld [vmem:[#allocation4 + $0xa0] sm:$0xf] }
 0x187   : > { %v1513_v25 = vpop.f32.mrf.mxu2 }
 0x188   : > { %v1562_v31 = vpop.f32.mrf.mxu3  ;;  %1949 = vmatmul.bf16.gmra.mxu2 %v1724_v22  ;;  %2047 = vmatmul.bf16.gmra.mxu0 %v1724_v22  ;;  %v1514_v38 = vadd.f32 %v1513_v25, %v9186_v32 }
 0x189   : > { %v1613_v34 = vpop.f32.mrf.mxu0 }
 0x18a   : > { %v1614_v36 = vadd.f32 %v1613_v34, %v9183_v27  ;;  %v1662_v37 = vpop.f32.mrf.mxu1  ;;  %v1563_v47 = vadd.f32 %v1562_v31, %v1514_v38  ;;  %v7719_v31 = vld [vmem:[#allocation4 + $0x54] sm:$0xf] }
 0x18b   : > { %v6630_v35 = vor.u32 %v7719_v31, %v6627_v33 }
 0x18c   : > { %v1663_v39 = vadd.f32 %v1662_v37, %v1614_v36  ;;  %v1698_v55 = vmax.f32 %v1563_v47, 0.0  ;;  %v7735_v36 = vld [vmem:[#allocation4 + $0xd4] sm:$0xf]  ;;  %v6691_v37 = vld [vmem:[#allocation4 + $0xd8] sm:$0xf0] }
 0x18d   : > { %2478 = vmatpush.bf16.msrb.mxu0 %v6630_v35  ;;  %v6609_v47 = vld [vmem:[#allocation4 + $0x30] sm:$0xf] }
 0x18e   : > { %v1701_v41 = vmax.f32 %v1663_v39, 0.0  ;;  %v6694_v39 = vor.u32 %v7735_v36, %v6691_v37  ;;  %v7715_v36 = vld [vmem:[#allocation4 + $0x34] sm:$0xf]  ;;  %v6611_v37 = vld [vmem:[#allocation4 + $0x38] sm:$0xf0] }
 0x18f   : > { %v1515_v28 = vpop.f32.mrf.mxu2 }
 0x190   : > { %v1516_v48 = vadd.f32 %v1515_v28, %v9186_v32  ;;  %v1564_v49 = vpop.f32.mrf.mxu3  ;;  %v1727_v50 = vpack.c.bf16 %v1701_v41, %v1699_v40  ;;  %2527 = vmatpush.bf16.msrb.mxu1 %v6694_v39  ;;  %v7731_v39 = vld [vmem:[#allocation4 + $0xb4] sm:$0xf] }
 0x191   : > { %v1616_v52 = vpop.f32.mrf.mxu0 }
 0x192   : > { %v1565_v53 = vadd.f32 %v1564_v49, %v1516_v48  ;;  %v1665_v54 = vpop.f32.mrf.mxu1  ;;  %2003 = vmatmul.bf16.gmra.mxu3 %v1727_v50  ;;  %2101 = vmatmul.bf16.gmra.mxu1 %v1727_v50  ;;  %v1617_v57 = vadd.f32 %v1616_v52, %v9183_v27  ;;  %v7716_v48 = vld [vmem:[#allocation4 + $0x34] sm:$0xf0] }
 0x193   : > { %v6610_v50 = vor.u32 %v7716_v48, %v6609_v47  ;;  %v7732_v52 = vld [vmem:[#allocation4 + $0xb4] sm:$0xf0]  ;;  %v6657_v47 = vld [vmem:[#allocation4 + $0x90] sm:$0xf] }
 0x194   : > { %v1700_v56 = vmax.f32 %v1565_v53, 0.0  ;;  %v1666_v4 = vadd.f32 %v1665_v54, %v1617_v57  ;;  %v6674_v57 = vor.u32 %v7732_v52, %v6673_v51 }
 0x195   : > { %2382 = vmatpush.bf16.msrb.mxu2 %v6610_v50  ;;  %v7728_v50 = vld [vmem:[#allocation4 + $0x94] sm:$0xf0] }
 0x196   : > { %v1726_v58 = vpack.c.bf16 %v1700_v56, %v1698_v55  ;;  %v1703_v11 = vmax.f32 %v1666_v4, 0.0  ;;  %2431 = vmatpush.bf16.msrb.mxu3 %v6674_v57 }
 0x197   : > { %v1518_v61 = vpop.f32.mrf.mxu2 }
 0x198   : > { %v1567_v1 = vpop.f32.mrf.mxu3  ;;  %1954 = vmatmul.bf16.gmra.mxu2 %v1726_v58  ;;  %2052 = vmatmul.bf16.gmra.mxu0 %v1726_v58  ;;  %v1519_v9 = vadd.f32 %v1518_v61, %v9186_v32 }
 0x199   : > { %v1618_v3 = vpop.f32.mrf.mxu0 }
 0x19a   : > { %v1619_v7 = vadd.f32 %v1618_v3, %v9183_v27  ;;  %v1667_v8 = vpop.f32.mrf.mxu1  ;;  %v1568_v17 = vadd.f32 %v1567_v1, %v1519_v9  ;;  %v7717_v1 = vld [vmem:[#allocation4 + $0x44] sm:$0xf] }
 0x19b   : > { %v6622_v4 = vor.u32 %v7717_v1, %v6619_v2 }
 0x19c   : > { %v1668_v10 = vadd.f32 %v1667_v8, %v1619_v7  ;;  %v1702_v25 = vmax.f32 %v1568_v17, 0.0  ;;  %v7733_v7 = vld [vmem:[#allocation4 + $0xc4] sm:$0xf]  ;;  %v6683_v8 = vld [vmem:[#allocation4 + $0xc8] sm:$0xf0] }
 0x19d   : > { %2479 = vmatpush.bf16.msrb.mxu0 %v6622_v4  ;;  %v6601_v17 = vld [vmem:[#allocation4 + $0x20] sm:$0xf] }
 0x19e   : > { %v1705_v12 = vmax.f32 %v1668_v10, 0.0  ;;  %v6686_v10 = vor.u32 %v7733_v7, %v6683_v8 }
 0x19f   : > { %v1520_v13 = vpop.f32.mrf.mxu2 }
 0x1a0   : > { %v1521_v18 = vadd.f32 %v1520_v13, %v9186_v32  ;;  %v1569_v19 = vpop.f32.mrf.mxu3  ;;  %v1729_v20 = vpack.c.bf16 %v1705_v12, %v1703_v11  ;;  %2528 = vmatpush.bf16.msrb.mxu1 %v6686_v10 }
 0x1a1   : > { %v1621_v22 = vpop.f32.mrf.mxu0 }
 0x1a2   : > { %v1570_v23 = vadd.f32 %v1569_v19, %v1521_v18  ;;  %v1670_v24 = vpop.f32.mrf.mxu1  ;;  %2008 = vmatmul.bf16.gmra.mxu3 %v1729_v20  ;;  %2106 = vmatmul.bf16.gmra.mxu1 %v1729_v20  ;;  %v1622_v29 = vadd.f32 %v1621_v22, %v9183_v27  ;;  %v7714_v18 = vld [vmem:[#allocation4 + $0x24] sm:$0xf0] }
 0x1a3   : > { %v6602_v20 = vor.u32 %v7714_v18, %v6601_v17  ;;  %v7730_v22 = vld [vmem:[#allocation4 + $0xa4] sm:$0xf0] }
 0x1a4   : > { %v1704_v26 = vmax.f32 %v1570_v23, 0.0  ;;  %v1671_v41 = vadd.f32 %v1670_v24, %v1622_v29  ;;  %v6666_v29 = vor.u32 %v7730_v22, %v6665_v21  ;;  %v7727_v21 = vld [vmem:[#allocation4 + $0x94] sm:$0xf]  ;;  %v6659_v22 = vld [vmem:[#allocation4 + $0x98] sm:$0xf0] }
 0x1a5   : > { %2383 = vmatpush.bf16.msrb.mxu2 %v6602_v20 }
 0x1a6   : > { %v1728_v30 = vpack.c.bf16 %v1704_v26, %v1702_v25  ;;  %v1707_v45 = vmax.f32 %v1671_v41, 0.0  ;;  %2432 = vmatpush.bf16.msrb.mxu3 %v6666_v29 }
 0x1a7   : > { %v1523_v34 = vpop.f32.mrf.mxu2 }
 0x1a8   : > { %v1572_v38 = vpop.f32.mrf.mxu3  ;;  %1959 = vmatmul.bf16.gmra.mxu2 %v1728_v30  ;;  %2057 = vmatmul.bf16.gmra.mxu0 %v1728_v30  ;;  %v1524_v28 = vadd.f32 %v1523_v34, %v9186_v32 }
 0x1a9   : > { %v1623_v40 = vpop.f32.mrf.mxu0 }
 0x1aa   : > { %v1624_v42 = vadd.f32 %v1623_v40, %v9183_v27  ;;  %v1672_v43 = vpop.f32.mrf.mxu1  ;;  %v1573_v53 = vadd.f32 %v1572_v38, %v1524_v28  ;;  %v6614_v38 = vor.u32 %v7715_v36, %v6611_v37  ;;  %v6675_v40 = vld [vmem:[#allocation4 + $0xb8] sm:$0xf0]  ;;  %v6649_v36 = vld [vmem:[#allocation4 + $0x80] sm:$0xf]  ;;  %v7726_v37 = vld [vmem:[#allocation4 + $0x84] sm:$0xf0] }
 0x1ac   : > { %v1673_v44 = vadd.f32 %v1672_v43, %v1624_v42  ;;  %v1706_v61 = vmax.f32 %v1573_v53, 0.0  ;;  %v6678_v43 = vor.u32 %v7731_v39, %v6675_v40  ;;  %2480 = vmatpush.bf16.msrb.mxu0 %v6614_v38  ;;  %v7725_v38 = vld [vmem:[#allocation4 + $0x84] sm:$0xf]  ;;  %v6650_v40 = vor.u32 %v7726_v37, %v6649_v36  ;;  %v7780_v36 = vld [vmem:[#allocation7 + $0xf4] sm:$0xf0] }
 0x1ae   : > { %v1709_v46 = vmax.f32 %v1673_v44, 0.0  ;;  %2529 = vmatpush.bf16.msrb.mxu1 %v6678_v43  ;;  %v7711_v43 = vld [vmem:[#allocation4 + $0x14] sm:$0xf] }
 0x1af   : > { %v1525_v49 = vpop.f32.mrf.mxu2 }
 0x1b0   : > { %v1526_v54 = vadd.f32 %v1525_v49, %v9186_v32  ;;  %v1574_v55 = vpop.f32.mrf.mxu3  ;;  %v1731_v56 = vpack.c.bf16 %v1709_v46, %v1707_v45  ;;  %v6593_v45 = vld [vmem:[#allocation4 + $0x10] sm:$0xf]  ;;  %v7712_v46 = vld [vmem:[#allocation4 + $0x14] sm:$0xf0] }
 0x1b1   : > { %v1626_v58 = vpop.f32.mrf.mxu0  ;;  %v6594_v49 = vor.u32 %v7712_v46, %v6593_v45 }
 0x1b2   : > { %v1575_v59 = vadd.f32 %v1574_v55, %v1526_v54  ;;  %v1675_v60 = vpop.f32.mrf.mxu1  ;;  %2013 = vmatmul.bf16.gmra.mxu3 %v1731_v56  ;;  %2111 = vmatmul.bf16.gmra.mxu1 %v1731_v56  ;;  %v1627_v63 = vadd.f32 %v1626_v58, %v9183_v27  ;;  %v6658_v54 = vor.u32 %v7728_v50, %v6657_v47  ;;  %v7709_v47 = vld [vmem:[#allocation4 + $0x4] sm:$0xf] }
 0x1b3   : > { %2384 = vmatpush.bf16.msrb.mxu2 %v6594_v49 }
 0x1b4   : > { %v1708_v62 = vmax.f32 %v1575_v59, 0.0  ;;  %v1676_v12 = vadd.f32 %v1675_v60, %v1627_v63  ;;  %2433 = vmatpush.bf16.msrb.mxu3 %v6658_v54  ;;  %v7713_v60 = vld [vmem:[#allocation4 + $0x24] sm:$0xf] }
 0x1b6   : > { %v1730_v0 = vpack.c.bf16 %v1708_v62, %v1706_v61  ;;  %v1711_v15 = vmax.f32 %v1676_v12, 0.0  ;;  %v6603_v61 = vld [vmem:[#allocation4 + $0x28] sm:$0xf0] }
 0x1b7   : > { %v1528_v3 = vpop.f32.mrf.mxu2  ;;  %v6606_v2 = vor.u32 %v7713_v60, %v6603_v61 }
 0x1b8   : > { %v1577_v9 = vpop.f32.mrf.mxu3  ;;  %1964 = vmatmul.bf16.gmra.mxu2 %v1730_v0  ;;  %2062 = vmatmul.bf16.gmra.mxu0 %v1730_v0  ;;  %v1529_v13 = vadd.f32 %v1528_v3, %v9186_v32 }
 0x1b9   : > { %v1628_v11 = vpop.f32.mrf.mxu0  ;;  %2481 = vmatpush.bf16.msrb.mxu0 %v6606_v2  ;;  %2434 = vmatpush.bf16.msrb.mxu3 %v6650_v40 }
 0x1ba   : > { %v1629_v5 = vadd.f32 %v1628_v11, %v9183_v27  ;;  %v1677_v6 = vpop.f32.mrf.mxu1  ;;  %v1578_v23 = vadd.f32 %v1577_v9, %v1529_v13  ;;  %v7729_v13 = vld [vmem:[#allocation4 + $0xa4] sm:$0xf] }
 0x1bc   : > { %v1678_v14 = vadd.f32 %v1677_v6, %v1629_v5  ;;  %v1710_v34 = vmax.f32 %v1578_v23, 0.0 }
 0x1be   : > { %v1713_v16 = vmax.f32 %v1678_v14, 0.0  ;;  %v6667_v14 = vld [vmem:[#allocation4 + $0xa8] sm:$0xf0] }
 0x1bf   : > { %v1530_v19 = vpop.f32.mrf.mxu2  ;;  %v6670_v17 = vor.u32 %v7729_v13, %v6667_v14 }
 0x1c0   : > { %v1531_v24 = vadd.f32 %v1530_v19, %v9186_v32  ;;  %v1579_v25 = vpop.f32.mrf.mxu3  ;;  %v1733_v26 = vpack.c.bf16 %v1713_v16, %v1711_v15 }
 0x1c1   : > { %v1631_v30 = vpop.f32.mrf.mxu0  ;;  %2530 = vmatpush.bf16.msrb.mxu1 %v6670_v17 }
 0x1c2   : > { %v1580_v31 = vadd.f32 %v1579_v25, %v1531_v24  ;;  %v1680_v33 = vpop.f32.mrf.mxu1  ;;  %2018 = vmatmul.bf16.gmra.mxu3 %v1733_v26  ;;  %2116 = vmatmul.bf16.gmra.mxu1 %v1733_v26  ;;  %v1632_v41 = vadd.f32 %v1631_v30, %v9183_v27  ;;  %v6662_v25 = vor.u32 %v7727_v21, %v6659_v22 }
 0x1c4   : > { %v1712_v35 = vmax.f32 %v1580_v31, 0.0  ;;  %v1681_v51 = vadd.f32 %v1680_v33, %v1632_v41  ;;  %v6585_v33 = vld [vmem:[#allocation4] sm:$0xf]  ;;  %v6651_v41 = vld [vmem:[#allocation4 + $0x88] sm:$0xf0] }
 0x1c5   : > { %2531 = vmatpush.bf16.msrb.mxu1 %v6662_v25 }
 0x1c6   : > { %v1732_v42 = vpack.c.bf16 %v1712_v35, %v1710_v34  ;;  %v1715_v57 = vmax.f32 %v1681_v51, 0.0  ;;  %v7710_v34 = vld [vmem:[#allocation4 + $0x4] sm:$0xf0]  ;;  %v1770_v51 = vld [vmem:[%s9954_s4] sm:$0x3] }
 0x1c7   : > { %v1533_v28 = vpop.f32.mrf.mxu2  ;;  %v6586_v35 = vor.u32 %v7710_v34, %v6585_v33  ;;  %v9222_v54 = vperm.slane %v1770_v51, 1  ;;  %v7762_v33 = vld [vmem:[#allocation7 + $0x64] sm:$0xf0] }
 0x1c8   : > { %v1582_v44 = vpop.f32.mrf.mxu3  ;;  %1969 = vmatmul.bf16.gmra.mxu2 %v1732_v42  ;;  %2067 = vmatmul.bf16.gmra.mxu0 %v1732_v42  ;;  %v1534_v55 = vadd.f32 %v1533_v28, %v9186_v32  ;;  %v6654_v42 = vor.u32 %v7725_v38, %v6651_v41  ;;  %v6595_v28 = vld [vmem:[#allocation4 + $0x18] sm:$0xf0] }
 0x1c9   : > { %v1633_v48 = vpop.f32.mrf.mxu0  ;;  %2385 = vmatpush.bf16.msrb.mxu2 %v6586_v35  ;;  %v6598_v45 = vor.u32 %v7711_v43, %v6595_v28  ;;  %v6833_v35 = vld [vmem:[#allocation7 + $0xf0] sm:$0xf] }
 0x1ca   : > { %v1634_v52 = vadd.f32 %v1633_v48, %v9183_v27  ;;  %v1682_v53 = vpop.f32.mrf.mxu1  ;;  %v1583_v62 = vadd.f32 %v1582_v44, %v1534_v55  ;;  %2532 = vmatpush.bf16.msrb.mxu1 %v6654_v42  ;;  %v6587_v48 = vld [vmem:[#allocation4 + $0x8] sm:$0xf0]  ;;  %v6834_v40 = vor.u32 %v7780_v36, %v6833_v35 }
 0x1cb   : > { %2482 = vmatpush.bf16.msrb.mxu0 %v6598_v45  ;;  %v6590_v49 = vor.u32 %v7709_v47, %v6587_v48 }
 0x1cc   : > { %v1683_v56 = vadd.f32 %v1682_v53, %v1634_v52  ;;  %v1714_v8 = vmax.f32 %v1583_v62, 0.0  ;;  %2872 = vmatpush.bf16.msra.mxu3 %v6834_v40 }
 0x1ce   : > { %v1717_v58 = vmax.f32 %v1683_v56, 0.0 }
 0x1cf   : > { %v1535_v59 = vpop.f32.mrf.mxu2  ;;  %2483 = vmatpush.bf16.msrb.mxu0 %v6590_v49 }
 0x1d0   : > { %v1536_v63 = vadd.f32 %v1535_v59, %v9186_v32  ;;  %v1584_v0 = vpop.f32.mrf.mxu3  ;;  %v1735_v1 = vpack.c.bf16 %v1717_v58, %v1715_v57  ;;  %v9225_v58 = vperm.slane %v1770_v51, 0 }
 0x1d1   : > { %v1636_v3 = vpop.f32.mrf.mxu0 }
 0x1d2   : > { %v1585_v4 = vadd.f32 %v1584_v0, %v1536_v63  ;;  %v1685_v7 = vpop.f32.mrf.mxu1  ;;  %2023 = vmatmul.bf16.gmra.mxu3 %v1735_v1  ;;  %2121 = vmatmul.bf16.gmra.mxu1 %v1735_v1  ;;  %v1637_v10 = vadd.f32 %v1636_v3, %v9183_v27 }
 0x1d4   : > { %v1716_v9 = vmax.f32 %v1585_v4, 0.0  ;;  %v1686_v15 = vadd.f32 %v1685_v7, %v1637_v10  ;;  %v6769_v4 = vld [vmem:[#allocation7 + $0x70] sm:$0xf]  ;;  %v7764_v7 = vld [vmem:[#allocation7 + $0x74] sm:$0xf0] }
 0x1d6   : > { %v1734_v11 = vpack.c.bf16 %v1716_v9, %v1714_v8  ;;  %v1719_v23 = vmax.f32 %v1686_v15, 0.0  ;;  %v6770_v9 = vor.u32 %v7764_v7, %v6769_v4 }
 0x1d7   : > { %v1538_v12 = vpop.f32.mrf.mxu2 }
 0x1d8   : > { %v1587_v5 = vpop.f32.mrf.mxu3  ;;  %1974 = vmatmul.bf16.gmra.mxu2 %v1734_v11  ;;  %2072 = vmatmul.bf16.gmra.mxu0 %v1734_v11  ;;  %v1539_v19 = vadd.f32 %v1538_v12, %v9186_v32 }
 0x1d9   : > { %v1638_v6 = vpop.f32.mrf.mxu0  ;;  %2823 = vmatpush.bf16.msra.mxu2 %v6770_v9 }
 0x1da   : > { %v1639_v16 = vadd.f32 %v1638_v6, %v9183_v27  ;;  %v1687_v18 = vpop.f32.mrf.mxu1  ;;  %v1588_v29 = vadd.f32 %v1587_v5, %v1539_v19 }
 0x1dc   : > { %v1688_v20 = vadd.f32 %v1687_v18, %v1639_v16  ;;  %v1718_v44 = vmax.f32 %v1588_v29, 0.0 }
 0x1de   : > { %v1721_v24 = vmax.f32 %v1688_v20, 0.0 }
 0x1df   : > { %v1540_v26 = vpop.f32.mrf.mxu2 }
 0x1e0   : > { %v1541_v30 = vadd.f32 %v1540_v26, %v9186_v32  ;;  %v1737_v31 = vpack.c.bf16 %v1721_v24, %v1719_v23  ;;  %v1589_v27 = vpop.f32.mrf.mxu3 }
 0x1e2   : > { %v1590_v39 = vadd.f32 %v1589_v27, %v1541_v30  ;;  %2028 = vmatmul.bf16.gmra.mxu3 %v1737_v31  ;;  %2126 = vmatmul.bf16.gmra.mxu1 %v1737_v31  ;;  %v6761_v31 = vld [vmem:[#allocation7 + $0x60] sm:$0xf] }
 0x1e3   : > { %v6762_v27 = vor.u32 %v7762_v33, %v6761_v31 }
 0x1e4   : > { %v1720_v32 = vmax.f32 %v1590_v39, 0.0 }
 0x1e5   : > { %2824 = vmatpush.bf16.msra.mxu2 %v6762_v27 }
 0x1e6   : > { %v1736_v46 = vpack.c.bf16 %v1720_v32, %v1718_v44 }
 0x1e8   : > { %1979 = vmatmul.bf16.gmra.mxu2 %v1736_v46  ;;  %2077 = vmatmul.bf16.gmra.mxu0 %v1736_v46 }
 0x1ef   : > { %v2092_v50 = vpop.f32.mrf.mxu1 }
 0x1f5   : > { %v1994_v52 = vpop.f32.mrf.mxu3  ;;  %v2043_v53 = vpop.f32.mrf.mxu0 }
 0x1f6   : > { %v2044_v56 = vadd.f32 %v2043_v53, %v9222_v54 }
 0x1f7   : > { %v2094_v55 = vpop.f32.mrf.mxu1 }
 0x1f8   : > { %v2093_v61 = vadd.f32 %v2092_v50, %v2044_v56 }
 0x1fa   : > { %v2133_v2 = vmax.f32 %v2093_v61, 0.0 }
 0x1fb   : > { %v1945_v57 = vpop.f32.mrf.mxu2 }
 0x1fc   : > { %v1946_v0 = vadd.f32 %v1945_v57, %v9225_v58 }
 0x1fd   : > { %v1996_v59 = vpop.f32.mrf.mxu3  ;;  %v2045_v60 = vpop.f32.mrf.mxu0 }
 0x1fe   : > { %v2046_v62 = vadd.f32 %v2045_v60, %v9222_v54  ;;  %v1995_v10 = vadd.f32 %v1994_v52, %v1946_v0  ;;  %v7760_v60 = vld [vmem:[#allocation7 + $0x54] sm:$0xf0]  ;;  %v7778_v0 = vld [vmem:[#allocation7 + $0xe4] sm:$0xf0] }
 0x1ff   : > { %v2097_v63 = vpop.f32.mrf.mxu1 }
 0x200   : > { %v2095_v1 = vadd.f32 %v2094_v55, %v2046_v62  ;;  %v2132_v15 = vmax.f32 %v1995_v10, 0.0 }
 0x202   : > { %v2135_v3 = vmax.f32 %v2095_v1, 0.0 }
 0x203   : > { %v1947_v8 = vpop.f32.mrf.mxu2 }
 0x204   : > { %v2165_v11 = vpack.c.bf16 %v2135_v3, %v2133_v2  ;;  %v1948_v12 = vadd.f32 %v1947_v8, %v9225_v58 }
 0x205   : > { %v1999_v5 = vpop.f32.mrf.mxu3  ;;  %v2048_v6 = vpop.f32.mrf.mxu0 }
 0x206   : > { %v1997_v13 = vadd.f32 %v1996_v59, %v1948_v12  ;;  %2435 = vmatmul.bf16.vlgmr.msrb.gmra.mxu3 %v2165_v11  ;;  %2533 = vmatmul.bf16.vlgmr.msrb.gmra.mxu1 %v2165_v11  ;;  %v2049_v18 = vadd.f32 %v2048_v6, %v9222_v54  ;;  %v6753_v59 = vld [vmem:[#allocation7 + $0x50] sm:$0xf] }
 0x207   : > { %v2099_v14 = vpop.f32.mrf.mxu1  ;;  %v6754_v62 = vor.u32 %v7760_v60, %v6753_v59 }
 0x208   : > { %v2134_v16 = vmax.f32 %v1997_v13, 0.0  ;;  %v2098_v22 = vadd.f32 %v2097_v63, %v2049_v18  ;;  %v6825_v63 = vld [vmem:[#allocation7 + $0xe0] sm:$0xf] }
 0x209   : > { %v6826_v4 = vor.u32 %v7778_v0, %v6825_v63  ;;  %2825 = vmatpush.bf16.msra.mxu2 %v6754_v62 }
 0x20a   : > { %v2164_v17 = vpack.c.bf16 %v2134_v16, %v2132_v15  ;;  %v2137_v29 = vmax.f32 %v2098_v22, 0.0 }
 0x20b   : > { %v1950_v19 = vpop.f32.mrf.mxu2  ;;  %2873 = vmatpush.bf16.msra.mxu3 %v6826_v4 }
 0x20c   : > { %2386 = vmatmul.bf16.vlgmr.msrb.gmra.mxu2 %v2164_v17  ;;  %2484 = vmatmul.bf16.vlgmr.msrb.gmra.mxu0 %v2164_v17  ;;  %v1951_v25 = vadd.f32 %v1950_v19, %v9225_v58 }
 0x20d   : > { %v2001_v20 = vpop.f32.mrf.mxu3  ;;  %v2050_v21 = vpop.f32.mrf.mxu0 }
 0x20e   : > { %v2051_v23 = vadd.f32 %v2050_v21, %v9222_v54  ;;  %v2000_v37 = vadd.f32 %v1999_v5, %v1951_v25 }
 0x20f   : > { %v2102_v24 = vpop.f32.mrf.mxu1 }
 0x210   : > { %v2100_v26 = vadd.f32 %v2099_v14, %v2051_v23  ;;  %v2136_v44 = vmax.f32 %v2000_v37, 0.0  ;;  %v6745_v23 = vld [vmem:[#allocation7 + $0x40] sm:$0xf] }
 0x212   : > { %v2139_v30 = vmax.f32 %v2100_v26, 0.0 }
 0x213   : > { %v1952_v34 = vpop.f32.mrf.mxu2 }
 0x214   : > { %v1953_v38 = vadd.f32 %v1952_v34, %v9225_v58  ;;  %v2167_v39 = vpack.c.bf16 %v2139_v30, %v2137_v29  ;;  %v6817_v29 = vld [vmem:[#allocation7 + $0xd0] sm:$0xf]  ;;  %v7776_v30 = vld [vmem:[#allocation7 + $0xd4] sm:$0xf0] }
 0x215   : > { %v2004_v41 = vpop.f32.mrf.mxu3  ;;  %v2053_v42 = vpop.f32.mrf.mxu0  ;;  %v6818_v27 = vor.u32 %v7776_v30, %v6817_v29 }
 0x216   : > { %v2002_v43 = vadd.f32 %v2001_v20, %v1953_v38  ;;  %2440 = vmatmul.bf16.gmra.mxu3 %v2167_v39  ;;  %2538 = vmatmul.bf16.gmra.mxu1 %v2167_v39  ;;  %v2054_v45 = vadd.f32 %v2053_v42, %v9222_v54 }
 0x217   : > { %v2104_v28 = vpop.f32.mrf.mxu1  ;;  %2874 = vmatpush.bf16.msra.mxu3 %v6818_v27  ;;  %v7779_v27 = vld [vmem:[#allocation7 + $0xf4] sm:$0xf] }
 0x218   : > { %v2138_v32 = vmax.f32 %v2002_v43, 0.0  ;;  %v2103_v50 = vadd.f32 %v2102_v24, %v2054_v45  ;;  %v7758_v24 = vld [vmem:[#allocation7 + $0x44] sm:$0xf0] }
 0x219   : > { %v6746_v26 = vor.u32 %v7758_v24, %v6745_v23 }
 0x21a   : > { %v2166_v46 = vpack.c.bf16 %v2138_v32, %v2136_v44  ;;  %v2141_v56 = vmax.f32 %v2103_v50, 0.0 }
 0x21b   : > { %v1955_v47 = vpop.f32.mrf.mxu2  ;;  %2826 = vmatpush.bf16.msra.mxu2 %v6746_v26 }
 0x21c   : > { %2391 = vmatmul.bf16.gmra.mxu2 %v2166_v46  ;;  %2489 = vmatmul.bf16.gmra.mxu0 %v2166_v46  ;;  %v1956_v53 = vadd.f32 %v1955_v47, %v9225_v58 }
 0x21d   : > { %v2006_v48 = vpop.f32.mrf.mxu3  ;;  %v2055_v49 = vpop.f32.mrf.mxu0 }
 0x21e   : > { %v2056_v51 = vadd.f32 %v2055_v49, %v9222_v54  ;;  %v2005_v1 = vadd.f32 %v2004_v41, %v1956_v53 }
 0x21f   : > { %v2107_v52 = vpop.f32.mrf.mxu1 }
 0x220   : > { %v2105_v55 = vadd.f32 %v2104_v28, %v2056_v51  ;;  %v2140_v11 = vmax.f32 %v2005_v1, 0.0  ;;  %v6737_v51 = vld [vmem:[#allocation7 + $0x30] sm:$0xf] }
 0x222   : > { %v2143_v57 = vmax.f32 %v2105_v55, 0.0 }
 0x223   : > { %v1957_v61 = vpop.f32.mrf.mxu2 }
 0x224   : > { %v1958_v2 = vadd.f32 %v1957_v61, %v9225_v58  ;;  %v2169_v3 = vpack.c.bf16 %v2143_v57, %v2141_v56  ;;  %v6809_v56 = vld [vmem:[#allocation7 + $0xc0] sm:$0xf]  ;;  %v7774_v57 = vld [vmem:[#allocation7 + $0xc4] sm:$0xf0] }
 0x225   : > { %v2009_v7 = vpop.f32.mrf.mxu3  ;;  %v2058_v8 = vpop.f32.mrf.mxu0  ;;  %v6810_v62 = vor.u32 %v7774_v57, %v6809_v56 }
 0x226   : > { %v2007_v9 = vadd.f32 %v2006_v48, %v1958_v2  ;;  %2445 = vmatmul.bf16.gmra.mxu3 %v2169_v3  ;;  %2543 = vmatmul.bf16.gmra.mxu1 %v2169_v3  ;;  %v2059_v5 = vadd.f32 %v2058_v8, %v9222_v54 }
 0x227   : > { %v2109_v10 = vpop.f32.mrf.mxu1  ;;  %2875 = vmatpush.bf16.msra.mxu3 %v6810_v62 }
 0x228   : > { %v2142_v12 = vmax.f32 %v2007_v9, 0.0  ;;  %v2108_v16 = vadd.f32 %v2107_v52, %v2059_v5  ;;  %v7756_v52 = vld [vmem:[#allocation7 + $0x34] sm:$0xf0] }
 0x229   : > { %v6738_v55 = vor.u32 %v7756_v52, %v6737_v51  ;;  %v6793_v51 = vld [vmem:[#allocation7 + $0xa0] sm:$0xf]  ;;  %v7770_v52 = vld [vmem:[#allocation7 + $0xa4] sm:$0xf0] }
 0x22a   : > { %v2168_v6 = vpack.c.bf16 %v2142_v12, %v2140_v11  ;;  %v2145_v21 = vmax.f32 %v2108_v16, 0.0 }
 0x22b   : > { %v1960_v13 = vpop.f32.mrf.mxu2  ;;  %2827 = vmatpush.bf16.msra.mxu2 %v6738_v55 }
 0x22c   : > { %2396 = vmatmul.bf16.gmra.mxu2 %v2168_v6  ;;  %2494 = vmatmul.bf16.gmra.mxu0 %v2168_v6  ;;  %v1961_v19 = vadd.f32 %v1960_v13, %v9225_v58 }
 0x22d   : > { %v2011_v14 = vpop.f32.mrf.mxu3  ;;  %v2060_v15 = vpop.f32.mrf.mxu0 }
 0x22e   : > { %v2061_v17 = vadd.f32 %v2060_v15, %v9222_v54  ;;  %v2010_v31 = vadd.f32 %v2009_v7, %v1961_v19 }
 0x22f   : > { %v2112_v18 = vpop.f32.mrf.mxu1 }
 0x230   : > { %v2110_v20 = vadd.f32 %v2109_v10, %v2061_v17  ;;  %v2144_v39 = vmax.f32 %v2010_v31, 0.0  ;;  %v6729_v17 = vld [vmem:[#allocation7 + $0x20] sm:$0xf] }
 0x232   : > { %v2147_v22 = vmax.f32 %v2110_v20, 0.0 }
 0x233   : > { %v1962_v25 = vpop.f32.mrf.mxu2 }
 0x234   : > { %v1963_v33 = vadd.f32 %v1962_v25, %v9225_v58  ;;  %v2171_v34 = vpack.c.bf16 %v2147_v22, %v2145_v21  ;;  %v6801_v21 = vld [vmem:[#allocation7 + $0xb0] sm:$0xf]  ;;  %v7772_v22 = vld [vmem:[#allocation7 + $0xb4] sm:$0xf0] }
 0x235   : > { %v2014_v35 = vpop.f32.mrf.mxu3  ;;  %v2063_v36 = vpop.f32.mrf.mxu0  ;;  %v6802_v26 = vor.u32 %v7772_v22, %v6801_v21 }
 0x236   : > { %v2012_v37 = vadd.f32 %v2011_v14, %v1963_v33  ;;  %2450 = vmatmul.bf16.gmra.mxu3 %v2171_v34  ;;  %2548 = vmatmul.bf16.gmra.mxu1 %v2171_v34  ;;  %v2064_v41 = vadd.f32 %v2063_v36, %v9222_v54 }
 0x237   : > { %v2114_v38 = vpop.f32.mrf.mxu1  ;;  %2876 = vmatpush.bf16.msra.mxu3 %v6802_v26  ;;  %v6747_v26 = vld [vmem:[#allocation7 + $0x48] sm:$0xf0] }
 0x238   : > { %v2146_v40 = vmax.f32 %v2012_v37, 0.0  ;;  %v2113_v32 = vadd.f32 %v2112_v18, %v2064_v41  ;;  %v7754_v18 = vld [vmem:[#allocation7 + $0x24] sm:$0xf0]  ;;  %v7777_v41 = vld [vmem:[#allocation7 + $0xe4] sm:$0xf] }
 0x239   : > { %v6730_v20 = vor.u32 %v7754_v18, %v6729_v17  ;;  %v7771_v18 = vld [vmem:[#allocation7 + $0xb4] sm:$0xf] }
 0x23a   : > { %v2170_v42 = vpack.c.bf16 %v2146_v40, %v2144_v39  ;;  %v2149_v49 = vmax.f32 %v2113_v32, 0.0  ;;  %v7752_v32 = vld [vmem:[#allocation7 + $0x14] sm:$0xf0] }
 0x23b   : > { %v1965_v43 = vpop.f32.mrf.mxu2  ;;  %2828 = vmatpush.bf16.msra.mxu2 %v6730_v20 }
 0x23c   : > { %2401 = vmatmul.bf16.gmra.mxu2 %v2170_v42  ;;  %2499 = vmatmul.bf16.gmra.mxu0 %v2170_v42  ;;  %v1966_v47 = vadd.f32 %v1965_v43, %v9225_v58  ;;  %v6827_v42 = vld [vmem:[#allocation7 + $0xe8] sm:$0xf0]  ;;  %v6721_v43 = vld [vmem:[#allocation7 + $0x10] sm:$0xf] }
 0x23d   : > { %v2016_v28 = vpop.f32.mrf.mxu3  ;;  %v2065_v44 = vpop.f32.mrf.mxu0 }
 0x23e   : > { %v2066_v45 = vadd.f32 %v2065_v44, %v9222_v54  ;;  %v2015_v59 = vadd.f32 %v2014_v35, %v1966_v47  ;;  %v6835_v35 = vld [vmem:[#allocation7 + $0xf8] sm:$0xf0]  ;;  %v6830_v44 = vor.u32 %v7777_v41, %v6827_v42  ;;  %v6785_v42 = vld [vmem:[#allocation7 + $0x90] sm:$0xf] }
 0x23f   : > { %v2117_v46 = vpop.f32.mrf.mxu1  ;;  %v6838_v36 = vor.u32 %v7779_v27, %v6835_v35 }
 0x240   : > { %v2115_v48 = vadd.f32 %v2114_v38, %v2066_v45  ;;  %v2148_v3 = vmax.f32 %v2015_v59, 0.0  ;;  %v7763_v45 = vld [vmem:[#allocation7 + $0x74] sm:$0xf] }
 0x241   : > { %2970 = vmatpush.bf16.msra.mxu1 %v6838_v36  ;;  %v7775_v59 = vld [vmem:[#allocation7 + $0xd4] sm:$0xf] }
 0x242   : > { %v2151_v50 = vmax.f32 %v2115_v48, 0.0 }
 0x243   : > { %v1967_v53 = vpop.f32.mrf.mxu2 }
 0x244   : > { %v1968_v60 = vadd.f32 %v1967_v53, %v9225_v58  ;;  %v2173_v61 = vpack.c.bf16 %v2151_v50, %v2149_v49  ;;  %v6722_v49 = vor.u32 %v7752_v32, %v6721_v43  ;;  %v6794_v53 = vor.u32 %v7770_v52, %v6793_v51  ;;  %v7768_v43 = vld [vmem:[#allocation7 + $0x94] sm:$0xf0] }
 0x245   : > { %v2019_v63 = vpop.f32.mrf.mxu3  ;;  %v2068_v0 = vpop.f32.mrf.mxu0  ;;  %2971 = vmatpush.bf16.msra.mxu1 %v6830_v44 }
 0x246   : > { %v2017_v1 = vadd.f32 %v2016_v28, %v1968_v60  ;;  %2455 = vmatmul.bf16.gmra.mxu3 %v2173_v61  ;;  %2553 = vmatmul.bf16.gmra.mxu1 %v2173_v61  ;;  %v2069_v7 = vadd.f32 %v2068_v0, %v9222_v54  ;;  %v6819_v60 = vld [vmem:[#allocation7 + $0xd8] sm:$0xf0] }
 0x247   : > { %v2119_v2 = vpop.f32.mrf.mxu1  ;;  %2829 = vmatpush.bf16.msra.mxu2 %v6722_v49  ;;  %2877 = vmatpush.bf16.msra.mxu3 %v6794_v53  ;;  %v6731_v49 = vld [vmem:[#allocation7 + $0x28] sm:$0xf0] }
 0x248   : > { %v2150_v4 = vmax.f32 %v2017_v1, 0.0  ;;  %v2118_v12 = vadd.f32 %v2117_v46, %v2069_v7  ;;  %v6771_v46 = vld [vmem:[#allocation7 + $0x78] sm:$0xf0]  ;;  %v7761_v1 = vld [vmem:[#allocation7 + $0x64] sm:$0xf] }
 0x249   : > { %v9252_v50 = vor.u32 %v7763_v45, %v6771_v46  ;;  %v6786_v45 = vor.u32 %v7768_v43, %v6785_v42  ;;  %v6787_v46 = vld [vmem:[#allocation7 + $0x98] sm:$0xf0] }
 0x24a   : > { %v2172_v8 = vpack.c.bf16 %v2150_v4, %v2148_v3  ;;  %v2153_v15 = vmax.f32 %v2118_v12, 0.0  ;;  %v7773_v3 = vld [vmem:[#allocation7 + $0xc4] sm:$0xf] }
 0x24b   : > { %v1970_v9 = vpop.f32.mrf.mxu2  ;;  %2921 = vmatpush.bf16.msra.mxu0 %v9252_v50  ;;  %2878 = vmatpush.bf16.msra.mxu3 %v6786_v45 }
 0x24c   : > { %2406 = vmatmul.bf16.gmra.mxu2 %v2172_v8  ;;  %2504 = vmatmul.bf16.gmra.mxu0 %v2172_v8  ;;  %v1971_v6 = vadd.f32 %v1970_v9, %v9225_v58 }
 0x24d   : > { %v2021_v10 = vpop.f32.mrf.mxu3  ;;  %v2070_v11 = vpop.f32.mrf.mxu0 }
 0x24e   : > { %v2071_v5 = vadd.f32 %v2070_v11, %v9222_v54  ;;  %v2020_v23 = vadd.f32 %v2019_v63, %v1971_v6  ;;  %v6822_v63 = vor.u32 %v7775_v59, %v6819_v60 }
 0x24f   : > { %v2122_v14 = vpop.f32.mrf.mxu1 }
 0x250   : > { %v2120_v13 = vadd.f32 %v2119_v2, %v2071_v5  ;;  %v2152_v33 = vmax.f32 %v2020_v23, 0.0  ;;  %v6763_v2 = vld [vmem:[#allocation7 + $0x68] sm:$0xf0]  ;;  %2972 = vmatpush.bf16.msra.mxu1 %v6822_v63  ;;  %v7765_v63 = vld [vmem:[#allocation7 + $0x84] sm:$0xf] }
 0x251   : > { %v9257_v9 = vor.u32 %v7761_v1, %v6763_v2  ;;  %v6779_v2 = vld [vmem:[#allocation7 + $0x88] sm:$0xf0] }
 0x252   : > { %v2155_v16 = vmax.f32 %v2120_v13, 0.0  ;;  %v7759_v13 = vld [vmem:[#allocation7 + $0x54] sm:$0xf] }
 0x253   : > { %v1972_v19 = vpop.f32.mrf.mxu2  ;;  %2922 = vmatpush.bf16.msra.mxu0 %v9257_v9 }
 0x254   : > { %v1973_v24 = vadd.f32 %v1972_v19, %v9225_v58  ;;  %v2175_v25 = vpack.c.bf16 %v2155_v16, %v2153_v15  ;;  %v6803_v19 = vld [vmem:[#allocation7 + $0xb8] sm:$0xf0] }
 0x255   : > { %v2073_v29 = vpop.f32.mrf.mxu0  ;;  %v2024_v31 = vpop.f32.mrf.mxu3  ;;  %v6806_v22 = vor.u32 %v7771_v18, %v6803_v19 }
 0x256   : > { %v2022_v30 = vadd.f32 %v2021_v10, %v1973_v24  ;;  %2460 = vmatmul.bf16.gmra.mxu3 %v2175_v25  ;;  %2558 = vmatmul.bf16.gmra.mxu1 %v2175_v25  ;;  %v2074_v37 = vadd.f32 %v2073_v29, %v9222_v54  ;;  %v6811_v10 = vld [vmem:[#allocation7 + $0xc8] sm:$0xf0]  ;;  %v7757_v25 = vld [vmem:[#allocation7 + $0x44] sm:$0xf] }
 0x257   : > { %v2124_v39 = vpop.f32.mrf.mxu1  ;;  %v6814_v5 = vor.u32 %v7773_v3, %v6811_v10  ;;  %v9264_v29 = vor.u32 %v7757_v25, %v6747_v26  ;;  %v6782_v3 = vor.u32 %v7765_v63, %v6779_v2 }
 0x258   : > { %v2154_v34 = vmax.f32 %v2022_v30, 0.0  ;;  %v2123_v47 = vadd.f32 %v2122_v14, %v2074_v37  ;;  %v6755_v14 = vld [vmem:[#allocation7 + $0x58] sm:$0xf0]  ;;  %v7755_v37 = vld [vmem:[#allocation7 + $0x34] sm:$0xf] }
 0x259   : > { %2973 = vmatpush.bf16.msra.mxu1 %v6814_v5  ;;  %v9260_v17 = vor.u32 %v7759_v13, %v6755_v14  ;;  %v6715_v5 = vld [vmem:[#allocation7 + $0x8] sm:$0xf0] }
 0x25a   : > { %v2174_v38 = vpack.c.bf16 %v2154_v34, %v2152_v33  ;;  %v2157_v61 = vmax.f32 %v2123_v47, 0.0  ;;  %v6795_v33 = vld [vmem:[#allocation7 + $0xa8] sm:$0xf0] }
 0x25b   : > { %v1975_v40 = vpop.f32.mrf.mxu2  ;;  %2923 = vmatpush.bf16.msra.mxu0 %v9260_v17 }
 0x25c   : > { %2411 = vmatmul.bf16.gmra.mxu2 %v2174_v38  ;;  %2509 = vmatmul.bf16.gmra.mxu0 %v2174_v38  ;;  %v1976_v55 = vadd.f32 %v1975_v40, %v9225_v58  ;;  %v6739_v38 = vld [vmem:[#allocation7 + $0x38] sm:$0xf0] }
 0x25d   : > { %v2075_v28 = vpop.f32.mrf.mxu0  ;;  %v2026_v57 = vpop.f32.mrf.mxu3  ;;  %2974 = vmatpush.bf16.msra.mxu1 %v6806_v22  ;;  %v6742_v41 = vor.u32 %v7755_v37, %v6739_v38 }
 0x25e   : > { %v2076_v48 = vadd.f32 %v2075_v28, %v9222_v54  ;;  %v2025_v4 = vadd.f32 %v2024_v31, %v1976_v55  ;;  %v7769_v31 = vld [vmem:[#allocation7 + $0xa4] sm:$0xf]  ;;  %v7767_v28 = vld [vmem:[#allocation7 + $0x94] sm:$0xf]  ;;  %v6713_v55 = vld [vmem:[#allocation7] sm:$0xf] }
 0x25f   : > { %v2127_v11 = vpop.f32.mrf.mxu1  ;;  %v6798_v35 = vor.u32 %v7769_v31, %v6795_v33  ;;  %2924 = vmatpush.bf16.msra.mxu0 %v9264_v29  ;;  %v7747_v31 = vld [vmem:[#allocation6 + $0x34] sm:$0xf]  ;;  %v6867_v33 = vld [vmem:[#allocation6 + $0x38] sm:$0x30] }
 0x260   : > { %v2125_v56 = vadd.f32 %v2124_v39, %v2076_v48  ;;  %v2156_v15 = vmax.f32 %v2025_v4, 0.0  ;;  %v7753_v48 = vld [vmem:[#allocation7 + $0x24] sm:$0xf]  ;;  %v6723_v4 = vld [vmem:[#allocation7 + $0x18] sm:$0xf0] }
 0x261   : > { %2975 = vmatpush.bf16.msra.mxu1 %v6798_v35 }
 0x262   : > { %v2159_v62 = vmax.f32 %v2125_v56, 0.0  ;;  %v7750_v56 = vld [vmem:[#allocation7 + $0x4] sm:$0xf0] }
 0x263   : > { %v1977_v0 = vpop.f32.mrf.mxu2  ;;  %2925 = vmatpush.bf16.msra.mxu0 %v6742_v41  ;;  %v6714_v60 = vor.u32 %v7750_v56, %v6713_v55 }
 0x264   : > { %v1978_v7 = vadd.f32 %v1977_v0, %v9225_v58  ;;  %v2177_v8 = vpack.c.bf16 %v2159_v62, %v2157_v61  ;;  %v6777_v61 = vld [vmem:[#allocation7 + $0x80] sm:$0xf]  ;;  %v7766_v62 = vld [vmem:[#allocation7 + $0x84] sm:$0xf0] }
 0x265   : > { %v2078_v12 = vpop.f32.mrf.mxu0  ;;  %v2029_v23 = vpop.f32.mrf.mxu3  ;;  %v6778_v1 = vor.u32 %v7766_v62, %v6777_v61  ;;  %2830 = vmatpush.bf16.msra.mxu2 %v6714_v60 }
 0x266   : > { %v2027_v6 = vadd.f32 %v2026_v57, %v1978_v7  ;;  %2465 = vmatmul.bf16.gmra.mxu3 %v2177_v8  ;;  %2563 = vmatmul.bf16.gmra.mxu1 %v2177_v8  ;;  %v2079_v20 = vadd.f32 %v2078_v12, %v9222_v54  ;;  %v6734_v57 = vor.u32 %v7753_v48, %v6731_v49  ;;  %v7749_v12 = vld [vmem:[#allocation7 + $0x4] sm:$0xf] }
 0x267   : > { %v2129_v36 = vpop.f32.mrf.mxu1  ;;  %2879 = vmatpush.bf16.msra.mxu3 %v6778_v1 }
 0x268   : > { %v2158_v16 = vmax.f32 %v2027_v6, 0.0  ;;  %v2128_v34 = vadd.f32 %v2127_v11, %v2079_v20  ;;  %2926 = vmatpush.bf16.msra.mxu0 %v6734_v57  ;;  %v6718_v6 = vor.u32 %v7749_v12, %v6715_v5 }
 0x269   : > { %7958 = vmatpush.bf16.msrb.mxu2 %v9252_v50  ;;  %v2212_v50 = vld [vmem:[%s9955_s30] sm:$0x3]  ;;  %s9840_s30 = scalar_lea.vmem %s9959_s10, %s6246_s11 }
 0x26a   : > { %v2176_v21 = vpack.c.bf16 %v2158_v16, %v2156_v15  ;;  %v2161_v44 = vmax.f32 %v2128_v34, 0.0  ;;  %v9277_v16 = vperm.slane %v2212_v50, 1  ;;  %v9280_v20 = vperm.slane %v2212_v50, 0 }
 0x26b   : > { %v1980_v24 = vpop.f32.mrf.mxu2 }
 0x26c   : > { %2416 = vmatmul.bf16.gmra.mxu2 %v2176_v21  ;;  %2514 = vmatmul.bf16.gmra.mxu0 %v2176_v21  ;;  %v1981_v39 = vadd.f32 %v1980_v24, %v9225_v58 }
 0x26d   : > { %v2080_v30 = vpop.f32.mrf.mxu0  ;;  %v2031_v59 = vpop.f32.mrf.mxu3  ;;  %7959 = vmatpush.bf16.msrb.mxu2 %v9257_v9 }
 0x26e   : > { %v2081_v27 = vadd.f32 %v2080_v30, %v9222_v54  ;;  %v6790_v54 = vor.u32 %v7767_v28, %v6787_v46  ;;  %v2030_v51 = vadd.f32 %v2029_v23, %v1981_v39 }
 0x270   : > { %v2130_v40 = vadd.f32 %v2129_v36, %v2081_v27  ;;  %2976 = vmatpush.bf16.msra.mxu1 %v6790_v54  ;;  %v2160_v7 = vmax.f32 %v2030_v51, 0.0  ;;  %v6870_v27 = vor.u32 %v7747_v31, %v6867_v33 }
 0x271   : > { %7960 = vmatpush.bf16.msrb.mxu2 %v9260_v17 }
 0x272   : > { %v2163_v32 = vmax.f32 %v2130_v40, 0.0  ;;  %v3061_v40 = vsel %vm1143_vm0, %v6870_v27, 0 }
 0x273   : > { %v1982_v47 = vpop.f32.mrf.mxu2  ;;  %3116 = vmatpush.bf16.msrb.mxu3 %v3061_v40 }
 0x274   : > { %v1983_v52 = vadd.f32 %v1982_v47, %v9225_v58  ;;  %v2179_v53 = vpack.c.bf16 %v2163_v32, %v2161_v44  ;;  %v7751_v58 = vld [vmem:[#allocation7 + $0x14] sm:$0xf]  ;;  %2977 = vmatpush.bf16.msra.mxu1 %v6782_v3 }
 0x275   : > { %v6726_v10 = vor.u32 %v7751_v58, %v6723_v4  ;;  %7961 = vmatpush.bf16.msrb.mxu2 %v9264_v29 }
 0x276   : > { %v2032_v0 = vadd.f32 %v2031_v59, %v1983_v52  ;;  %2470 = vmatmul.bf16.gmra.mxu3 %v2179_v53  ;;  %2568 = vmatmul.bf16.gmra.mxu1 %v2179_v53 }
 0x277   : > { %2927 = vmatpush.bf16.msra.mxu0 %v6726_v10 }
 0x278   : > { %v2162_v8 = vmax.f32 %v2032_v0, 0.0 }
 0x279   : > { %7962 = vmatpush.bf16.msrb.mxu2 %v6742_v41 }
 0x27a   : > { %v2178_v11 = vpack.c.bf16 %v2162_v8, %v2160_v7 }
 0x27b   : > { %2928 = vmatpush.bf16.msra.mxu0 %v6718_v6 }
 0x27c   : > { %2421 = vmatmul.bf16.gmra.mxu2 %v2178_v11  ;;  %2519 = vmatmul.bf16.gmra.mxu0 %v2178_v11 }
 0x27d   : > { %7963 = vmatpush.bf16.msrb.mxu2 %v6734_v57 }
 0x281   : > { %7964 = vmatpush.bf16.msrb.mxu2 %v6726_v10 }
 0x283   : > { %v2534_v13 = vpop.f32.mrf.mxu1 }
 0x285   : > { %7965 = vmatpush.bf16.msrb.mxu2 %v6718_v6 }
 0x289   : > { %v2436_v14 = vpop.f32.mrf.mxu3  ;;  %v2485_v15 = vpop.f32.mrf.mxu0 }
 0x28a   : > { %v2486_v19 = vadd.f32 %v2485_v15, %v9277_v16  ;;  %v6859_v15 = vld [vmem:[#allocation6 + $0x28] sm:$0xf0] }
 0x28b   : > { %v2536_v18 = vpop.f32.mrf.mxu1 }
 0x28c   : > { %v2535_v22 = vadd.f32 %v2534_v13, %v2486_v19 }
 0x28e   : > { %v2575_v29 = vmax.f32 %v2535_v22, 0.0 }
 0x28f   : > { %v2387_v9 = vpop.f32.mrf.mxu2 }
 0x290   : > { %v2388_v25 = vadd.f32 %v2387_v9, %v9280_v20 }
 0x291   : > { %v2438_v17 = vpop.f32.mrf.mxu3  ;;  %v2487_v21 = vpop.f32.mrf.mxu0 }
 0x292   : > { %v2488_v23 = vadd.f32 %v2487_v21, %v9277_v16  ;;  %v2437_v35 = vadd.f32 %v2436_v14, %v2388_v25  ;;  %v7745_v14 = vld [vmem:[#allocation6 + $0x24] sm:$0xf] }
 0x293   : > { %v2539_v24 = vpop.f32.mrf.mxu1  ;;  %v6862_v19 = vor.u32 %v7745_v14, %v6859_v15 }
 0x294   : > { %v2537_v26 = vadd.f32 %v2536_v18, %v2488_v23  ;;  %v2574_v43 = vmax.f32 %v2437_v35, 0.0 }
 0x295   : > { %3117 = vmatpush.bf16.msrb.mxu3 %v6862_v19 }
 0x296   : > { %v2577_v30 = vmax.f32 %v2537_v26, 0.0 }
 0x297   : > { %v2389_v34 = vpop.f32.mrf.mxu2 }
 0x298   : > { %v2607_v36 = vpack.c.bf16 %v2577_v30, %v2575_v29  ;;  %v2390_v37 = vadd.f32 %v2389_v34, %v9280_v20 }
 0x299   : > { %v2441_v38 = vpop.f32.mrf.mxu3  ;;  %v2490_v39 = vpop.f32.mrf.mxu0 }
 0x29a   : > { %v2439_v41 = vadd.f32 %v2438_v17, %v2390_v37  ;;  %2880 = vmatmul.bf16.vlgmr.msra.gmra.mxu3 %v2607_v36  ;;  %2978 = vmatmul.bf16.vlgmr.msra.gmra.mxu1 %v2607_v36  ;;  %v2491_v32 = vadd.f32 %v2490_v39, %v9277_v16 }
 0x29b   : > { %v2541_v42 = vpop.f32.mrf.mxu1 }
 0x29c   : > { %v2576_v28 = vmax.f32 %v2439_v41, 0.0  ;;  %v2540_v54 = vadd.f32 %v2539_v24, %v2491_v32 }
 0x29e   : > { %v2606_v44 = vpack.c.bf16 %v2576_v28, %v2574_v43  ;;  %v2579_v53 = vmax.f32 %v2540_v54, 0.0 }
 0x29f   : > { %v2392_v45 = vpop.f32.mrf.mxu2 }
 0x2a0   : > { %2831 = vmatmul.bf16.vlgmr.msra.gmra.mxu2 %v2606_v44  ;;  %2929 = vmatmul.bf16.vlgmr.msra.gmra.mxu0 %v2606_v44  ;;  %v2393_v51 = vadd.f32 %v2392_v45, %v9280_v20 }
 0x2a1   : > { %v2443_v46 = vpop.f32.mrf.mxu3  ;;  %v2492_v47 = vpop.f32.mrf.mxu0 }
 0x2a2   : > { %v2493_v48 = vadd.f32 %v2492_v47, %v9277_v16  ;;  %v2442_v57 = vadd.f32 %v2441_v38, %v2393_v51 }
 0x2a3   : > { %v2544_v49 = vpop.f32.mrf.mxu1 }
 0x2a4   : > { %v2542_v52 = vadd.f32 %v2541_v42, %v2493_v48  ;;  %v2578_v1 = vmax.f32 %v2442_v57, 0.0 }
 0x2a6   : > { %v2581_v55 = vmax.f32 %v2542_v52, 0.0 }
 0x2a7   : > { %v2394_v56 = vpop.f32.mrf.mxu2 }
 0x2a8   : > { %v2395_v59 = vadd.f32 %v2394_v56, %v9280_v20  ;;  %v2609_v60 = vpack.c.bf16 %v2581_v55, %v2579_v53 }
 0x2a9   : > { %v2446_v61 = vpop.f32.mrf.mxu3  ;;  %v2495_v62 = vpop.f32.mrf.mxu0 }
 0x2aa   : > { %v2444_v63 = vadd.f32 %v2443_v46, %v2395_v59  ;;  %2885 = vmatmul.bf16.gmra.mxu3 %v2609_v60  ;;  %2983 = vmatmul.bf16.gmra.mxu1 %v2609_v60  ;;  %v2496_v3 = vadd.f32 %v2495_v62, %v9277_v16 }
 0x2ab   : > { %v2546_v0 = vpop.f32.mrf.mxu1 }
 0x2ac   : > { %v2580_v2 = vmax.f32 %v2444_v63, 0.0  ;;  %v2545_v10 = vadd.f32 %v2544_v49, %v2496_v3 }
 0x2ae   : > { %v2608_v58 = vpack.c.bf16 %v2580_v2, %v2578_v1  ;;  %v2583_v13 = vmax.f32 %v2545_v10, 0.0  ;;  %v6851_v1 = vld [vmem:[#allocation6 + $0x18] sm:$0xf0] }
 0x2af   : > { %v2397_v4 = vpop.f32.mrf.mxu2 }
 0x2b0   : > { %2836 = vmatmul.bf16.gmra.mxu2 %v2608_v58  ;;  %2934 = vmatmul.bf16.gmra.mxu0 %v2608_v58  ;;  %v2398_v5 = vadd.f32 %v2397_v4, %v9280_v20 }
 0x2b1   : > { %v2448_v7 = vpop.f32.mrf.mxu3  ;;  %v2497_v8 = vpop.f32.mrf.mxu0 }
 0x2b2   : > { %v2498_v11 = vadd.f32 %v2497_v8, %v9277_v16  ;;  %v2447_v9 = vadd.f32 %v2446_v61, %v2398_v5 }
 0x2b3   : > { %v2549_v12 = vpop.f32.mrf.mxu1 }
 0x2b4   : > { %v2547_v6 = vadd.f32 %v2546_v0, %v2498_v11  ;;  %v2582_v26 = vmax.f32 %v2447_v9, 0.0  ;;  %v7743_v0 = vld [vmem:[#allocation6 + $0x14] sm:$0xf] }
 0x2b5   : > { %v6854_v3 = vor.u32 %v7743_v0, %v6851_v1 }
 0x2b6   : > { %v2585_v50 = vmax.f32 %v2547_v6, 0.0 }
 0x2b7   : > { %v2399_v18 = vpop.f32.mrf.mxu2  ;;  %3118 = vmatpush.bf16.msrb.mxu3 %v6854_v3 }
 0x2b8   : > { %v2400_v17 = vadd.f32 %v2399_v18, %v9280_v20  ;;  %v2611_v21 = vpack.c.bf16 %v2585_v50, %v2583_v13 }
 0x2b9   : > { %v2451_v22 = vpop.f32.mrf.mxu3  ;;  %v2500_v23 = vpop.f32.mrf.mxu0 }
 0x2ba   : > { %v2449_v24 = vadd.f32 %v2448_v7, %v2400_v17  ;;  %2890 = vmatmul.bf16.gmra.mxu3 %v2611_v21  ;;  %2988 = vmatmul.bf16.gmra.mxu1 %v2611_v21  ;;  %v2501_v30 = vadd.f32 %v2500_v23, %v9277_v16 }
 0x2bb   : > { %v2551_v25 = vpop.f32.mrf.mxu1 }
 0x2bc   : > { %v2584_v29 = vmax.f32 %v2449_v24, 0.0  ;;  %v2550_v35 = vadd.f32 %v2549_v12, %v2501_v30 }
 0x2be   : > { %v2610_v31 = vpack.c.bf16 %v2584_v29, %v2582_v26  ;;  %v2587_v40 = vmax.f32 %v2550_v35, 0.0 }
 0x2bf   : > { %v2402_v33 = vpop.f32.mrf.mxu2 }
 0x2c0   : > { %2841 = vmatmul.bf16.gmra.mxu2 %v2610_v31  ;;  %2939 = vmatmul.bf16.gmra.mxu0 %v2610_v31  ;;  %v2403_v38 = vadd.f32 %v2402_v33, %v9280_v20 }
 0x2c1   : > { %v2453_v34 = vpop.f32.mrf.mxu3  ;;  %v2502_v27 = vpop.f32.mrf.mxu0 }
 0x2c2   : > { %v2503_v36 = vadd.f32 %v2502_v27, %v9277_v16  ;;  %v2452_v43 = vadd.f32 %v2451_v22, %v2403_v38 }
 0x2c3   : > { %v2554_v37 = vpop.f32.mrf.mxu1 }
 0x2c4   : > { %v2552_v39 = vadd.f32 %v2551_v25, %v2503_v36  ;;  %v2586_v54 = vmax.f32 %v2452_v43, 0.0 }
 0x2c6   : > { %v2589_v41 = vmax.f32 %v2552_v39, 0.0 }
 0x2c7   : > { %v2404_v42 = vpop.f32.mrf.mxu2 }
 0x2c8   : > { %v2405_v28 = vadd.f32 %v2404_v42, %v9280_v20  ;;  %v2613_v44 = vpack.c.bf16 %v2589_v41, %v2587_v40  ;;  %v7741_v40 = vld [vmem:[#allocation6 + $0x4] sm:$0xf]  ;;  %v6843_v41 = vld [vmem:[#allocation6 + $0x8] sm:$0xf0] }
 0x2c9   : > { %v2456_v32 = vpop.f32.mrf.mxu3  ;;  %v2505_v45 = vpop.f32.mrf.mxu0  ;;  %v6846_v43 = vor.u32 %v7741_v40, %v6843_v41  ;;  %v8136_v41 = vld [vmem:[%s8724_s23 + $0x8] sm:$0xff] }
 0x2ca   : > { %v2454_v46 = vadd.f32 %v2453_v34, %v2405_v28  ;;  %2895 = vmatmul.bf16.gmra.mxu3 %v2613_v44  ;;  %2993 = vmatmul.bf16.gmra.mxu1 %v2613_v44  ;;  %v2506_v49 = vadd.f32 %v2505_v45, %v9277_v16 }
 0x2cb   : > { %v2556_v47 = vpop.f32.mrf.mxu1  ;;  %3119 = vmatpush.bf16.msrb.mxu3 %v6846_v43  ;;  %v7812_v43 = vld [vmem:[#allocation9 + $0xf4] sm:$0xf0] }
 0x2cc   : > { %v2588_v48 = vmax.f32 %v2454_v46, 0.0  ;;  %v2555_v56 = vadd.f32 %v2554_v37, %v2506_v49 }
 0x2ce   : > { %v2612_v51 = vpack.c.bf16 %v2588_v48, %v2586_v54  ;;  %v2591_v62 = vmax.f32 %v2555_v56, 0.0 }
 0x2cf   : > { %v2407_v52 = vpop.f32.mrf.mxu2 }
 0x2d0   : > { %2846 = vmatmul.bf16.gmra.mxu2 %v2612_v51  ;;  %2944 = vmatmul.bf16.gmra.mxu0 %v2612_v51  ;;  %v2408_v60 = vadd.f32 %v2407_v52, %v9280_v20 }
 0x2d1   : > { %v2458_v53 = vpop.f32.mrf.mxu3  ;;  %v2507_v55 = vpop.f32.mrf.mxu0 }
 0x2d2   : > { %v2508_v57 = vadd.f32 %v2507_v55, %v9277_v16  ;;  %v2457_v58 = vadd.f32 %v2456_v32, %v2408_v60 }
 0x2d3   : > { %v2559_v59 = vpop.f32.mrf.mxu1 }
 0x2d4   : > { %v2557_v61 = vadd.f32 %v2556_v47, %v2508_v57  ;;  %v2590_v5 = vmax.f32 %v2457_v58, 0.0 }
 0x2d6   : > { %v2593_v63 = vmax.f32 %v2557_v61, 0.0 }
 0x2d7   : > { %v2409_v2 = vpop.f32.mrf.mxu2 }
 0x2d8   : > { %v2410_v4 = vadd.f32 %v2409_v2, %v9280_v20  ;;  %v2615_v7 = vpack.c.bf16 %v2593_v63, %v2591_v62  ;;  %v6865_v62 = vld [vmem:[#allocation6 + $0x30] sm:$0xf]  ;;  %v7748_v63 = vld [vmem:[#allocation6 + $0x34] sm:$0x30] }
 0x2d9   : > { %v2461_v8 = vpop.f32.mrf.mxu3  ;;  %v2510_v10 = vpop.f32.mrf.mxu0  ;;  %v6866_v2 = vor.u32 %v7748_v63, %v6865_v62  ;;  %v7810_v62 = vld [vmem:[#allocation9 + $0xe4] sm:$0xf0] }
 0x2da   : > { %v2459_v11 = vadd.f32 %v2458_v53, %v2410_v4  ;;  %2900 = vmatmul.bf16.gmra.mxu3 %v2615_v7  ;;  %2998 = vmatmul.bf16.gmra.mxu1 %v2615_v7  ;;  %v2511_v13 = vadd.f32 %v2510_v10, %v9277_v16  ;;  %v6857_v10 = vld [vmem:[#allocation6 + $0x20] sm:$0xf] }
 0x2db   : > { %v2561_v12 = vpop.f32.mrf.mxu1  ;;  %v3058_v58 = vsel %vm1143_vm0, %v6866_v2, 0 }
 0x2dc   : > { %v2592_v6 = vmax.f32 %v2459_v11, 0.0  ;;  %v2560_v19 = vadd.f32 %v2559_v59, %v2511_v13  ;;  %3067 = vmatpush.bf16.msra.mxu2 %v3058_v58  ;;  %v7746_v11 = vld [vmem:[#allocation6 + $0x24] sm:$0xf0] }
 0x2de   : > { %v2614_v50 = vpack.c.bf16 %v2592_v6, %v2590_v5  ;;  %v2595_v23 = vmax.f32 %v2560_v19, 0.0  ;;  %v6858_v6 = vor.u32 %v7746_v11, %v6857_v10  ;;  %v6937_v11 = vld [vmem:[#allocation9 + $0x60] sm:$0xf] }
 0x2df   : > { %v2412_v14 = vpop.f32.mrf.mxu2 }
 0x2e0   : > { %2851 = vmatmul.bf16.gmra.mxu2 %v2614_v50  ;;  %2949 = vmatmul.bf16.gmra.mxu0 %v2614_v50  ;;  %v2413_v17 = vadd.f32 %v2412_v14, %v9280_v20 }
 0x2e1   : > { %v2463_v15 = vpop.f32.mrf.mxu3  ;;  %v2512_v18 = vpop.f32.mrf.mxu0  ;;  %3068 = vmatpush.bf16.msra.mxu2 %v6858_v6 }
 0x2e2   : > { %v2513_v9 = vadd.f32 %v2512_v18, %v9277_v16  ;;  %v2462_v26 = vadd.f32 %v2461_v8, %v2413_v17  ;;  %v7744_v18 = vld [vmem:[#allocation6 + $0x14] sm:$0xf0] }
 0x2e3   : > { %v2564_v22 = vpop.f32.mrf.mxu1 }
 0x2e4   : > { %v2562_v21 = vadd.f32 %v2561_v12, %v2513_v9  ;;  %v2594_v27 = vmax.f32 %v2462_v26, 0.0 }
 0x2e6   : > { %v2597_v24 = vmax.f32 %v2562_v21, 0.0 }
 0x2e7   : > { %v2414_v25 = vpop.f32.mrf.mxu2 }
 0x2e8   : > { %v2415_v29 = vadd.f32 %v2414_v25, %v9280_v20  ;;  %v2617_v30 = vpack.c.bf16 %v2597_v24, %v2595_v23  ;;  %v6841_v23 = vld [vmem:[#allocation6] sm:$0xf]  ;;  %v7742_v24 = vld [vmem:[#allocation6 + $0x4] sm:$0xf0] }
 0x2e9   : > { %v2515_v31 = vpop.f32.mrf.mxu0  ;;  %v2466_v34 = vpop.f32.mrf.mxu3 }
 0x2ea   : > { %v2464_v33 = vadd.f32 %v2463_v15, %v2415_v29  ;;  %2905 = vmatmul.bf16.gmra.mxu3 %v2617_v30  ;;  %3003 = vmatmul.bf16.gmra.mxu1 %v2617_v30  ;;  %v2516_v36 = vadd.f32 %v2515_v31, %v9277_v16  ;;  %v6849_v15 = vld [vmem:[#allocation6 + $0x10] sm:$0xf]  ;;  %v6842_v29 = vor.u32 %v7742_v24, %v6841_v23  ;;  %v8135_v31 = vld [vmem:[%s8724_s23] sm:$0xff]  ;;  %v7792_v24 = vld [vmem:[#allocation9 + $0x54] sm:$0xf0] }
 0x2eb   : > { %v2566_v38 = vpop.f32.mrf.mxu1  ;;  %v6929_v23 = vld [vmem:[#allocation9 + $0x50] sm:$0xf] }
 0x2ec   : > { %v2596_v35 = vmax.f32 %v2464_v33, 0.0  ;;  %v2565_v28 = vadd.f32 %v2564_v22, %v2516_v36 }
 0x2ee   : > { %v2616_v37 = vpack.c.bf16 %v2596_v35, %v2594_v27  ;;  %v2599_v47 = vmax.f32 %v2565_v28, 0.0  ;;  %v7795_v27 = vld [vmem:[#allocation9 + $0x74] sm:$0xf]  ;;  %v6947_v35 = vld [vmem:[#allocation9 + $0x78] sm:$0xf0] }
 0x2ef   : > { %v2417_v39 = vpop.f32.mrf.mxu2 }
 0x2f0   : > { %2856 = vmatmul.bf16.gmra.mxu2 %v2616_v37  ;;  %2954 = vmatmul.bf16.gmra.mxu0 %v2616_v37  ;;  %v2418_v32 = vadd.f32 %v2417_v39, %v9280_v20  ;;  %v6950_v37 = vor.u32 %v7795_v27, %v6947_v35  ;;  %v7011_v39 = vld [vmem:[#allocation9 + $0xf8] sm:$0xf0]  ;;  %v8139_v35 = vld [vmem:[%s8724_s23 + $0x20] sm:$0xff] }
 0x2f1   : > { %v2517_v42 = vpop.f32.mrf.mxu0  ;;  %v2468_v46 = vpop.f32.mrf.mxu3 }
 0x2f2   : > { %v2518_v44 = vadd.f32 %v2517_v42, %v9277_v16  ;;  %v2467_v49 = vadd.f32 %v2466_v34, %v2418_v32  ;;  %v7009_v42 = vld [vmem:[#allocation9 + $0xf0] sm:$0xf] }
 0x2f3   : > { %v2569_v53 = vpop.f32.mrf.mxu1 }
 0x2f4   : > { %v2567_v45 = vadd.f32 %v2566_v38, %v2518_v44  ;;  %v2598_v57 = vmax.f32 %v2467_v49, 0.0  ;;  %v7811_v38 = vld [vmem:[#allocation9 + $0xf4] sm:$0xf]  ;;  %v7010_v44 = vor.u32 %v7812_v43, %v7009_v42  ;;  %v6921_v42 = vld [vmem:[#allocation9 + $0x40] sm:$0xf] }
 0x2f5   : > { %v7014_v40 = vor.u32 %v7811_v38, %v7011_v39  ;;  %v7790_v43 = vld [vmem:[#allocation9 + $0x44] sm:$0xf0] }
 0x2f6   : > { %v2601_v54 = vmax.f32 %v2567_v45, 0.0  ;;  %3493 = vmatpush.bf16.msrb.mxu1 %v7010_v44 }
 0x2f7   : > { %v2419_v48 = vpop.f32.mrf.mxu2  ;;  %3591 = vmatpush.bf16.msra.mxu3 %v7014_v40 }
 0x2f8   : > { %v2420_v51 = vadd.f32 %v2419_v48, %v9280_v20  ;;  %v2619_v52 = vpack.c.bf16 %v2601_v54, %v2599_v47  ;;  %v7793_v54 = vld [vmem:[#allocation9 + $0x64] sm:$0xf]  ;;  %v6939_v48 = vld [vmem:[#allocation9 + $0x68] sm:$0xf0] }
 0x2f9   : > { %v2520_v55 = vpop.f32.mrf.mxu0  ;;  %v2471_v0 = vpop.f32.mrf.mxu3 }
 0x2fa   : > { %v2469_v56 = vadd.f32 %v2468_v46, %v2420_v51  ;;  %2910 = vmatmul.bf16.gmra.mxu3 %v2619_v52  ;;  %3008 = vmatmul.bf16.gmra.mxu1 %v2619_v52  ;;  %v2521_v60 = vadd.f32 %v2520_v55, %v9277_v16  ;;  %v6942_v51 = vor.u32 %v7793_v54, %v6939_v48  ;;  %v7809_v52 = vld [vmem:[#allocation9 + $0xe4] sm:$0xf]  ;;  %v6915_v54 = vld [vmem:[#allocation9 + $0x38] sm:$0xf0] }
 0x2fb   : > { %v2571_v8 = vpop.f32.mrf.mxu1 }
 0x2fc   : > { %v2600_v59 = vmax.f32 %v2469_v56, 0.0  ;;  %v2570_v4 = vadd.f32 %v2569_v53, %v2521_v60  ;;  %v7003_v53 = vld [vmem:[#allocation9 + $0xe8] sm:$0xf0]  ;;  %v6945_v56 = vld [vmem:[#allocation9 + $0x70] sm:$0xf] }
 0x2fd   : > { %v7006_v55 = vor.u32 %v7809_v52, %v7003_v53  ;;  %v8137_v60 = vld [vmem:[%s8724_s23 + $0x10] sm:$0xff]  ;;  %v6979_v52 = vld [vmem:[#allocation9 + $0xb8] sm:$0xf0] }
 0x2fe   : > { %v2618_v61 = vpack.c.bf16 %v2600_v59, %v2598_v57  ;;  %v2603_v13 = vmax.f32 %v2570_v4, 0.0  ;;  %v7796_v57 = vld [vmem:[#allocation9 + $0x74] sm:$0xf0]  ;;  %v7791_v4 = vld [vmem:[#allocation9 + $0x54] sm:$0xf] }
 0x2ff   : > { %v2422_v1 = vpop.f32.mrf.mxu2  ;;  %v6946_v59 = vor.u32 %v7796_v57, %v6945_v56  ;;  %3592 = vmatpush.bf16.msra.mxu3 %v7006_v55  ;;  %v8140_v55 = vld [vmem:[%s8724_s23 + $0x28] sm:$0xff]  ;;  %v6977_v56 = vld [vmem:[#allocation9 + $0xb0] sm:$0xf]  ;;  %v7804_v57 = vld [vmem:[#allocation9 + $0xb4] sm:$0xf0] }
 0x300   : > { %2861 = vmatmul.bf16.gmra.mxu2 %v2618_v61  ;;  %2959 = vmatmul.bf16.gmra.mxu0 %v2618_v61  ;;  %v2423_v12 = vadd.f32 %v2422_v1, %v9280_v20  ;;  %v7001_v61 = vld [vmem:[#allocation9 + $0xe0] sm:$0xf] }
 0x301   : > { %v2522_v3 = vpop.f32.mrf.mxu0  ;;  %v2473_v21 = vpop.f32.mrf.mxu3  ;;  %3444 = vmatpush.bf16.msrb.mxu0 %v6946_v59 }
 0x302   : > { %v2523_v7 = vadd.f32 %v2522_v3, %v9277_v16  ;;  %v2472_v19 = vadd.f32 %v2471_v0, %v2423_v12  ;;  %v6850_v16 = vor.u32 %v7744_v18, %v6849_v15  ;;  %v7002_v0 = vor.u32 %v7810_v62, %v7001_v61  ;;  %v7794_v12 = vld [vmem:[#allocation9 + $0x64] sm:$0xf0]  ;;  %v6993_v15 = vld [vmem:[#allocation9 + $0xd0] sm:$0xf]  ;;  %v7808_v18 = vld [vmem:[#allocation9 + $0xd4] sm:$0xf0] }
 0x303   : > { %v6938_v6 = vor.u32 %v7794_v12, %v6937_v11  ;;  %v6913_v62 = vld [vmem:[#allocation9 + $0x30] sm:$0xf]  ;;  %v7801_v11 = vld [vmem:[#allocation9 + $0xa4] sm:$0xf]  ;;  %v6971_v12 = vld [vmem:[#allocation9 + $0xa8] sm:$0xf0] }
 0x304   : > { %v2572_v5 = vadd.f32 %v2571_v8, %v2523_v7  ;;  %3069 = vmatpush.bf16.msra.mxu2 %v6850_v16  ;;  %v2602_v25 = vmax.f32 %v2472_v19, 0.0  ;;  %3494 = vmatpush.bf16.msrb.mxu1 %v7002_v0  ;;  %v6931_v7 = vld [vmem:[#allocation9 + $0x58] sm:$0xf0] }
 0x305   : > { %v6934_v10 = vor.u32 %v7791_v4, %v6931_v7  ;;  %3445 = vmatpush.bf16.msrb.mxu0 %v6938_v6  ;;  %v7785_v4 = vld [vmem:[#allocation9 + $0x24] sm:$0xf]  ;;  %v6907_v7 = vld [vmem:[#allocation9 + $0x28] sm:$0xf0]  ;;  %v6974_v6 = vor.u32 %v7801_v11, %v6971_v12 }
 0x306   : > { %v2605_v50 = vmax.f32 %v2572_v5, 0.0  ;;  %v7807_v5 = vld [vmem:[#allocation9 + $0xd4] sm:$0xf] }
 0x307   : > { %v2424_v14 = vpop.f32.mrf.mxu2 }
 0x308   : > { %v2425_v9 = vadd.f32 %v2424_v14, %v9280_v20  ;;  %v2621_v17 = vpack.c.bf16 %v2605_v50, %v2603_v13  ;;  %3070 = vmatpush.bf16.msra.mxu2 %v6842_v29  ;;  %v6995_v13 = vld [vmem:[#allocation9 + $0xd8] sm:$0xf0]  ;;  %v6930_v29 = vor.u32 %v7792_v24, %v6929_v23 }
 0x309   : > { %v6998_v50 = vor.u32 %v7807_v5, %v6995_v13  ;;  %v8138_v14 = vld [vmem:[%s8724_s23 + $0x18] sm:$0xff]  ;;  %v6969_v5 = vld [vmem:[#allocation9 + $0xa0] sm:$0xf]  ;;  %v7802_v13 = vld [vmem:[#allocation9 + $0xa4] sm:$0xf0] }
 0x30a   : > { %v2474_v22 = vadd.f32 %v2473_v21, %v2425_v9  ;;  %2915 = vmatmul.bf16.gmra.mxu3 %v2621_v17  ;;  %3013 = vmatmul.bf16.gmra.mxu1 %v2621_v17  ;;  %v6994_v9 = vor.u32 %v7808_v18, %v6993_v15 }
 0x30b   : > { %3593 = vmatpush.bf16.msra.mxu3 %v6998_v50  ;;  %3446 = vmatpush.bf16.msrb.mxu0 %v6930_v29  ;;  %v6970_v50 = vor.u32 %v7802_v13, %v6969_v5  ;;  %v6899_v29 = vld [vmem:[#allocation9 + $0x18] sm:$0xf0]  ;;  %v2662_v13 = vld [vmem:[%s9903_s12] sm:$0x3] }
 0x30c   : > { %v2604_v26 = vmax.f32 %v2474_v22, 0.0  ;;  %3495 = vmatpush.bf16.msrb.mxu1 %v6994_v9 }
 0x30e   : > { %v2620_v30 = vpack.c.bf16 %v2604_v26, %v2602_v25  ;;  %v7789_v25 = vld [vmem:[#allocation9 + $0x44] sm:$0xf] }
 0x310   : > { %2866 = vmatmul.bf16.gmra.mxu2 %v2620_v30 }
 0x317   : > { %v2979_v18 = vpop.f32.mrf.mxu1 }
 0x31a   : > { %6879 = vmatmul.msk.bf16.vlgmr.msrb.gmra.mxu3 %vm1118_vm1, %v8135_v31 }
 0x31d   : > { %v2881_v20 = vpop.f32.mrf.mxu3  ;;  %v2930_v9 = vpop.f32.mrf.mxu0 }
 0x320   : > { %2964 = vmatmul.bf16.vlgmr.msrb.gmra.mxu2 %v2620_v30  ;;  %v6923_v30 = vld [vmem:[#allocation9 + $0x48] sm:$0xf0] }
 0x321   : > { %3542 = vmatpush.bf16.msrb.mxu2 %v6950_v37  ;;  %v7806_v37 = vld [vmem:[#allocation9 + $0xc4] sm:$0xf0] }
 0x323   : > { %v2832_v33 = vpop.f32.mrf.mxu2 }
 0x324   : > { %v9317_v34 = vadd.f32 %v2881_v20, %v2832_v33  ;;  %v7805_v20 = vld [vmem:[#allocation9 + $0xc4] sm:$0xf]  ;;  %v6987_v33 = vld [vmem:[#allocation9 + $0xc8] sm:$0xf0] }
 0x325   : > { %v2883_v36 = vpop.f32.mrf.mxu3  ;;  %3543 = vmatpush.bf16.msrb.mxu2 %v6942_v51  ;;  %v6990_v27 = vor.u32 %v7805_v20, %v6987_v33  ;;  %v7803_v51 = vld [vmem:[#allocation9 + $0xb4] sm:$0xf]  ;;  %v6963_v33 = vld [vmem:[#allocation9 + $0x98] sm:$0xf0] }
 0x326   : > { %v6982_v53 = vor.u32 %v7803_v51, %v6979_v52  ;;  %v7799_v20 = vld [vmem:[#allocation9 + $0x94] sm:$0xf]  ;;  %v6897_v51 = vld [vmem:[#allocation9 + $0x10] sm:$0xf]  ;;  %v7784_v52 = vld [vmem:[#allocation9 + $0x14] sm:$0xf0] }
 0x327   : > { %3594 = vmatpush.bf16.msra.mxu3 %v6990_v27  ;;  %v6961_v27 = vld [vmem:[#allocation9 + $0x90] sm:$0xf] }
 0x329   : > { %3544 = vmatpush.bf16.msrb.mxu2 %v6934_v10  ;;  %v6910_v10 = vor.u32 %v7785_v4, %v6907_v7  ;;  %v6889_v4 = vld [vmem:[#allocation9] sm:$0xf]  ;;  %v7782_v7 = vld [vmem:[#allocation9 + $0x4] sm:$0xf0] }
 0x32a   : > { %6880 = vmatmul.msk.bf16.gmra.mxu3 %vm1118_vm1, %v8136_v41  ;;  %v6890_v12 = vor.u32 %v7782_v7, %v6889_v4  ;;  %v7139_v4 = vld [vmem:[#allocation10 + $0xf8] sm:$0xf0]  ;;  %v7073_v7 = vld [vmem:[#allocation10 + $0x70] sm:$0xf] }
 0x32b   : > { %v2834_v28 = vpop.f32.mrf.mxu2  ;;  %3595 = vmatpush.bf16.msra.mxu3 %v6982_v53 }
 0x32c   : > { %v9321_v32 = vadd.f32 %v2883_v36, %v2834_v28  ;;  %v6985_v36 = vld [vmem:[#allocation9 + $0xc0] sm:$0xf]  ;;  %v6922_v28 = vor.u32 %v7790_v43, %v6921_v42  ;;  %v7798_v42 = vld [vmem:[#allocation9 + $0x84] sm:$0xf0]  ;;  %v7797_v43 = vld [vmem:[#allocation9 + $0x84] sm:$0xf] }
 0x32d   : > { %v2886_v45 = vpop.f32.mrf.mxu3  ;;  %v6986_v39 = vor.u32 %v7806_v37, %v6985_v36  ;;  %v7800_v36 = vld [vmem:[#allocation9 + $0x94] sm:$0xf0]  ;;  %v2981_v37 = vpop.f32.mrf.mxu1 }
 0x32e   : > { %3447 = vmatpush.bf16.msrb.mxu0 %v6922_v28  ;;  %v8142_v28 = vld [vmem:[%s8724_s23 + $0x38] sm:$0xff] }
 0x32f   : > { %3496 = vmatpush.bf16.msrb.mxu1 %v6986_v39  ;;  %3596 = vmatpush.bf16.msra.mxu3 %v6974_v6  ;;  %v2932_v39 = vpop.f32.mrf.mxu0 }
 0x330   : > { %6871 = vmatmul.msk.bf16.vlgmr.msra.gmra.mxu2 %vm1118_vm1, %v8135_v31  ;;  %v6926_v31 = vor.u32 %v7789_v25, %v6923_v30 }
 0x332   : > { %3545 = vmatpush.bf16.msrb.mxu2 %v6926_v31 }
 0x333   : > { %v2837_v46 = vpop.f32.mrf.mxu2 }
 0x334   : > { %v9324_v47 = vadd.f32 %v2886_v45, %v2837_v46  ;;  %v7787_v46 = vld [vmem:[#allocation9 + $0x34] sm:$0xf] }
 0x335   : > { %v2888_v49 = vpop.f32.mrf.mxu3 }
 0x33a   : > { %6881 = vmatmul.msk.bf16.gmra.mxu3 %vm1118_vm1, %v8137_v60 }
 0x33b   : > { %v2839_v63 = vpop.f32.mrf.mxu2 }
 0x33c   : > { %v9328_v1 = vadd.f32 %v2888_v49, %v2839_v63  ;;  %v6918_v49 = vor.u32 %v7787_v46, %v6915_v54  ;;  %v7788_v63 = vld [vmem:[#allocation9 + $0x34] sm:$0xf0]  ;;  %v6955_v46 = vld [vmem:[#allocation9 + $0x88] sm:$0xf0] }
 0x33d   : > { %v2891_v2 = vpop.f32.mrf.mxu3  ;;  %v6914_v0 = vor.u32 %v7788_v63, %v6913_v62  ;;  %v7781_v63 = vld [vmem:[#allocation9 + $0x4] sm:$0xf] }
 0x33e   : > { %3546 = vmatpush.bf16.msrb.mxu2 %v6918_v49  ;;  %v6958_v49 = vor.u32 %v7797_v43, %v6955_v46 }
 0x33f   : > { %3448 = vmatpush.bf16.msrb.mxu0 %v6914_v0  ;;  %v6891_v0 = vld [vmem:[#allocation9 + $0x8] sm:$0xf0] }
 0x340   : > { %6872 = vmatmul.msk.bf16.gmra.mxu2 %vm1118_vm1, %v8136_v41 }
 0x342   : > { %3547 = vmatpush.bf16.msrb.mxu2 %v6910_v10 }
 0x343   : > { %v2842_v3 = vpop.f32.mrf.mxu2 }
 0x344   : > { %v9331_v58 = vadd.f32 %v2891_v2, %v2842_v3 }
 0x345   : > { %v2893_v8 = vpop.f32.mrf.mxu3 }
 0x34a   : > { %6882 = vmatmul.msk.bf16.gmra.mxu3 %vm1118_vm1, %v8138_v14 }
 0x34b   : > { %v2844_v19 = vpop.f32.mrf.mxu2 }
 0x34c   : > { %v9335_v17 = vadd.f32 %v2893_v8, %v2844_v19 }
 0x34d   : > { %v2896_v16 = vpop.f32.mrf.mxu3 }
 0x350   : > { %6873 = vmatmul.msk.bf16.gmra.mxu2 %vm1118_vm1, %v8137_v60  ;;  %v6978_v60 = vor.u32 %v7804_v57, %v6977_v56  ;;  %v2984_v56 = vpop.f32.mrf.mxu1  ;;  %v2935_v57 = vpop.f32.mrf.mxu0 }
 0x352   : > { %3497 = vmatpush.bf16.msrb.mxu1 %v6978_v60 }
 0x353   : > { %v2847_v21 = vpop.f32.mrf.mxu2 }
 0x354   : > { %v9338_v22 = vadd.f32 %v2896_v16, %v2847_v21  ;;  %v6905_v16 = vld [vmem:[#allocation9 + $0x20] sm:$0xf]  ;;  %v7786_v21 = vld [vmem:[#allocation9 + $0x24] sm:$0xf0] }
 0x355   : > { %v2898_v26 = vpop.f32.mrf.mxu3  ;;  %v6906_v24 = vor.u32 %v7786_v21, %v6905_v16  ;;  %v2982_v21 = vadd.f32 %v2981_v37, %v2932_v39 }
 0x356   : > { %3498 = vmatpush.bf16.msrb.mxu1 %v6970_v50  ;;  %v2980_v50 = vadd.f32 %v2979_v18, %v2930_v9 }
 0x357   : > { %3449 = vmatpush.bf16.msrb.mxu0 %v6906_v24 }
 0x358   : > { %v2986_v10 = vpop.f32.mrf.mxu1  ;;  %v2937_v5 = vpop.f32.mrf.mxu0 }
 0x35a   : > { %6883 = vmatmul.msk.bf16.gmra.mxu3 %vm1118_vm1, %v8139_v35 }
 0x35b   : > { %v2849_v38 = vpop.f32.mrf.mxu2 }
 0x35c   : > { %v9342_v40 = vadd.f32 %v2898_v26, %v2849_v38  ;;  %v7783_v26 = vld [vmem:[#allocation9 + $0x14] sm:$0xf]  ;;  %v6962_v38 = vor.u32 %v7800_v36, %v6961_v27 }
 0x35d   : > { %v2901_v41 = vpop.f32.mrf.mxu3  ;;  %v6902_v31 = vor.u32 %v7783_v26, %v6899_v29 }
 0x35e   : > { %3499 = vmatpush.bf16.msrb.mxu1 %v6962_v38  ;;  %v2985_v38 = vadd.f32 %v2984_v56, %v2935_v57  ;;  %v7075_v56 = vld [vmem:[#allocation10 + $0x78] sm:$0xf0] }
 0x35f   : > { %3548 = vmatpush.bf16.msrb.mxu2 %v6902_v31 }
 0x360   : > { %6874 = vmatmul.msk.bf16.gmra.mxu2 %vm1118_vm1, %v8138_v14  ;;  %v8141_v14 = vld [vmem:[%s8724_s23 + $0x30] sm:$0xff]  ;;  %v2940_v31 = vpop.f32.mrf.mxu0  ;;  %s9956_s23 = sld [smem:[#allocation22_spill]] }
 0x363   : > { %v2852_v44 = vpop.f32.mrf.mxu2 }
 0x364   : > { %v9345_v45 = vadd.f32 %v2901_v41, %v2852_v44  ;;  %v6953_v41 = vld [vmem:[#allocation9 + $0x80] sm:$0xf] }
 0x365   : > { %v9347_v48 = vpop.f32.mrf.mxu3  ;;  %v6954_v44 = vor.u32 %v7798_v42, %v6953_v41  ;;  %v2987_v42 = vadd.f32 %v2986_v10, %v2937_v5 }
 0x366   : > { %s9681_s2 = scalar_lea.vmem %s9956_s23, %s6242_s8 }
 0x367   : > { %3500 = vmatpush.bf16.msrb.mxu1 %v6954_v44 }
 0x368   : > { %v2942_v41 = vpop.f32.mrf.mxu0 }
 0x36a   : > { %6884 = vmatmul.msk.bf16.gmra.mxu3 %vm1118_vm1, %v8140_v55 }
 0x36b   : > { %v9351_v59 = vpop.f32.mrf.mxu2 }
 0x36d   : > { %v2906_v61 = vpop.f32.mrf.mxu3 }
 0x370   : > { %6875 = vmatmul.msk.bf16.gmra.mxu2 %vm1118_vm1, %v8139_v35  ;;  %v6966_v35 = vor.u32 %v7799_v20, %v6963_v33  ;;  %v9397_v57 = vpop.f32.mrf.mxu0 }
 0x372   : > { %3597 = vmatpush.bf16.msra.mxu3 %v6966_v35 }
 0x373   : > { %v2857_v2 = vpop.f32.mrf.mxu2 }
 0x374   : > { %v9354_v3 = vadd.f32 %v2906_v61, %v2857_v2  ;;  %v6894_v2 = vor.u32 %v7781_v63, %v6891_v0 }
 0x375   : > { %v9356_v8 = vpop.f32.mrf.mxu3 }
 0x376   : > { %3598 = vmatpush.bf16.msra.mxu3 %v6958_v49  ;;  %3549 = vmatpush.bf16.msrb.mxu2 %v6894_v2  ;;  %v9392_v49 = vperm.slane %v2662_v13, 0  ;;  %v7843_v2 = vld [vmem:[#allocation10 + $0xf4] sm:$0xf] }
 0x377   : > { %v7142_v5 = vor.u32 %v7843_v2, %v7139_v4  ;;  %v7826_v4 = vld [vmem:[#allocation10 + $0x64] sm:$0xf0] }
 0x37a   : > { %6885 = vmatmul.msk.bf16.gmra.mxu3 %vm1118_vm1, %v8141_v14 }
 0x37b   : > { %v9360_v15 = vpop.f32.mrf.mxu2  ;;  %4033 = vmatpush.bf16.msrb.mxu3 %v7142_v5 }
 0x37d   : > { %v2911_v19 = vpop.f32.mrf.mxu3 }
 0x380   : > { %6876 = vmatmul.msk.bf16.gmra.mxu2 %vm1118_vm1, %v8140_v55  ;;  %v6898_v55 = vor.u32 %v7784_v52, %v6897_v51 }
 0x382   : > { %3450 = vmatpush.bf16.msrb.mxu0 %v6898_v55 }
 0x383   : > { %v2862_v23 = vpop.f32.mrf.mxu2 }
 0x384   : > { %v9363_v25 = vadd.f32 %v2911_v19, %v2862_v23  ;;  %v9382_v19 = vperm.slane %v2662_v13, 1  ;;  %v2989_v23 = vpop.f32.mrf.mxu1 }
 0x385   : > { %v9365_v30 = vpop.f32.mrf.mxu3 }
 0x386   : > { %3451 = vmatpush.bf16.msrb.mxu0 %v6890_v12 }
 0x38a   : > { %6886 = vmatmul.msk.bf16.gmra.mxu3 %vm1118_vm1, %v8142_v28 }
 0x38b   : > { %v9369_v54 = vpop.f32.mrf.mxu2 }
 0x38c   : > { %v2991_v36 = vpop.f32.mrf.mxu1 }
 0x38d   : > { %v2916_v53 = vpop.f32.mrf.mxu3 }
 0x390   : > { %6877 = vmatmul.msk.bf16.gmra.mxu2 %vm1118_vm1, %v8141_v14 }
 0x393   : > { %v2867_v60 = vpop.f32.mrf.mxu2 }
 0x394   : > { %v9372_v61 = vadd.f32 %v2916_v53, %v2867_v60  ;;  %v9395_v52 = vpop.f32.mrf.mxu1  ;;  %v7827_v60 = vld [vmem:[#allocation10 + $0x74] sm:$0xf] }
 0x395   : > { %v9374_v62 = vpop.f32.mrf.mxu3  ;;  %v7078_v0 = vor.u32 %v7827_v60, %v7075_v56  ;;  %v7841_v60 = vld [vmem:[#allocation10 + $0xe4] sm:$0xf]  ;;  %v7131_v56 = vld [vmem:[#allocation10 + $0xe8] sm:$0xf0]  ;;  %v2995_v5 = vadd.f32 %v9395_v52, %v9397_v57 }
 0x396   : > { %v7134_v2 = vor.u32 %v7841_v60, %v7131_v56 }
 0x397   : > { %3984 = vmatpush.bf16.msra.mxu2 %v7078_v0 }
 0x398   : > { %4034 = vmatpush.bf16.msrb.mxu3 %v7134_v2  ;;  %v7840_v2 = vld [vmem:[#allocation10 + $0xd4] sm:$0xf0] }
 0x39b   : > { %v9376_v11 = vpop.f32.mrf.mxu2 }
 0x39d   : > { %v3121_v6 = vpop.f32.mrf.mxu3 }
 0x39e   : > { %v3122_v14 = vadd.f32 %v3121_v6, %v2980_v50  ;;  %v7828_v6 = vld [vmem:[#allocation10 + $0x74] sm:$0xf0] }
 0x39f   : > { %v7074_v50 = vor.u32 %v7828_v6, %v7073_v7 }
 0x3a0   : > { %6878 = vmatmul.msk.bf16.gmra.mxu2 %vm1118_vm1, %v8142_v28  ;;  %v3167_v26 = vadd.f32 %v9382_v19, %v3122_v14 }
 0x3a1   : > { %3886 = vmatpush.bf16.msra.mxu0 %v7074_v50  ;;  %v7842_v50 = vld [vmem:[#allocation10 + $0xe4] sm:$0xf0] }
 0x3a2   : > { %v3199_v33 = vmax.f32 %v3167_v26, 0.0 }
 0x3a3   : > { %v9384_v16 = vpop.f32.mrf.mxu2 }
 0x3a5   : > { %v3123_v24 = vpop.f32.mrf.mxu3 }
 0x3a6   : > { %v3124_v29 = vadd.f32 %v3123_v24, %v2982_v21  ;;  %v2990_v21 = vadd.f32 %v2989_v23, %v2940_v31 }
 0x3a8   : > { %v3169_v20 = vadd.f32 %v9382_v19, %v3124_v29  ;;  %v7137_v29 = vld [vmem:[#allocation10 + $0xf0] sm:$0xf] }
 0x3aa   : > { %v3201_v27 = vmax.f32 %v3169_v20, 0.0  ;;  %v7844_v20 = vld [vmem:[#allocation10 + $0xf4] sm:$0xf0] }
 0x3ab   : > { %v9388_v35 = vpop.f32.mrf.mxu2 }
 0x3ac   : > { %v3231_v18 = vpack.c.bf16 %v3201_v27, %v3199_v33  ;;  %v7138_v33 = vor.u32 %v7844_v20, %v7137_v29 }
 0x3ad   : > { %v3126_v9 = vpop.f32.mrf.mxu3 }
 0x3ae   : > { %3501 = vmatmul.bf16.vlgmr.msrb.gmra.mxu1 %v3231_v18  ;;  %3599 = vmatmul.bf16.vlgmr.msra.gmra.mxu3 %v3231_v18  ;;  %v3127_v37 = vadd.f32 %v3126_v9, %v2985_v38  ;;  %v2996_v18 = vpop.f32.mrf.mxu1  ;;  %v2992_v38 = vadd.f32 %v2991_v36, %v2942_v41  ;;  %v7065_v36 = vld [vmem:[#allocation10 + $0x60] sm:$0xf] }
 0x3af   : > { %3935 = vmatpush.bf16.msra.mxu1 %v7138_v33 }
 0x3b0   : > { %v3171_v28 = vadd.f32 %v9382_v19, %v3127_v37  ;;  %v2947_v37 = vpop.f32.mrf.mxu0 }
 0x3b1   : > { %v2997_v29 = vadd.f32 %v2996_v18, %v2947_v37  ;;  %v7123_v18 = vld [vmem:[#allocation10 + $0xd8] sm:$0xf0]  ;;  %v7057_v37 = vld [vmem:[#allocation10 + $0x50] sm:$0xf] }
 0x3b2   : > { %v3203_v53 = vmax.f32 %v3171_v28, 0.0 }
 0x3b3   : > { %v3072_v39 = vpop.f32.mrf.mxu2 }
 0x3b4   : > { %v3073_v46 = vadd.f32 %v3072_v39, %v9317_v34 }
 0x3b5   : > { %v3128_v43 = vpop.f32.mrf.mxu3 }
 0x3b6   : > { %v3129_v44 = vadd.f32 %v3128_v43, %v2987_v42  ;;  %v3166_v10 = vadd.f32 %v9392_v49, %v3073_v46  ;;  %v7825_v46 = vld [vmem:[#allocation10 + $0x64] sm:$0xf]  ;;  %v2999_v7 = vpop.f32.mrf.mxu1 }
 0x3b8   : > { %v3173_v51 = vadd.f32 %v9382_v19, %v3129_v44  ;;  %v3198_v24 = vmax.f32 %v3166_v10, 0.0  ;;  %v7066_v10 = vor.u32 %v7826_v4, %v7065_v36 }
 0x3ba   : > { %v3205_v55 = vmax.f32 %v3173_v51, 0.0  ;;  %v7067_v51 = vld [vmem:[#allocation10 + $0x68] sm:$0xf0]  ;;  %3887 = vmatpush.bf16.msra.mxu0 %v7066_v10 }
 0x3bb   : > { %v3074_v63 = vpop.f32.mrf.mxu2 }
 0x3bc   : > { %v3075_v34 = vadd.f32 %v3074_v63, %v9321_v32  ;;  %v3233_v12 = vpack.c.bf16 %v3205_v55, %v3203_v53  ;;  %v7070_v55 = vor.u32 %v7825_v46, %v7067_v51 }
 0x3bd   : > { %v3131_v13 = vpop.f32.mrf.mxu3 }
 0x3be   : > { %v3168_v14 = vadd.f32 %v9392_v49, %v3075_v34  ;;  %3506 = vmatmul.bf16.gmra.mxu1 %v3233_v12  ;;  %3604 = vmatmul.bf16.gmra.mxu3 %v3233_v12  ;;  %v3132_v32 = vadd.f32 %v3131_v13, %v2990_v21  ;;  %v2950_v12 = vpop.f32.mrf.mxu0 }
 0x3bf   : > { %3985 = vmatpush.bf16.msra.mxu2 %v7070_v55  ;;  %v7824_v55 = vld [vmem:[#allocation10 + $0x54] sm:$0xf0]  ;;  %v3000_v36 = vadd.f32 %v2999_v7, %v2950_v12 }
 0x3c0   : > { %v3200_v26 = vmax.f32 %v3168_v14, 0.0  ;;  %v3175_v42 = vadd.f32 %v9382_v19, %v3132_v32  ;;  %v3001_v32 = vpop.f32.mrf.mxu1  ;;  %v7058_v60 = vor.u32 %v7824_v55, %v7057_v37 }
 0x3c2   : > { %v3230_v27 = vpack.c.bf16 %v3200_v26, %v3198_v24  ;;  %v3207_v28 = vmax.f32 %v3175_v42, 0.0  ;;  %v7823_v42 = vld [vmem:[#allocation10 + $0x54] sm:$0xf]  ;;  %3888 = vmatpush.bf16.msra.mxu0 %v7058_v60 }
 0x3c3   : > { %v3077_v9 = vpop.f32.mrf.mxu2 }
 0x3c4   : > { %3452 = vmatmul.bf16.vlgmr.msrb.gmra.mxu0 %v3230_v27  ;;  %3550 = vmatmul.bf16.vlgmr.msrb.gmra.mxu2 %v3230_v27  ;;  %v3078_v23 = vadd.f32 %v3077_v9, %v9324_v47 }
 0x3c5   : > { %v3133_v39 = vpop.f32.mrf.mxu3 }
 0x3c6   : > { %v3134_v43 = vadd.f32 %v3133_v39, %v2992_v38  ;;  %v3170_v41 = vadd.f32 %v9392_v49, %v3078_v23  ;;  %v2952_v57 = vpop.f32.mrf.mxu0 }
 0x3c8   : > { %v3177_v31 = vadd.f32 %v9382_v19, %v3134_v43  ;;  %v3202_v6 = vmax.f32 %v3170_v41, 0.0  ;;  %v7059_v43 = vld [vmem:[#allocation10 + $0x58] sm:$0xf0]  ;;  %v3004_v4 = vpop.f32.mrf.mxu1 }
 0x3ca   : > { %v3209_v44 = vmax.f32 %v3177_v31, 0.0  ;;  %v7062_v31 = vor.u32 %v7823_v42, %v7059_v43  ;;  %v7822_v42 = vld [vmem:[#allocation10 + $0x44] sm:$0xf0] }
 0x3cb   : > { %v3079_v53 = vpop.f32.mrf.mxu2 }
 0x3cc   : > { %v3080_v63 = vadd.f32 %v3079_v53, %v9328_v1  ;;  %v3235_v0 = vpack.c.bf16 %v3209_v44, %v3207_v28  ;;  %v7129_v1 = vld [vmem:[#allocation10 + $0xe0] sm:$0xf]  ;;  %v7839_v28 = vld [vmem:[#allocation10 + $0xd4] sm:$0xf]  ;;  %3986 = vmatpush.bf16.msra.mxu2 %v7062_v31 }
 0x3cd   : > { %v3136_v47 = vpop.f32.mrf.mxu3  ;;  %v7130_v14 = vor.u32 %v7842_v50, %v7129_v1  ;;  %v7126_v53 = vor.u32 %v7839_v28, %v7123_v18 }
 0x3ce   : > { %v3172_v34 = vadd.f32 %v9392_v49, %v3080_v63  ;;  %3511 = vmatmul.bf16.gmra.mxu1 %v3235_v0  ;;  %3609 = vmatmul.bf16.gmra.mxu3 %v3235_v0  ;;  %v3137_v21 = vadd.f32 %v3136_v47, %v2995_v5  ;;  %v7121_v0 = vld [vmem:[#allocation10 + $0xd0] sm:$0xf] }
 0x3cf   : > { %3936 = vmatpush.bf16.msra.mxu1 %v7130_v14  ;;  %4035 = vmatpush.bf16.msrb.mxu3 %v7126_v53  ;;  %v7122_v47 = vor.u32 %v7840_v2, %v7121_v0 }
 0x3d0   : > { %v3204_v13 = vmax.f32 %v3172_v34, 0.0  ;;  %v3179_v33 = vadd.f32 %v9382_v19, %v3137_v21  ;;  %v2955_v34 = vpop.f32.mrf.mxu0 }
 0x3d1   : > { %v3005_v28 = vadd.f32 %v3004_v4, %v2955_v34  ;;  %v2904_v4 = vadd.f32 %v9347_v48, %v9351_v59  ;;  %v7043_v34 = vld [vmem:[#allocation10 + $0x38] sm:$0xf0] }
 0x3d2   : > { %v3232_v24 = vpack.c.bf16 %v3204_v13, %v3202_v6  ;;  %v3211_v38 = vmax.f32 %v3179_v33, 0.0  ;;  %v3002_v6 = vadd.f32 %v3001_v32, %v2952_v57  ;;  %v7049_v32 = vld [vmem:[#allocation10 + $0x40] sm:$0xf] }
 0x3d3   : > { %v3082_v26 = vpop.f32.mrf.mxu2  ;;  %3937 = vmatpush.bf16.msra.mxu1 %v7122_v47 }
 0x3d4   : > { %3457 = vmatmul.bf16.gmra.mxu0 %v3232_v24  ;;  %3555 = vmatmul.bf16.gmra.mxu2 %v3232_v24  ;;  %v3083_v9 = vadd.f32 %v3082_v26, %v9331_v58  ;;  %v7821_v24 = vld [vmem:[#allocation10 + $0x44] sm:$0xf]  ;;  %v7051_v26 = vld [vmem:[#allocation10 + $0x48] sm:$0xf0] }
 0x3d5   : > { %v3138_v20 = vpop.f32.mrf.mxu3  ;;  %v7054_v33 = vor.u32 %v7821_v24, %v7051_v26 }
 0x3d6   : > { %v3139_v27 = vadd.f32 %v3138_v20, %v2997_v29  ;;  %v3174_v44 = vadd.f32 %v9392_v49, %v3083_v9  ;;  %v3006_v29 = vpop.f32.mrf.mxu1  ;;  %v7115_v9 = vld [vmem:[#allocation10 + $0xc8] sm:$0xf0] }
 0x3d7   : > { %3987 = vmatpush.bf16.msra.mxu2 %v7054_v33 }
 0x3d8   : > { %v3181_v52 = vadd.f32 %v9382_v19, %v3139_v27  ;;  %v3206_v41 = vmax.f32 %v3174_v44, 0.0  ;;  %v7837_v27 = vld [vmem:[#allocation10 + $0xc4] sm:$0xf]  ;;  %v7113_v44 = vld [vmem:[#allocation10 + $0xc0] sm:$0xf] }
 0x3da   : > { %v3213_v39 = vmax.f32 %v3181_v52, 0.0 }
 0x3db   : > { %v3084_v23 = vpop.f32.mrf.mxu2 }
 0x3dc   : > { %v3085_v46 = vadd.f32 %v3084_v23, %v9335_v17  ;;  %v3237_v51 = vpack.c.bf16 %v3213_v39, %v3211_v38  ;;  %v7118_v39 = vor.u32 %v7837_v27, %v7115_v9  ;;  %v7050_v23 = vor.u32 %v7822_v42, %v7049_v32  ;;  %v7105_v27 = vld [vmem:[#allocation10 + $0xb0] sm:$0xf]  ;;  %v7836_v9 = vld [vmem:[#allocation10 + $0xb4] sm:$0xf0] }
 0x3dd   : > { %v3141_v58 = vpop.f32.mrf.mxu3 }
 0x3de   : > { %v3176_v56 = vadd.f32 %v9392_v49, %v3085_v46  ;;  %3516 = vmatmul.bf16.gmra.mxu1 %v3237_v51  ;;  %3614 = vmatmul.bf16.gmra.mxu3 %v3237_v51  ;;  %v3142_v17 = vadd.f32 %v3141_v58, %v3000_v36  ;;  %v7838_v46 = vld [vmem:[#allocation10 + $0xc4] sm:$0xf0]  ;;  %v3009_v60 = vpop.f32.mrf.mxu1 }
 0x3df   : > { %4036 = vmatpush.bf16.msrb.mxu3 %v7118_v39  ;;  %3889 = vmatpush.bf16.msra.mxu0 %v7050_v23  ;;  %v7114_v51 = vor.u32 %v7838_v46, %v7113_v44 }
 0x3e0   : > { %v3208_v63 = vmax.f32 %v3176_v56, 0.0  ;;  %v3183_v1 = vadd.f32 %v9382_v19, %v3142_v17 }
 0x3e1   : > { %3938 = vmatpush.bf16.msra.mxu1 %v7114_v51  ;;  %v7833_v51 = vld [vmem:[#allocation10 + $0xa4] sm:$0xf] }
 0x3e2   : > { %v3234_v10 = vpack.c.bf16 %v3208_v63, %v3206_v41  ;;  %v3215_v14 = vmax.f32 %v3183_v1, 0.0  ;;  %v7107_v1 = vld [vmem:[#allocation10 + $0xb8] sm:$0xf0] }
 0x3e3   : > { %v3087_v5 = vpop.f32.mrf.mxu2 }
 0x3e4   : > { %3462 = vmatmul.bf16.gmra.mxu0 %v3234_v10  ;;  %3560 = vmatmul.bf16.gmra.mxu2 %v3234_v10  ;;  %v3088_v7 = vadd.f32 %v3087_v5, %v9338_v22  ;;  %v2957_v22 = vpop.f32.mrf.mxu0  ;;  %v7819_v10 = vld [vmem:[#allocation10 + $0x34] sm:$0xf] }
 0x3e5   : > { %v3143_v13 = vpop.f32.mrf.mxu3  ;;  %v3007_v58 = vadd.f32 %v3006_v29, %v2957_v22 }
 0x3e6   : > { %v3144_v50 = vadd.f32 %v3143_v13, %v3002_v6  ;;  %v3178_v52 = vadd.f32 %v9392_v49, %v3088_v7  ;;  %v7046_v6 = vor.u32 %v7819_v10, %v7043_v34  ;;  %v7835_v13 = vld [vmem:[#allocation10 + $0xb4] sm:$0xf]  ;;  %v3011_v59 = vpop.f32.mrf.mxu1  ;;  %v7097_v10 = vld [vmem:[#allocation10 + $0xa0] sm:$0xf]  ;;  %v7834_v34 = vld [vmem:[#allocation10 + $0xa4] sm:$0xf0] }
 0x3e8   : > { %v3185_v12 = vadd.f32 %v9382_v19, %v3144_v50  ;;  %v3210_v18 = vmax.f32 %v3178_v52, 0.0  ;;  %v7041_v50 = vld [vmem:[#allocation10 + $0x30] sm:$0xf]  ;;  %3988 = vmatpush.bf16.msra.mxu2 %v7046_v6  ;;  %v7106_v52 = vor.u32 %v7836_v9, %v7105_v27  ;;  %v2914_v27 = vadd.f32 %v9365_v30, %v9369_v54 }
 0x3ea   : > { %v3217_v21 = vmax.f32 %v3185_v12, 0.0  ;;  %3939 = vmatpush.bf16.msra.mxu1 %v7106_v52 }
 0x3eb   : > { %v3089_v20 = vpop.f32.mrf.mxu2 }
 0x3ec   : > { %v3090_v57 = vadd.f32 %v3089_v20, %v9342_v40  ;;  %v3239_v38 = vpack.c.bf16 %v3217_v21, %v3215_v14  ;;  %v2960_v63 = vpop.f32.mrf.mxu0  ;;  %v7110_v21 = vor.u32 %v7835_v13, %v7107_v1 }
 0x3ed   : > { %v3146_v43 = vpop.f32.mrf.mxu3  ;;  %v3010_v29 = vadd.f32 %v3009_v60, %v2960_v63 }
 0x3ee   : > { %v3180_v31 = vadd.f32 %v9392_v49, %v3090_v57  ;;  %3521 = vmatmul.bf16.gmra.mxu1 %v3239_v38  ;;  %3619 = vmatmul.bf16.gmra.mxu3 %v3239_v38  ;;  %v3147_v40 = vadd.f32 %v3146_v43, %v3005_v28  ;;  %v3014_v44 = vpop.f32.mrf.mxu1 }
 0x3ef   : > { %4037 = vmatpush.bf16.msrb.mxu3 %v7110_v21  ;;  %v7831_v21 = vld [vmem:[#allocation10 + $0x94] sm:$0xf] }
 0x3f0   : > { %v3212_v37 = vmax.f32 %v3180_v31, 0.0  ;;  %v3187_v36 = vadd.f32 %v9382_v19, %v3147_v40  ;;  %v7099_v40 = vld [vmem:[#allocation10 + $0xa8] sm:$0xf0] }
 0x3f2   : > { %v3236_v53 = vpack.c.bf16 %v3212_v37, %v3210_v18  ;;  %v3219_v47 = vmax.f32 %v3187_v36, 0.0  ;;  %v7817_v18 = vld [vmem:[#allocation10 + $0x24] sm:$0xf]  ;;  %v7035_v37 = vld [vmem:[#allocation10 + $0x28] sm:$0xf0] }
 0x3f3   : > { %v3092_v55 = vpop.f32.mrf.mxu2  ;;  %v7038_v46 = vor.u32 %v7817_v18, %v7035_v37  ;;  %v7818_v36 = vld [vmem:[#allocation10 + $0x24] sm:$0xf0]  ;;  %v7019_v18 = vld [vmem:[#allocation10 + $0x8] sm:$0xf0] }
 0x3f4   : > { %3467 = vmatmul.bf16.gmra.mxu0 %v3236_v53  ;;  %3565 = vmatmul.bf16.gmra.mxu2 %v3236_v53  ;;  %v3093_v0 = vadd.f32 %v3092_v55, %v9345_v45  ;;  %v7820_v45 = vld [vmem:[#allocation10 + $0x34] sm:$0xf0]  ;;  %v2962_v32 = vpop.f32.mrf.mxu0  ;;  %v7033_v53 = vld [vmem:[#allocation10 + $0x20] sm:$0xf]  ;;  %v2909_v55 = vadd.f32 %v9356_v8, %v9360_v15  ;;  %v3015_v8 = vadd.f32 %v3014_v44, %v9384_v16  ;;  %v7091_v16 = vld [vmem:[#allocation10 + $0x98] sm:$0xf0] }
 0x3f5   : > { %v3148_v56 = vpop.f32.mrf.mxu3  ;;  %v7042_v26 = vor.u32 %v7820_v45, %v7041_v50  ;;  %v3012_v42 = vadd.f32 %v3011_v59, %v2962_v32  ;;  %3989 = vmatpush.bf16.msra.mxu2 %v7038_v46  ;;  %v7034_v63 = vor.u32 %v7818_v36, %v7033_v53  ;;  %v7094_v59 = vor.u32 %v7831_v21, %v7091_v16  ;;  %v7017_v36 = vld [vmem:[#allocation10] sm:$0xf]  ;;  %v7859_v16 = vld [vmem:[#allocation12 + $0x74] sm:$0xf] }
 0x3f6   : > { %v3149_v41 = vadd.f32 %v3148_v56, %v3007_v58  ;;  %v3182_v7 = vadd.f32 %v9392_v49, %v3093_v0  ;;  %v7102_v56 = vor.u32 %v7833_v51, %v7099_v40  ;;  %v3016_v1 = vpop.f32.mrf.mxu1  ;;  %v2919_v46 = vadd.f32 %v9374_v62, %v9376_v11 }
 0x3f7   : > { %3890 = vmatpush.bf16.msra.mxu0 %v7042_v26 }
 0x3f8   : > { %v3189_v2 = vadd.f32 %v9382_v19, %v3149_v41  ;;  %v3214_v20 = vmax.f32 %v3182_v7, 0.0  ;;  %4038 = vmatpush.bf16.msrb.mxu3 %v7102_v56  ;;  %v3017_v7 = vadd.f32 %v3016_v1, %v9388_v35  ;;  %v7816_v35 = vld [vmem:[#allocation10 + $0x14] sm:$0xf0] }
 0x3fa   : > { %v3221_v17 = vmax.f32 %v3189_v2, 0.0 }
 0x3fb   : > { %v3094_v5 = vpop.f32.mrf.mxu2  ;;  %3891 = vmatpush.bf16.msra.mxu0 %v7034_v63 }
 0x3fc   : > { %v3095_v12 = vadd.f32 %v3094_v5, %v2904_v4  ;;  %v3241_v14 = vpack.c.bf16 %v3221_v17, %v3219_v47  ;;  %v7098_v5 = vor.u32 %v7834_v34, %v7097_v10  ;;  %4039 = vmatpush.bf16.msrb.mxu3 %v7094_v59 }
 0x3fd   : > { %v3151_v24 = vpop.f32.mrf.mxu3 }
 0x3fe   : > { %v3184_v48 = vadd.f32 %v9392_v49, %v3095_v12  ;;  %3526 = vmatmul.bf16.gmra.mxu1 %v3241_v14  ;;  %3624 = vmatmul.bf16.gmra.mxu3 %v3241_v14  ;;  %v3152_v57 = vadd.f32 %v3151_v24, %v3010_v29  ;;  %v7815_v12 = vld [vmem:[#allocation10 + $0x14] sm:$0xf]  ;;  %v7027_v14 = vld [vmem:[#allocation10 + $0x18] sm:$0xf0] }
 0x3ff   : > { %3940 = vmatpush.bf16.msra.mxu1 %v7098_v5  ;;  %v7030_v24 = vor.u32 %v7815_v12, %v7027_v14 }
 0x400   : > { %v3216_v33 = vmax.f32 %v3184_v48, 0.0  ;;  %v3191_v43 = vadd.f32 %v9382_v19, %v3152_v57 }
 0x401   : > { %3990 = vmatpush.bf16.msra.mxu2 %v7030_v24 }
 0x402   : > { %v3238_v38 = vpack.c.bf16 %v3216_v33, %v3214_v20  ;;  %v3223_v58 = vmax.f32 %v3191_v43, 0.0  ;;  %v7025_v33 = vld [vmem:[#allocation10 + $0x10] sm:$0xf] }
 0x403   : > { %v3097_v39 = vpop.f32.mrf.mxu2  ;;  %v7026_v52 = vor.u32 %v7816_v35, %v7025_v33  ;;  %v7875_v33 = vld [vmem:[#allocation12 + $0xf4] sm:$0xf]  ;;  %v7267_v35 = vld [vmem:[#allocation12 + $0xf8] sm:$0xf0] }
 0x404   : > { %3472 = vmatmul.bf16.gmra.mxu0 %v3238_v38  ;;  %3570 = vmatmul.bf16.gmra.mxu2 %v3238_v38  ;;  %v3098_v31 = vadd.f32 %v3097_v39, %v9354_v3  ;;  %v7089_v38 = vld [vmem:[#allocation10 + $0x90] sm:$0xf]  ;;  %v7832_v39 = vld [vmem:[#allocation10 + $0x94] sm:$0xf0] }
 0x405   : > { %v3153_v22 = vpop.f32.mrf.mxu3  ;;  %3892 = vmatpush.bf16.msra.mxu0 %v7026_v52  ;;  %v7860_v52 = vld [vmem:[#allocation12 + $0x74] sm:$0xf0] }
 0x406   : > { %v3154_v23 = vadd.f32 %v3153_v22, %v3012_v42  ;;  %v3186_v3 = vadd.f32 %v9392_v49, %v3098_v31 }
 0x408   : > { %v3193_v28 = vadd.f32 %v9382_v19, %v3154_v23  ;;  %v3218_v15 = vmax.f32 %v3186_v3, 0.0 }
 0x40a   : > { %v3225_v60 = vmax.f32 %v3193_v28, 0.0  ;;  %v7813_v28 = vld [vmem:[#allocation10 + $0x4] sm:$0xf] }
 0x40b   : > { %v3099_v41 = vpop.f32.mrf.mxu2  ;;  %v7022_v37 = vor.u32 %v7813_v28, %v7019_v18 }
 0x40c   : > { %v3100_v0 = vadd.f32 %v3099_v41, %v2909_v55  ;;  %v3243_v2 = vpack.c.bf16 %v3225_v60, %v3223_v58  ;;  %v7829_v58 = vld [vmem:[#allocation10 + $0x84] sm:$0xf]  ;;  %v7083_v60 = vld [vmem:[#allocation10 + $0x88] sm:$0xf0]  ;;  %v7814_v41 = vld [vmem:[#allocation10 + $0x4] sm:$0xf0] }
 0x40d   : > { %v3156_v4 = vpop.f32.mrf.mxu3  ;;  %3991 = vmatpush.bf16.msra.mxu2 %v7022_v37  ;;  %v7086_v56 = vor.u32 %v7829_v58, %v7083_v60  ;;  %v7018_v3 = vor.u32 %v7814_v41, %v7017_v36  ;;  %v7857_v58 = vld [vmem:[#allocation12 + $0x64] sm:$0xf]  ;;  %v7195_v60 = vld [vmem:[#allocation12 + $0x68] sm:$0xf0] }
 0x40e   : > { %v3188_v47 = vadd.f32 %v9392_v49, %v3100_v0  ;;  %3531 = vmatmul.bf16.gmra.mxu1 %v3243_v2  ;;  %3629 = vmatmul.bf16.gmra.mxu3 %v3243_v2  ;;  %v3157_v6 = vadd.f32 %v3156_v4, %v3015_v8  ;;  %v7081_v2 = vld [vmem:[#allocation10 + $0x80] sm:$0xf]  ;;  %v7830_v4 = vld [vmem:[#allocation10 + $0x84] sm:$0xf0]  ;;  %v7198_v36 = vor.u32 %v7857_v58, %v7195_v60 }
 0x40f   : > { %4040 = vmatpush.bf16.msrb.mxu3 %v7086_v56  ;;  %3893 = vmatpush.bf16.msra.mxu0 %v7018_v3  ;;  %v7082_v11 = vor.u32 %v7830_v4, %v7081_v2  ;;  %v7873_v3 = vld [vmem:[#allocation12 + $0xe4] sm:$0xf]  ;;  %v7193_v4 = vld [vmem:[#allocation12 + $0x60] sm:$0xf] }
 0x410   : > { %v3220_v17 = vmax.f32 %v3188_v47, 0.0  ;;  %v3195_v26 = vadd.f32 %v9382_v19, %v3157_v6 }
 0x412   : > { %v3240_v13 = vpack.c.bf16 %v3220_v17, %v3218_v15  ;;  %v3227_v9 = vmax.f32 %v3195_v26, 0.0  ;;  %v7203_v26 = vld [vmem:[#allocation12 + $0x78] sm:$0xf0] }
 0x413   : > { %v3102_v50 = vpop.f32.mrf.mxu2  ;;  %v7206_v59 = vor.u32 %v7859_v16, %v7203_v26 }
 0x414   : > { %3477 = vmatmul.bf16.gmra.mxu0 %v3240_v13  ;;  %3575 = vmatmul.bf16.gmra.mxu2 %v3240_v13  ;;  %v3103_v29 = vadd.f32 %v3102_v50, %v9363_v25  ;;  %v7090_v25 = vor.u32 %v7832_v39, %v7089_v38 }
 0x415   : > { %v3158_v45 = vpop.f32.mrf.mxu3  ;;  %4426 = vmatpush.bf16.msrb.mxu2 %v7206_v59 }
 0x416   : > { %v3159_v48 = vadd.f32 %v3158_v45, %v3017_v7  ;;  %v3190_v42 = vadd.f32 %v9392_v49, %v3103_v29  ;;  %3941 = vmatpush.bf16.msra.mxu1 %v7090_v25 }
 0x418   : > { %v3197_v20 = vadd.f32 %v9382_v19, %v3159_v48  ;;  %v3222_v23 = vmax.f32 %v3190_v42, 0.0 }
 0x419   : > { %4427 = vmatpush.bf16.msrb.mxu2 %v7198_v36 }
 0x41a   : > { %v3229_v32 = vmax.f32 %v3197_v20, 0.0  ;;  %3942 = vmatpush.bf16.msra.mxu1 %v7082_v11  ;;  %v7257_v11 = vld [vmem:[#allocation12 + $0xe0] sm:$0xf] }
 0x41b   : > { %v3104_v57 = vpop.f32.mrf.mxu2 }
 0x41c   : > { %v3105_v22 = vadd.f32 %v3104_v57, %v2914_v27  ;;  %v3245_v43 = vpack.c.bf16 %v3229_v32, %v3227_v9  ;;  %v7270_v9 = vor.u32 %v7875_v33, %v7267_v35  ;;  %v7201_v32 = vld [vmem:[#allocation12 + $0x70] sm:$0xf]  ;;  %v7855_v33 = vld [vmem:[#allocation12 + $0x54] sm:$0xf]  ;;  %v7187_v35 = vld [vmem:[#allocation12 + $0x58] sm:$0xf0] }
 0x41d   : > { %v7265_v57 = vld [vmem:[#allocation12 + $0xf0] sm:$0xf] }
 0x41e   : > { %v3192_v19 = vadd.f32 %v9392_v49, %v3105_v22  ;;  %3536 = vmatmul.bf16.gmra.mxu1 %v3245_v43  ;;  %3634 = vmatmul.bf16.gmra.mxu3 %v3245_v43  ;;  %v7202_v22 = vor.u32 %v7860_v52, %v7201_v32  ;;  %v7876_v43 = vld [vmem:[#allocation12 + $0xf4] sm:$0xf0]  ;;  %v7871_v52 = vld [vmem:[#allocation12 + $0xd4] sm:$0xf] }
 0x41f   : > { %4475 = vmatpush.bf16.msra.mxu3 %v7270_v9 }
 0x420   : > { %v3224_v31 = vmax.f32 %v3192_v19, 0.0  ;;  %v7266_v19 = vor.u32 %v7876_v43, %v7265_v57  ;;  %4328 = vmatpush.bf16.msrb.mxu0 %v7202_v22  ;;  %v7251_v57 = vld [vmem:[#allocation12 + $0xd8] sm:$0xf0]  ;;  %v7856_v22 = vld [vmem:[#allocation12 + $0x54] sm:$0xf0] }
 0x421   : > { %v7249_v43 = vld [vmem:[#allocation12 + $0xd0] sm:$0xf] }
 0x422   : > { %v3242_v30 = vpack.c.bf16 %v3224_v31, %v3222_v23  ;;  %4377 = vmatpush.bf16.msrb.mxu1 %v7266_v19 }
 0x423   : > { %v3107_v54 = vpop.f32.mrf.mxu2 }
 0x424   : > { %3482 = vmatmul.bf16.gmra.mxu0 %v3242_v30  ;;  %3580 = vmatmul.bf16.gmra.mxu2 %v3242_v30  ;;  %v3108_v44 = vadd.f32 %v3107_v54, %v9372_v61 }
 0x426   : > { %v3194_v53 = vadd.f32 %v9392_v49, %v3108_v44 }
 0x428   : > { %v3226_v0 = vmax.f32 %v3194_v53, 0.0 }
 0x42b   : > { %v3109_v51 = vpop.f32.mrf.mxu2  ;;  %v3502_v40 = vpop.f32.mrf.mxu1 }
 0x42c   : > { %v3110_v55 = vadd.f32 %v3109_v51, %v2919_v46 }
 0x42e   : > { %v3196_v63 = vadd.f32 %v9392_v49, %v3110_v55  ;;  %v3278_v49 = vld [vmem:[%s9905_s14] sm:$0x3] }
 0x42f   : > { %v9455_v5 = vperm.slane %v3278_v49, 0  ;;  %v9458_v50 = vperm.slane %v3278_v49, 1  ;;  %v7874_v49 = vld [vmem:[#allocation12 + $0xe4] sm:$0xf0] }
 0x430   : > { %v3228_v61 = vmax.f32 %v3196_v63, 0.0 }
 0x431   : > { %v3600_v62 = vpop.f32.mrf.mxu3 }
 0x432   : > { %v3244_v47 = vpack.c.bf16 %v3228_v61, %v3226_v0  ;;  %v7259_v0 = vld [vmem:[#allocation12 + $0xe8] sm:$0xf0] }
 0x433   : > { %v3504_v8 = vpop.f32.mrf.mxu1  ;;  %v7262_v2 = vor.u32 %v7873_v3, %v7259_v0  ;;  %v7179_v3 = vld [vmem:[#allocation12 + $0x48] sm:$0xf0] }
 0x434   : > { %3487 = vmatmul.bf16.gmra.mxu0 %v3244_v47  ;;  %3585 = vmatmul.bf16.gmra.mxu2 %v3244_v47 }
 0x435   : > { %4476 = vmatpush.bf16.msra.mxu3 %v7262_v2 }
 0x439   : > { %v3602_v15 = vpop.f32.mrf.mxu3 }
 0x43b   : > { %v3507_v17 = vpop.f32.mrf.mxu1 }
 0x441   : > { %v3453_v10 = vpop.f32.mrf.mxu0  ;;  %v9453_v34 = vpop.f32.mrf.mxu3 }
 0x442   : > { %v3454_v13 = vadd.f32 %v3453_v10, %v9455_v5 }
 0x443   : > { %v3509_v6 = vpop.f32.mrf.mxu1 }
 0x444   : > { %v3503_v14 = vadd.f32 %v3502_v40, %v3454_v13  ;;  %v7258_v13 = vor.u32 %v7874_v49, %v7257_v11  ;;  %v7241_v49 = vld [vmem:[#allocation12 + $0xc0] sm:$0xf] }
 0x446   : > { %v3640_v29 = vmax.f32 %v3503_v14, 0.0  ;;  %4378 = vmatpush.bf16.msrb.mxu1 %v7258_v13 }
 0x447   : > { %v3551_v1 = vpop.f32.mrf.mxu2 }
 0x448   : > { %v3552_v45 = vadd.f32 %v3551_v1, %v9458_v50 }
 0x449   : > { %v3455_v7 = vpop.f32.mrf.mxu0  ;;  %v9460_v12 = vpop.f32.mrf.mxu3 }
 0x44a   : > { %v3456_v21 = vadd.f32 %v3455_v7, %v9455_v5  ;;  %v3601_v38 = vadd.f32 %v3600_v62, %v3552_v45  ;;  %v7858_v62 = vld [vmem:[#allocation12 + $0x64] sm:$0xf0] }
 0x44b   : > { %v9464_v48 = vpop.f32.mrf.mxu1 }
 0x44c   : > { %v3505_v24 = vadd.f32 %v3504_v8, %v3456_v21  ;;  %v3641_v30 = vmax.f32 %v3601_v38, 0.0 }
 0x44e   : > { %v3642_v20 = vmax.f32 %v3505_v24, 0.0 }
 0x44f   : > { %v3553_v27 = vpop.f32.mrf.mxu2 }
 0x450   : > { %v3672_v39 = vpack.c.bf16 %v3642_v20, %v3640_v29  ;;  %v3554_v42 = vadd.f32 %v3553_v27, %v9458_v50  ;;  %v7190_v27 = vor.u32 %v7855_v33, %v7187_v35 }
 0x451   : > { %v3458_v25 = vpop.f32.mrf.mxu0  ;;  %v9467_v31 = vpop.f32.mrf.mxu3 }
 0x452   : > { %v3603_v23 = vadd.f32 %v3602_v15, %v3554_v42  ;;  %3894 = vmatmul.bf16.vlgmr.msra.gmra.mxu0 %v3672_v39  ;;  %3992 = vmatmul.bf16.vlgmr.msra.gmra.mxu2 %v3672_v39  ;;  %v3459_v18 = vadd.f32 %v3458_v25, %v9455_v5  ;;  %v7254_v39 = vor.u32 %v7871_v52, %v7251_v57  ;;  %v7185_v42 = vld [vmem:[#allocation12 + $0x50] sm:$0xf]  ;;  %v7171_v52 = vld [vmem:[#allocation12 + $0x38] sm:$0xf0] }
 0x453   : > { %v3514_v37 = vpop.f32.mrf.mxu1  ;;  %4428 = vmatpush.bf16.msrb.mxu2 %v7190_v27 }
 0x454   : > { %v3643_v54 = vmax.f32 %v3603_v23, 0.0  ;;  %v3508_v51 = vadd.f32 %v3507_v17, %v3459_v18  ;;  %v7194_v17 = vor.u32 %v7858_v62, %v7193_v4  ;;  %v7186_v23 = vor.u32 %v7856_v22, %v7185_v42  ;;  %4477 = vmatpush.bf16.msra.mxu3 %v7254_v39  ;;  %v7869_v4 = vld [vmem:[#allocation12 + $0xc4] sm:$0xf]  ;;  %v7243_v62 = vld [vmem:[#allocation12 + $0xc8] sm:$0xf0] }
 0x455   : > { %v7867_v42 = vld [vmem:[#allocation12 + $0xb4] sm:$0xf]  ;;  %v7235_v22 = vld [vmem:[#allocation12 + $0xb8] sm:$0xf0] }
 0x456   : > { %v3673_v28 = vpack.c.bf16 %v3643_v54, %v3641_v30  ;;  %v3644_v41 = vmax.f32 %v3508_v51, 0.0  ;;  %4329 = vmatpush.bf16.msrb.mxu0 %v7194_v17  ;;  %v7872_v30 = vld [vmem:[#allocation12 + $0xd4] sm:$0xf0]  ;;  %v7854_v17 = vld [vmem:[#allocation12 + $0x44] sm:$0xf0] }
 0x457   : > { %v3556_v44 = vpop.f32.mrf.mxu2  ;;  %v7250_v18 = vor.u32 %v7872_v30, %v7249_v43  ;;  %v7233_v30 = vld [vmem:[#allocation12 + $0xb0] sm:$0xf] }
 0x458   : > { %3943 = vmatmul.bf16.vlgmr.msra.gmra.mxu1 %v3673_v28  ;;  %4041 = vmatmul.bf16.vlgmr.msrb.gmra.mxu3 %v3673_v28  ;;  %v3557_v53 = vadd.f32 %v3556_v44, %v9458_v50 }
 0x459   : > { %v3460_v46 = vpop.f32.mrf.mxu0  ;;  %v3612_v56 = vpop.f32.mrf.mxu3  ;;  %4379 = vmatpush.bf16.msrb.mxu1 %v7250_v18 }
 0x45a   : > { %v3461_v40 = vadd.f32 %v3460_v46, %v9455_v5  ;;  %v3606_v47 = vadd.f32 %v9453_v34, %v3557_v53  ;;  %4330 = vmatpush.bf16.msrb.mxu0 %v7186_v23  ;;  %v7852_v23 = vld [vmem:[#allocation12 + $0x34] sm:$0xf0] }
 0x45b   : > { %v3517_v10 = vpop.f32.mrf.mxu1 }
 0x45c   : > { %v3510_v55 = vadd.f32 %v3509_v6, %v3461_v40  ;;  %v3645_v7 = vmax.f32 %v3606_v47, 0.0 }
 0x45e   : > { %v3646_v63 = vmax.f32 %v3510_v55, 0.0 }
 0x45f   : > { %v3558_v61 = vpop.f32.mrf.mxu2 }
 0x460   : > { %v3559_v8 = vadd.f32 %v3558_v61, %v9458_v50  ;;  %v3674_v15 = vpack.c.bf16 %v3646_v63, %v3644_v41  ;;  %v7853_v63 = vld [vmem:[#allocation12 + $0x44] sm:$0xf] }
 0x461   : > { %v3463_v6 = vpop.f32.mrf.mxu0  ;;  %v9476_v45 = vpop.f32.mrf.mxu3  ;;  %v7182_v0 = vor.u32 %v7853_v63, %v7179_v3 }
 0x462   : > { %v3608_v1 = vadd.f32 %v9460_v12, %v3559_v8  ;;  %3899 = vmatmul.bf16.gmra.mxu0 %v3674_v15  ;;  %3997 = vmatmul.bf16.gmra.mxu2 %v3674_v15  ;;  %v3464_v21 = vadd.f32 %v3463_v6, %v9455_v5  ;;  %v7246_v8 = vor.u32 %v7869_v4, %v7243_v62  ;;  %v7177_v15 = vld [vmem:[#allocation12 + $0x40] sm:$0xf]  ;;  %v7163_v4 = vld [vmem:[#allocation12 + $0x28] sm:$0xf0] }
 0x463   : > { %v3519_v12 = vpop.f32.mrf.mxu1  ;;  %4429 = vmatpush.bf16.msrb.mxu2 %v7182_v0 }
 0x464   : > { %v3647_v14 = vmax.f32 %v3608_v1, 0.0  ;;  %v3513_v26 = vadd.f32 %v9464_v48, %v3464_v21  ;;  %v7178_v1 = vor.u32 %v7854_v17, %v7177_v15  ;;  %4478 = vmatpush.bf16.msra.mxu3 %v7246_v8  ;;  %v7865_v15 = vld [vmem:[#allocation12 + $0xa4] sm:$0xf]  ;;  %v7227_v17 = vld [vmem:[#allocation12 + $0xa8] sm:$0xf0] }
 0x466   : > { %v3675_v34 = vpack.c.bf16 %v3647_v14, %v3645_v7  ;;  %v3648_v9 = vmax.f32 %v3513_v26, 0.0  ;;  %v7870_v7 = vld [vmem:[#allocation12 + $0xc4] sm:$0xf0]  ;;  %4331 = vmatpush.bf16.msrb.mxu0 %v7178_v1  ;;  %v7225_v1 = vld [vmem:[#allocation12 + $0xa0] sm:$0xf] }
 0x467   : > { %v3561_v24 = vpop.f32.mrf.mxu2  ;;  %v7242_v21 = vor.u32 %v7870_v7, %v7241_v49 }
 0x468   : > { %3948 = vmatmul.bf16.gmra.mxu1 %v3675_v34  ;;  %4046 = vmatmul.bf16.gmra.mxu3 %v3675_v34  ;;  %v3562_v29 = vadd.f32 %v3561_v24, %v9458_v50 }
 0x469   : > { %v3465_v16 = vpop.f32.mrf.mxu0  ;;  %v3617_v54 = vpop.f32.mrf.mxu3  ;;  %4380 = vmatpush.bf16.msrb.mxu1 %v7242_v21 }
 0x46a   : > { %v3466_v59 = vadd.f32 %v3465_v16, %v9455_v5  ;;  %v3611_v48 = vadd.f32 %v9467_v31, %v3562_v29 }
 0x46b   : > { %v3522_v51 = vpop.f32.mrf.mxu1 }
 0x46c   : > { %v3515_v20 = vadd.f32 %v3514_v37, %v3466_v59  ;;  %v3649_v44 = vmax.f32 %v3611_v48, 0.0 }
 0x46e   : > { %v3650_v32 = vmax.f32 %v3515_v20, 0.0 }
 0x46f   : > { %v3563_v38 = vpop.f32.mrf.mxu2 }
 0x470   : > { %v3564_v25 = vadd.f32 %v3563_v38, %v9458_v50  ;;  %v3676_v19 = vpack.c.bf16 %v3650_v32, %v3648_v9  ;;  %v7851_v32 = vld [vmem:[#allocation12 + $0x34] sm:$0xf] }
 0x471   : > { %v3468_v28 = vpop.f32.mrf.mxu0  ;;  %v3620_v36 = vpop.f32.mrf.mxu3  ;;  %v7174_v57 = vor.u32 %v7851_v32, %v7171_v52  ;;  %v7155_v32 = vld [vmem:[#allocation12 + $0x18] sm:$0xf0]  ;;  %v7863_v52 = vld [vmem:[#allocation12 + $0x94] sm:$0xf] }
 0x472   : > { %v3613_v37 = vadd.f32 %v3612_v56, %v3564_v25  ;;  %3904 = vmatmul.bf16.gmra.mxu0 %v3676_v19  ;;  %4002 = vmatmul.bf16.gmra.mxu2 %v3676_v19  ;;  %v3469_v40 = vadd.f32 %v3468_v28, %v9455_v5  ;;  %v7238_v25 = vor.u32 %v7867_v42, %v7235_v22  ;;  %v7169_v19 = vld [vmem:[#allocation12 + $0x30] sm:$0xf]  ;;  %v7848_v22 = vld [vmem:[#allocation12 + $0x14] sm:$0xf0] }
 0x473   : > { %v3524_v11 = vpop.f32.mrf.mxu1  ;;  %4430 = vmatpush.bf16.msrb.mxu2 %v7174_v57  ;;  %v7153_v42 = vld [vmem:[#allocation12 + $0x10] sm:$0xf] }
 0x474   : > { %v3651_v46 = vmax.f32 %v3613_v37, 0.0  ;;  %v3518_v58 = vadd.f32 %v3517_v10, %v3469_v40  ;;  %v7170_v37 = vor.u32 %v7852_v23, %v7169_v19  ;;  %4479 = vmatpush.bf16.msra.mxu3 %v7238_v25  ;;  %v7154_v19 = vor.u32 %v7848_v22, %v7153_v42  ;;  %v7217_v23 = vld [vmem:[#allocation12 + $0x90] sm:$0xf]  ;;  %v7331_v42 = vld [vmem:[#allocation13 + $0x78] sm:$0xf0] }
 0x476   : > { %v3677_v31 = vpack.c.bf16 %v3651_v46, %v3649_v44  ;;  %v3652_v61 = vmax.f32 %v3518_v58, 0.0  ;;  %v7868_v44 = vld [vmem:[#allocation12 + $0xb4] sm:$0xf0]  ;;  %4332 = vmatpush.bf16.msrb.mxu0 %v7170_v37 }
 0x477   : > { %v3566_v53 = vpop.f32.mrf.mxu2 }
 0x478   : > { %3953 = vmatmul.bf16.gmra.mxu1 %v3677_v31  ;;  %4051 = vmatmul.bf16.gmra.mxu3 %v3677_v31  ;;  %v3567_v56 = vadd.f32 %v3566_v53, %v9458_v50 }
 0x479   : > { %v3470_v55 = vpop.f32.mrf.mxu0  ;;  %v3622_v26 = vpop.f32.mrf.mxu3 }
 0x47a   : > { %v3471_v60 = vadd.f32 %v3470_v55, %v9455_v5  ;;  %v3616_v10 = vadd.f32 %v9476_v45, %v3567_v56 }
 0x47b   : > { %v3527_v29 = vpop.f32.mrf.mxu1 }
 0x47c   : > { %v3520_v41 = vadd.f32 %v3519_v12, %v3471_v60  ;;  %v3653_v24 = vmax.f32 %v3616_v10, 0.0  ;;  %v7230_v10 = vor.u32 %v7865_v15, %v7227_v17 }
 0x47e   : > { %v3654_v2 = vmax.f32 %v3520_v41, 0.0  ;;  %4480 = vmatpush.bf16.msra.mxu3 %v7230_v10 }
 0x47f   : > { %v3568_v47 = vpop.f32.mrf.mxu2 }
 0x480   : > { %v3569_v6 = vadd.f32 %v3568_v47, %v9458_v50  ;;  %v3678_v13 = vpack.c.bf16 %v3654_v2, %v3652_v61  ;;  %v7849_v2 = vld [vmem:[#allocation12 + $0x24] sm:$0xf] }
 0x481   : > { %v3473_v14 = vpop.f32.mrf.mxu0  ;;  %v3625_v43 = vpop.f32.mrf.mxu3 }
 0x482   : > { %v3618_v34 = vadd.f32 %v3617_v54, %v3569_v6  ;;  %3909 = vmatmul.bf16.gmra.mxu0 %v3678_v13  ;;  %4007 = vmatmul.bf16.gmra.mxu2 %v3678_v13  ;;  %v3474_v59 = vadd.f32 %v3473_v14, %v9455_v5  ;;  %v7161_v6 = vld [vmem:[#allocation12 + $0x20] sm:$0xf]  ;;  %v7850_v13 = vld [vmem:[#allocation12 + $0x24] sm:$0xf0] }
 0x483   : > { %v3529_v31 = vpop.f32.mrf.mxu1 }
 0x484   : > { %v3655_v16 = vmax.f32 %v3618_v34, 0.0  ;;  %v3523_v33 = vadd.f32 %v3522_v51, %v3474_v59  ;;  %v7234_v51 = vor.u32 %v7868_v44, %v7233_v30  ;;  %v7162_v34 = vor.u32 %v7850_v13, %v7161_v6  ;;  %v7864_v30 = vld [vmem:[#allocation12 + $0x94] sm:$0xf0] }
 0x486   : > { %v3679_v12 = vpack.c.bf16 %v3655_v16, %v3653_v24  ;;  %v3656_v38 = vmax.f32 %v3523_v33, 0.0  ;;  %4381 = vmatpush.bf16.msrb.mxu1 %v7234_v51  ;;  %v7866_v24 = vld [vmem:[#allocation12 + $0xa4] sm:$0xf0]  ;;  %4333 = vmatpush.bf16.msrb.mxu0 %v7162_v34 }
 0x487   : > { %v3571_v45 = vpop.f32.mrf.mxu2 }
 0x488   : > { %3958 = vmatmul.bf16.gmra.mxu1 %v3679_v12  ;;  %4056 = vmatmul.bf16.gmra.mxu3 %v3679_v12  ;;  %v3572_v27 = vadd.f32 %v3571_v45, %v9458_v50 }
 0x489   : > { %v3475_v20 = vpop.f32.mrf.mxu0  ;;  %v3627_v56 = vpop.f32.mrf.mxu3 }
 0x48a   : > { %v3476_v35 = vadd.f32 %v3475_v20, %v9455_v5  ;;  %v3621_v54 = vadd.f32 %v3620_v36, %v3572_v27  ;;  %4334 = vmatpush.bf16.msrb.mxu0 %v7154_v19 }
 0x48b   : > { %v3532_v62 = vpop.f32.mrf.mxu1 }
 0x48c   : > { %v3525_v9 = vadd.f32 %v3524_v11, %v3476_v35  ;;  %v3657_v53 = vmax.f32 %v3621_v54, 0.0  ;;  %v7166_v11 = vor.u32 %v7849_v2, %v7163_v4  ;;  %v7218_v54 = vor.u32 %v7864_v30, %v7217_v23  ;;  %v7147_v2 = vld [vmem:[#allocation12 + $0x8] sm:$0xf0]  ;;  %v7861_v4 = vld [vmem:[#allocation12 + $0x84] sm:$0xf] }
 0x48e   : > { %v3658_v39 = vmax.f32 %v3525_v9, 0.0  ;;  %4431 = vmatpush.bf16.msrb.mxu2 %v7166_v11  ;;  %v7847_v9 = vld [vmem:[#allocation12 + $0x14] sm:$0xf] }
 0x48f   : > { %v3573_v48 = vpop.f32.mrf.mxu2 }
 0x490   : > { %v3574_v28 = vadd.f32 %v3573_v48, %v9458_v50  ;;  %v3680_v18 = vpack.c.bf16 %v3658_v39, %v3656_v38  ;;  %v7158_v38 = vor.u32 %v7847_v9, %v7155_v32  ;;  %v7219_v39 = vld [vmem:[#allocation12 + $0x98] sm:$0xf0] }
 0x491   : > { %v3478_v46 = vpop.f32.mrf.mxu0  ;;  %v3630_v12 = vpop.f32.mrf.mxu3  ;;  %v7222_v25 = vor.u32 %v7863_v52, %v7219_v39  ;;  %v7891_v39 = vld [vmem:[#allocation13 + $0x74] sm:$0xf] }
 0x492   : > { %v3623_v40 = vadd.f32 %v3622_v26, %v3574_v28  ;;  %3914 = vmatmul.bf16.gmra.mxu0 %v3680_v18  ;;  %4012 = vmatmul.bf16.gmra.mxu2 %v3680_v18  ;;  %v3479_v58 = vadd.f32 %v3478_v46, %v9455_v5  ;;  %v7226_v26 = vor.u32 %v7866_v24, %v7225_v1 }
 0x493   : > { %v3534_v35 = vpop.f32.mrf.mxu1  ;;  %4432 = vmatpush.bf16.msrb.mxu2 %v7158_v38  ;;  %4481 = vmatpush.bf16.msra.mxu3 %v7222_v25 }
 0x494   : > { %v3659_v55 = vmax.f32 %v3623_v40, 0.0  ;;  %v3528_v63 = vadd.f32 %v3527_v29, %v3479_v58  ;;  %4382 = vmatpush.bf16.msrb.mxu1 %v7226_v26 }
 0x496   : > { %v3681_v60 = vpack.c.bf16 %v3659_v55, %v3657_v53  ;;  %v3660_v47 = vmax.f32 %v3528_v63, 0.0 }
 0x497   : > { %v3576_v36 = vpop.f32.mrf.mxu2 }
 0x498   : > { %3963 = vmatmul.bf16.gmra.mxu1 %v3681_v60  ;;  %4061 = vmatmul.bf16.gmra.mxu3 %v3681_v60  ;;  %v3577_v0 = vadd.f32 %v3576_v36, %v9458_v50 }
 0x499   : > { %v3480_v41 = vpop.f32.mrf.mxu0  ;;  %v3632_v37 = vpop.f32.mrf.mxu3  ;;  %4383 = vmatpush.bf16.msrb.mxu1 %v7218_v54 }
 0x49a   : > { %v3481_v3 = vadd.f32 %v3480_v41, %v9455_v5  ;;  %v3626_v7 = vadd.f32 %v3625_v43, %v3577_v0 }
 0x49b   : > { %v3537_v55 = vpop.f32.mrf.mxu1 }
 0x49c   : > { %v3530_v61 = vadd.f32 %v3529_v31, %v3481_v3  ;;  %v3661_v45 = vmax.f32 %v3626_v7, 0.0  ;;  %v7145_v7 = vld [vmem:[#allocation12] sm:$0xf] }
 0x49e   : > { %v3662_v8 = vmax.f32 %v3530_v61, 0.0  ;;  %v7845_v61 = vld [vmem:[#allocation12 + $0x4] sm:$0xf] }
 0x49f   : > { %v3578_v49 = vpop.f32.mrf.mxu2  ;;  %v7150_v11 = vor.u32 %v7845_v61, %v7147_v2 }
 0x4a0   : > { %v3579_v14 = vadd.f32 %v3578_v49, %v9458_v50  ;;  %v3682_v21 = vpack.c.bf16 %v3662_v8, %v3660_v47  ;;  %v7211_v47 = vld [vmem:[#allocation12 + $0x88] sm:$0xf0] }
 0x4a1   : > { %v3483_v16 = vpop.f32.mrf.mxu0  ;;  %v3635_v3 = vpop.f32.mrf.mxu3  ;;  %v7214_v17 = vor.u32 %v7861_v4, %v7211_v47  ;;  %4433 = vmatpush.bf16.msrb.mxu2 %v7150_v11  ;;  %v7908_v11 = vld [vmem:[#allocation13 + $0xf4] sm:$0xf0] }
 0x4a2   : > { %v3628_v59 = vadd.f32 %v3627_v56, %v3579_v14  ;;  %3919 = vmatmul.bf16.gmra.mxu0 %v3682_v21  ;;  %4017 = vmatmul.bf16.gmra.mxu2 %v3682_v21  ;;  %v3484_v20 = vadd.f32 %v3483_v16, %v9455_v5  ;;  %v7846_v14 = vld [vmem:[#allocation12 + $0x4] sm:$0xf0] }
 0x4a3   : > { %v3539_v49 = vpop.f32.mrf.mxu1  ;;  %4482 = vmatpush.bf16.msra.mxu3 %v7214_v17  ;;  %v7146_v34 = vor.u32 %v7846_v14, %v7145_v7  ;;  %v7323_v17 = vld [vmem:[#allocation13 + $0x68] sm:$0xf0] }
 0x4a4   : > { %v3663_v29 = vmax.f32 %v3628_v59, 0.0  ;;  %v3533_v43 = vadd.f32 %v3532_v62, %v3484_v20 }
 0x4a5   : > { %4335 = vmatpush.bf16.msrb.mxu0 %v7146_v34  ;;  %v7387_v34 = vld [vmem:[#allocation13 + $0xe8] sm:$0xf0] }
 0x4a6   : > { %v3683_v33 = vpack.c.bf16 %v3663_v29, %v3661_v45  ;;  %v3664_v44 = vmax.f32 %v3533_v43, 0.0  ;;  %v7862_v45 = vld [vmem:[#allocation12 + $0x84] sm:$0xf0]  ;;  %v7334_v43 = vor.u32 %v7891_v39, %v7331_v42 }
 0x4a7   : > { %v3581_v27 = vpop.f32.mrf.mxu2 }
 0x4a8   : > { %3968 = vmatmul.bf16.gmra.mxu1 %v3683_v33  ;;  %4066 = vmatmul.bf16.gmra.mxu3 %v3683_v33  ;;  %v3582_v28 = vadd.f32 %v3581_v27, %v9458_v50 }
 0x4a9   : > { %v3485_v57 = vpop.f32.mrf.mxu0  ;;  %v3637_v59 = vpop.f32.mrf.mxu3  ;;  %4953 = vmatpush.bf16.msra.mxu2 %v7334_v43  ;;  %v7906_v43 = vld [vmem:[#allocation13 + $0xe4] sm:$0xf0] }
 0x4aa   : > { %v3486_v48 = vadd.f32 %v3485_v57, %v9455_v5  ;;  %v3631_v40 = vadd.f32 %v3630_v12, %v3582_v28  ;;  %v7209_v12 = vld [vmem:[#allocation12 + $0x80] sm:$0xf]  ;;  %v7907_v28 = vld [vmem:[#allocation13 + $0xf4] sm:$0xf] }
 0x4ab   : > { %v7210_v29 = vor.u32 %v7862_v45, %v7209_v12 }
 0x4ac   : > { %v3535_v18 = vadd.f32 %v3534_v35, %v3486_v48  ;;  %v3665_v36 = vmax.f32 %v3631_v40, 0.0 }
 0x4ad   : > { %4384 = vmatpush.bf16.msrb.mxu1 %v7210_v29 }
 0x4ae   : > { %v3666_v46 = vmax.f32 %v3535_v18, 0.0  ;;  %v7395_v18 = vld [vmem:[#allocation13 + $0xf8] sm:$0xf0] }
 0x4af   : > { %v3583_v51 = vpop.f32.mrf.mxu2 }
 0x4b0   : > { %v3584_v31 = vadd.f32 %v3583_v51, %v9458_v50  ;;  %v3684_v53 = vpack.c.bf16 %v3666_v46, %v3664_v44  ;;  %v7398_v44 = vor.u32 %v7907_v28, %v7395_v18 }
 0x4b1   : > { %v3488_v58 = vpop.f32.mrf.mxu0 }
 0x4b2   : > { %v3633_v60 = vadd.f32 %v3632_v37, %v3584_v31  ;;  %3924 = vmatmul.bf16.gmra.mxu0 %v3684_v53  ;;  %4022 = vmatmul.bf16.gmra.mxu2 %v3684_v53  ;;  %v3489_v41 = vadd.f32 %v3488_v58, %v9455_v5 }
 0x4b3   : > { %5002 = vmatpush.bf16.msrb.mxu3 %v7398_v44 }
 0x4b4   : > { %v3667_v56 = vmax.f32 %v3633_v60, 0.0  ;;  %v3538_v8 = vadd.f32 %v3537_v55, %v3489_v41 }
 0x4b6   : > { %v3685_v63 = vpack.c.bf16 %v3667_v56, %v3665_v36  ;;  %v3668_v13 = vmax.f32 %v3538_v8, 0.0 }
 0x4b7   : > { %v3586_v0 = vpop.f32.mrf.mxu2 }
 0x4b8   : > { %3973 = vmatmul.bf16.gmra.mxu1 %v3685_v63  ;;  %4071 = vmatmul.bf16.gmra.mxu3 %v3685_v63  ;;  %v3587_v10 = vadd.f32 %v3586_v0, %v9458_v50  ;;  %v7892_v0 = vld [vmem:[#allocation13 + $0x74] sm:$0xf0] }
 0x4b9   : > { %v3490_v62 = vpop.f32.mrf.mxu0 }
 0x4ba   : > { %v3491_v15 = vadd.f32 %v3490_v62, %v9455_v5  ;;  %v3636_v24 = vadd.f32 %v3635_v3, %v3587_v10  ;;  %v7329_v3 = vld [vmem:[#allocation13 + $0x70] sm:$0xf] }
 0x4bb   : > { %v7330_v2 = vor.u32 %v7892_v0, %v7329_v3  ;;  %v7393_v62 = vld [vmem:[#allocation13 + $0xf0] sm:$0xf] }
 0x4bc   : > { %v3540_v6 = vadd.f32 %v3539_v49, %v3491_v15  ;;  %v3669_v20 = vmax.f32 %v3636_v24, 0.0  ;;  %v7394_v47 = vor.u32 %v7908_v11, %v7393_v62  ;;  %v7889_v15 = vld [vmem:[#allocation13 + $0x64] sm:$0xf]  ;;  %v7313_v11 = vld [vmem:[#allocation13 + $0x50] sm:$0xf] }
 0x4bd   : > { %4855 = vmatpush.bf16.msra.mxu0 %v7330_v2  ;;  %v7326_v10 = vor.u32 %v7889_v15, %v7323_v17 }
 0x4be   : > { %v3670_v1 = vmax.f32 %v3540_v6, 0.0  ;;  %4904 = vmatpush.bf16.msra.mxu1 %v7394_v47  ;;  %v7888_v47 = vld [vmem:[#allocation13 + $0x54] sm:$0xf0] }
 0x4bf   : > { %v3588_v21 = vpop.f32.mrf.mxu2  ;;  %4954 = vmatpush.bf16.msra.mxu2 %v7326_v10  ;;  %v7314_v15 = vor.u32 %v7888_v47, %v7313_v11  ;;  %v7904_v10 = vld [vmem:[#allocation13 + $0xd4] sm:$0xf0] }
 0x4c0   : > { %v3589_v16 = vadd.f32 %v3588_v21, %v9458_v50  ;;  %v3686_v26 = vpack.c.bf16 %v3670_v1, %v3668_v13  ;;  %v3720_v50 = vld [vmem:[%s9907_s16] sm:$0x3]  ;;  %v7905_v21 = vld [vmem:[#allocation13 + $0xe4] sm:$0xf] }
 0x4c1   : > { %v9507_v52 = vperm.slane %v3720_v50, 0  ;;  %v9510_v25 = vperm.slane %v3720_v50, 1 }
 0x4c2   : > { %v3638_v5 = vadd.f32 %v3637_v59, %v3589_v16  ;;  %3929 = vmatmul.bf16.gmra.mxu0 %v3686_v26  ;;  %4027 = vmatmul.bf16.gmra.mxu2 %v3686_v26  ;;  %v7390_v16 = vor.u32 %v7905_v21, %v7387_v34 }
 0x4c4   : > { %v3671_v33 = vmax.f32 %v3638_v5, 0.0  ;;  %5003 = vmatpush.bf16.msrb.mxu3 %v7390_v16 }
 0x4c6   : > { %v3687_v35 = vpack.c.bf16 %v3671_v33, %v3669_v20 }
 0x4c8   : > { %3978 = vmatmul.bf16.gmra.mxu1 %v3687_v35  ;;  %4076 = vmatmul.bf16.gmra.mxu3 %v3687_v35 }
 0x4cf   : > { %v3895_v27 = vpop.f32.mrf.mxu0 }
 0x4d0   : > { %v3896_v38 = vadd.f32 %v3895_v27, %v9507_v52 }
 0x4d5   : > { %v3944_v9 = vpop.f32.mrf.mxu1  ;;  %v3993_v32 = vpop.f32.mrf.mxu2 }
 0x4d6   : > { %v3945_v48 = vadd.f32 %v3944_v9, %v3896_v38  ;;  %v3994_v51 = vadd.f32 %v3993_v32, %v9510_v25  ;;  %v7321_v32 = vld [vmem:[#allocation13 + $0x60] sm:$0xf] }
 0x4d7   : > { %v3897_v57 = vpop.f32.mrf.mxu0 }
 0x4d8   : > { %v3898_v19 = vadd.f32 %v3897_v57, %v9507_v52  ;;  %v4082_v46 = vmax.f32 %v3945_v48, 0.0  ;;  %v7890_v57 = vld [vmem:[#allocation13 + $0x64] sm:$0xf0] }
 0x4d9   : > { %v7322_v39 = vor.u32 %v7890_v57, %v7321_v32 }
 0x4db   : > { %v4042_v22 = vpop.f32.mrf.mxu3  ;;  %4856 = vmatpush.bf16.msra.mxu0 %v7322_v39 }
 0x4dc   : > { %v4043_v31 = vadd.f32 %v4042_v22, %v3994_v51  ;;  %v7385_v22 = vld [vmem:[#allocation13 + $0xe0] sm:$0xf] }
 0x4dd   : > { %v3946_v23 = vpop.f32.mrf.mxu1  ;;  %v3995_v30 = vpop.f32.mrf.mxu2  ;;  %v7386_v48 = vor.u32 %v7906_v43, %v7385_v22  ;;  %v7305_v43 = vld [vmem:[#allocation13 + $0x40] sm:$0xf] }
 0x4de   : > { %v3947_v54 = vadd.f32 %v3946_v23, %v3898_v19  ;;  %v3996_v55 = vadd.f32 %v3995_v30, %v9510_v25  ;;  %v4083_v41 = vmax.f32 %v4043_v31, 0.0  ;;  %v7887_v23 = vld [vmem:[#allocation13 + $0x54] sm:$0xf]  ;;  %v7315_v30 = vld [vmem:[#allocation13 + $0x58] sm:$0xf0] }
 0x4df   : > { %v3900_v37 = vpop.f32.mrf.mxu0  ;;  %4905 = vmatpush.bf16.msra.mxu1 %v7386_v48  ;;  %v7318_v28 = vor.u32 %v7887_v23, %v7315_v30  ;;  %v7379_v31 = vld [vmem:[#allocation13 + $0xd8] sm:$0xf0]  ;;  %4857 = vmatpush.bf16.msra.mxu0 %v7314_v15  ;;  %v7886_v48 = vld [vmem:[#allocation13 + $0x44] sm:$0xf0] }
 0x4e0   : > { %v4084_v40 = vmax.f32 %v3947_v54, 0.0  ;;  %v3901_v8 = vadd.f32 %v3900_v37, %v9507_v52  ;;  %v7306_v23 = vor.u32 %v7886_v48, %v7305_v43 }
 0x4e1   : > { %4955 = vmatpush.bf16.msra.mxu2 %v7318_v28  ;;  %v7902_v28 = vld [vmem:[#allocation13 + $0xc4] sm:$0xf0] }
 0x4e2   : > { %v4114_v53 = vpack.c.bf16 %v4084_v40, %v4082_v46  ;;  %v7903_v40 = vld [vmem:[#allocation13 + $0xd4] sm:$0xf] }
 0x4e3   : > { %v4044_v58 = vpop.f32.mrf.mxu3  ;;  %4858 = vmatpush.bf16.msra.mxu0 %v7306_v23 }
 0x4e4   : > { %v4045_v60 = vadd.f32 %v4044_v58, %v3996_v55  ;;  %4336 = vmatmul.bf16.vlgmr.msrb.gmra.mxu0 %v4114_v53  ;;  %4434 = vmatmul.bf16.vlgmr.msrb.gmra.mxu2 %v4114_v53  ;;  %v7382_v55 = vor.u32 %v7903_v40, %v7379_v31 }
 0x4e5   : > { %v3949_v36 = vpop.f32.mrf.mxu1  ;;  %v3998_v56 = vpop.f32.mrf.mxu2 }
 0x4e6   : > { %v4085_v63 = vmax.f32 %v4045_v60, 0.0  ;;  %v3950_v6 = vadd.f32 %v3949_v36, %v3901_v8  ;;  %v3999_v59 = vadd.f32 %v3998_v56, %v9510_v25  ;;  %5004 = vmatpush.bf16.msrb.mxu3 %v7382_v55 }
 0x4e7   : > { %v3902_v61 = vpop.f32.mrf.mxu0 }
 0x4e8   : > { %v4115_v4 = vpack.c.bf16 %v4085_v63, %v4083_v41  ;;  %v3903_v13 = vadd.f32 %v3902_v61, %v9507_v52  ;;  %v4086_v26 = vmax.f32 %v3950_v6, 0.0 }
 0x4ea   : > { %4385 = vmatmul.bf16.vlgmr.msrb.gmra.mxu1 %v4115_v4  ;;  %4483 = vmatmul.bf16.vlgmr.msra.gmra.mxu3 %v4115_v4 }
 0x4eb   : > { %v4047_v49 = vpop.f32.mrf.mxu3 }
 0x4ec   : > { %v4048_v12 = vadd.f32 %v4047_v49, %v3999_v59  ;;  %v7377_v49 = vld [vmem:[#allocation13 + $0xd0] sm:$0xf] }
 0x4ed   : > { %v3951_v1 = vpop.f32.mrf.mxu1  ;;  %v4000_v7 = vpop.f32.mrf.mxu2  ;;  %v7378_v6 = vor.u32 %v7904_v10, %v7377_v49  ;;  %v7297_v10 = vld [vmem:[#allocation13 + $0x30] sm:$0xf] }
 0x4ee   : > { %v3952_v14 = vadd.f32 %v3951_v1, %v3903_v13  ;;  %v4001_v45 = vadd.f32 %v4000_v7, %v9510_v25  ;;  %v4087_v50 = vmax.f32 %v4048_v12, 0.0  ;;  %v7885_v1 = vld [vmem:[#allocation13 + $0x44] sm:$0xf]  ;;  %v7307_v7 = vld [vmem:[#allocation13 + $0x48] sm:$0xf0] }
 0x4ef   : > { %v3905_v24 = vpop.f32.mrf.mxu0  ;;  %4906 = vmatpush.bf16.msra.mxu1 %v7378_v6  ;;  %v7310_v21 = vor.u32 %v7885_v1, %v7307_v7  ;;  %v7371_v12 = vld [vmem:[#allocation13 + $0xc8] sm:$0xf0]  ;;  %v7884_v6 = vld [vmem:[#allocation13 + $0x34] sm:$0xf0] }
 0x4f0   : > { %v4088_v5 = vmax.f32 %v3952_v14, 0.0  ;;  %v3906_v19 = vadd.f32 %v3905_v24, %v9507_v52  ;;  %v7298_v1 = vor.u32 %v7884_v6, %v7297_v10  ;;  %v7281_v10 = vld [vmem:[#allocation13 + $0x10] sm:$0xf]  ;;  %v7880_v6 = vld [vmem:[#allocation13 + $0x14] sm:$0xf0] }
 0x4f1   : > { %4956 = vmatpush.bf16.msra.mxu2 %v7310_v21  ;;  %v7900_v21 = vld [vmem:[#allocation13 + $0xb4] sm:$0xf0] }
 0x4f2   : > { %v4116_v29 = vpack.c.bf16 %v4088_v5, %v4086_v26  ;;  %v7901_v5 = vld [vmem:[#allocation13 + $0xc4] sm:$0xf]  ;;  %4859 = vmatpush.bf16.msra.mxu0 %v7298_v1 }
 0x4f3   : > { %v4049_v20 = vpop.f32.mrf.mxu3 }
 0x4f4   : > { %v4050_v33 = vadd.f32 %v4049_v20, %v4001_v45  ;;  %4341 = vmatmul.bf16.gmra.mxu0 %v4116_v29  ;;  %4439 = vmatmul.bf16.gmra.mxu2 %v4116_v29  ;;  %v7374_v29 = vor.u32 %v7901_v5, %v7371_v12 }
 0x4f5   : > { %v3954_v35 = vpop.f32.mrf.mxu1  ;;  %v4003_v27 = vpop.f32.mrf.mxu2 }
 0x4f6   : > { %v4089_v9 = vmax.f32 %v4050_v33, 0.0  ;;  %v3955_v18 = vadd.f32 %v3954_v35, %v3906_v19  ;;  %v4004_v60 = vadd.f32 %v4003_v27, %v9510_v25  ;;  %5005 = vmatpush.bf16.msrb.mxu3 %v7374_v29 }
 0x4f7   : > { %v3907_v38 = vpop.f32.mrf.mxu0 }
 0x4f8   : > { %v4117_v42 = vpack.c.bf16 %v4089_v9, %v4087_v50  ;;  %v3908_v37 = vadd.f32 %v3907_v38, %v9507_v52  ;;  %v4090_v58 = vmax.f32 %v3955_v18, 0.0 }
 0x4fa   : > { %4390 = vmatmul.bf16.gmra.mxu1 %v4117_v42  ;;  %4488 = vmatmul.bf16.gmra.mxu3 %v4117_v42 }
 0x4fb   : > { %v4052_v54 = vpop.f32.mrf.mxu3 }
 0x4fc   : > { %v4053_v56 = vadd.f32 %v4052_v54, %v4004_v60  ;;  %v7369_v54 = vld [vmem:[#allocation13 + $0xc0] sm:$0xf] }
 0x4fd   : > { %v3956_v44 = vpop.f32.mrf.mxu1  ;;  %v4005_v46 = vpop.f32.mrf.mxu2  ;;  %v7370_v18 = vor.u32 %v7902_v28, %v7369_v54  ;;  %v7289_v28 = vld [vmem:[#allocation13 + $0x20] sm:$0xf] }
 0x4fe   : > { %v3957_v51 = vadd.f32 %v3956_v44, %v3908_v37  ;;  %v4006_v41 = vadd.f32 %v4005_v46, %v9510_v25  ;;  %v4091_v4 = vmax.f32 %v4053_v56, 0.0  ;;  %v7883_v44 = vld [vmem:[#allocation13 + $0x34] sm:$0xf]  ;;  %v7299_v46 = vld [vmem:[#allocation13 + $0x38] sm:$0xf0] }
 0x4ff   : > { %v3910_v53 = vpop.f32.mrf.mxu0  ;;  %4907 = vmatpush.bf16.msra.mxu1 %v7370_v18  ;;  %v7302_v40 = vor.u32 %v7883_v44, %v7299_v46  ;;  %v7363_v56 = vld [vmem:[#allocation13 + $0xb8] sm:$0xf0]  ;;  %v7882_v18 = vld [vmem:[#allocation13 + $0x24] sm:$0xf0]  ;;  %v7353_v46 = vld [vmem:[#allocation13 + $0xa0] sm:$0xf] }
 0x500   : > { %v4092_v36 = vmax.f32 %v3957_v51, 0.0  ;;  %v3911_v13 = vadd.f32 %v3910_v53, %v9507_v52  ;;  %v7290_v44 = vor.u32 %v7882_v18, %v7289_v28 }
 0x501   : > { %4957 = vmatpush.bf16.msra.mxu2 %v7302_v40 }
 0x502   : > { %v4118_v63 = vpack.c.bf16 %v4092_v36, %v4090_v58  ;;  %v7899_v36 = vld [vmem:[#allocation13 + $0xb4] sm:$0xf]  ;;  %4860 = vmatpush.bf16.msra.mxu0 %v7290_v44 }
 0x503   : > { %v4054_v3 = vpop.f32.mrf.mxu3 }
 0x504   : > { %v4055_v0 = vadd.f32 %v4054_v3, %v4006_v41  ;;  %4346 = vmatmul.bf16.gmra.mxu0 %v4118_v63  ;;  %4444 = vmatmul.bf16.gmra.mxu2 %v4118_v63  ;;  %v7366_v63 = vor.u32 %v7899_v36, %v7363_v56 }
 0x505   : > { %v3959_v61 = vpop.f32.mrf.mxu1  ;;  %v4008_v2 = vpop.f32.mrf.mxu2 }
 0x506   : > { %v4093_v62 = vmax.f32 %v4055_v0, 0.0  ;;  %v3960_v34 = vadd.f32 %v3959_v61, %v3911_v13  ;;  %v4009_v33 = vadd.f32 %v4008_v2, %v9510_v25  ;;  %5006 = vmatpush.bf16.msrb.mxu3 %v7366_v63 }
 0x507   : > { %v3912_v8 = vpop.f32.mrf.mxu0 }
 0x508   : > { %v4119_v17 = vpack.c.bf16 %v4093_v62, %v4091_v4  ;;  %v3913_v24 = vadd.f32 %v3912_v8, %v9507_v52  ;;  %v4094_v20 = vmax.f32 %v3960_v34, 0.0 }
 0x50a   : > { %4395 = vmatmul.bf16.gmra.mxu1 %v4119_v17  ;;  %4493 = vmatmul.bf16.gmra.mxu3 %v4119_v17 }
 0x50b   : > { %v4057_v14 = vpop.f32.mrf.mxu3 }
 0x50c   : > { %v4058_v27 = vadd.f32 %v4057_v14, %v4009_v33  ;;  %v7361_v14 = vld [vmem:[#allocation13 + $0xb0] sm:$0xf] }
 0x50d   : > { %v3961_v16 = vpop.f32.mrf.mxu1  ;;  %v4010_v26 = vpop.f32.mrf.mxu2  ;;  %v7362_v34 = vor.u32 %v7900_v21, %v7361_v14  ;;  %v7896_v14 = vld [vmem:[#allocation13 + $0x94] sm:$0xf0] }
 0x50e   : > { %v3962_v59 = vadd.f32 %v3961_v16, %v3913_v24  ;;  %v4011_v50 = vadd.f32 %v4010_v26, %v9510_v25  ;;  %v4095_v42 = vmax.f32 %v4058_v27, 0.0  ;;  %v7881_v16 = vld [vmem:[#allocation13 + $0x24] sm:$0xf]  ;;  %v7291_v26 = vld [vmem:[#allocation13 + $0x28] sm:$0xf0] }
 0x50f   : > { %v3915_v45 = vpop.f32.mrf.mxu0  ;;  %4908 = vmatpush.bf16.msra.mxu1 %v7362_v34  ;;  %v7294_v5 = vor.u32 %v7881_v16, %v7291_v26  ;;  %v7355_v27 = vld [vmem:[#allocation13 + $0xa8] sm:$0xf0] }
 0x510   : > { %v4096_v35 = vmax.f32 %v3962_v59, 0.0  ;;  %v3916_v37 = vadd.f32 %v3915_v45, %v9507_v52 }
 0x511   : > { %4958 = vmatpush.bf16.msra.mxu2 %v7294_v5 }
 0x512   : > { %v4120_v9 = vpack.c.bf16 %v4096_v35, %v4094_v20  ;;  %v7897_v35 = vld [vmem:[#allocation13 + $0xa4] sm:$0xf] }
 0x513   : > { %v4059_v32 = vpop.f32.mrf.mxu3 }
 0x514   : > { %v4060_v57 = vadd.f32 %v4059_v32, %v4011_v50  ;;  %4351 = vmatmul.bf16.gmra.mxu0 %v4120_v9  ;;  %4449 = vmatmul.bf16.gmra.mxu2 %v4120_v9  ;;  %v7358_v9 = vor.u32 %v7897_v35, %v7355_v27 }
 0x515   : > { %v3964_v38 = vpop.f32.mrf.mxu1  ;;  %v4013_v39 = vpop.f32.mrf.mxu2 }
 0x516   : > { %v4097_v22 = vmax.f32 %v4060_v57, 0.0  ;;  %v3965_v31 = vadd.f32 %v3964_v38, %v3916_v37  ;;  %v4014_v0 = vadd.f32 %v4013_v39, %v9510_v25  ;;  %5007 = vmatpush.bf16.msrb.mxu3 %v7358_v9 }
 0x517   : > { %v3917_v19 = vpop.f32.mrf.mxu0 }
 0x518   : > { %v4121_v30 = vpack.c.bf16 %v4097_v22, %v4095_v42  ;;  %v3918_v53 = vadd.f32 %v3917_v19, %v9507_v52  ;;  %v4098_v3 = vmax.f32 %v3965_v31, 0.0 }
 0x51a   : > { %4400 = vmatmul.bf16.gmra.mxu1 %v4121_v30  ;;  %4498 = vmatmul.bf16.gmra.mxu3 %v4121_v30 }
 0x51b   : > { %v4062_v51 = vpop.f32.mrf.mxu3 }
 0x51c   : > { %v4063_v2 = vadd.f32 %v4062_v51, %v4014_v0  ;;  %v7898_v51 = vld [vmem:[#allocation13 + $0xa4] sm:$0xf0] }
 0x51d   : > { %v3966_v55 = vpop.f32.mrf.mxu1  ;;  %v4015_v58 = vpop.f32.mrf.mxu2  ;;  %v7354_v31 = vor.u32 %v7898_v51, %v7353_v46  ;;  %v7337_v51 = vld [vmem:[#allocation13 + $0x80] sm:$0xf] }
 0x51e   : > { %v3967_v60 = vadd.f32 %v3966_v55, %v3918_v53  ;;  %v4016_v4 = vadd.f32 %v4015_v58, %v9510_v25  ;;  %v4099_v17 = vmax.f32 %v4063_v2, 0.0  ;;  %v7879_v55 = vld [vmem:[#allocation13 + $0x14] sm:$0xf]  ;;  %v7283_v58 = vld [vmem:[#allocation13 + $0x18] sm:$0xf0] }
 0x51f   : > { %v3920_v41 = vpop.f32.mrf.mxu0  ;;  %4909 = vmatpush.bf16.msra.mxu1 %v7354_v31  ;;  %v7286_v56 = vor.u32 %v7879_v55, %v7283_v58 }
 0x520   : > { %v4100_v61 = vmax.f32 %v3967_v60, 0.0  ;;  %v3921_v24 = vadd.f32 %v3920_v41, %v9507_v52  ;;  %v7895_v60 = vld [vmem:[#allocation13 + $0x94] sm:$0xf]  ;;  %v7347_v41 = vld [vmem:[#allocation13 + $0x98] sm:$0xf0] }
 0x521   : > { %v7350_v0 = vor.u32 %v7895_v60, %v7347_v41  ;;  %4959 = vmatpush.bf16.msra.mxu2 %v7286_v56 }
 0x522   : > { %v4122_v62 = vpack.c.bf16 %v4100_v61, %v4098_v3 }
 0x523   : > { %v4064_v11 = vpop.f32.mrf.mxu3  ;;  %5008 = vmatpush.bf16.msrb.mxu3 %v7350_v0 }
 0x524   : > { %v4065_v47 = vadd.f32 %v4064_v11, %v4016_v4  ;;  %4356 = vmatmul.bf16.gmra.mxu0 %v4122_v62  ;;  %4454 = vmatmul.bf16.gmra.mxu2 %v4122_v62 }
 0x525   : > { %v3969_v8 = vpop.f32.mrf.mxu1  ;;  %v4018_v15 = vpop.f32.mrf.mxu2 }
 0x526   : > { %v4101_v49 = vmax.f32 %v4065_v47, 0.0  ;;  %v3970_v12 = vadd.f32 %v3969_v8, %v3921_v24  ;;  %v4019_v57 = vadd.f32 %v4018_v15, %v9510_v25 }
 0x527   : > { %v3922_v13 = vpop.f32.mrf.mxu0 }
 0x528   : > { %v4123_v7 = vpack.c.bf16 %v4101_v49, %v4099_v17  ;;  %v3923_v45 = vadd.f32 %v3922_v13, %v9507_v52  ;;  %v4102_v32 = vmax.f32 %v3970_v12, 0.0  ;;  %v7345_v13 = vld [vmem:[#allocation13 + $0x90] sm:$0xf] }
 0x529   : > { %v7346_v34 = vor.u32 %v7896_v14, %v7345_v13 }
 0x52a   : > { %4405 = vmatmul.bf16.gmra.mxu1 %v4123_v7  ;;  %4503 = vmatmul.bf16.gmra.mxu3 %v4123_v7  ;;  %v7282_v7 = vor.u32 %v7880_v6, %v7281_v10  ;;  %v7916_v10 = vld [vmem:[#allocation15 + $0x38] sm:$0xff] }
 0x52b   : > { %v4067_v59 = vpop.f32.mrf.mxu3  ;;  %4910 = vmatpush.bf16.msra.mxu1 %v7346_v34 }
 0x52c   : > { %v4068_v39 = vadd.f32 %v4067_v59, %v4019_v57  ;;  %4861 = vmatpush.bf16.msra.mxu0 %v7282_v7 }
 0x52d   : > { %v3971_v29 = vpop.f32.mrf.mxu1  ;;  %v4020_v20 = vpop.f32.mrf.mxu2 }
 0x52e   : > { %v3972_v33 = vadd.f32 %v3971_v29, %v3923_v45  ;;  %v4021_v42 = vadd.f32 %v4020_v20, %v9510_v25  ;;  %v4103_v30 = vmax.f32 %v4068_v39, 0.0  ;;  %v7877_v29 = vld [vmem:[#allocation13 + $0x4] sm:$0xf]  ;;  %v7275_v20 = vld [vmem:[#allocation13 + $0x8] sm:$0xf0] }
 0x52f   : > { %v3925_v50 = vpop.f32.mrf.mxu0  ;;  %v7278_v27 = vor.u32 %v7877_v29, %v7275_v20  ;;  %v7923_v20 = vld [vmem:[#allocation15 + $0x70] sm:$0xff] }
 0x530   : > { %v4104_v38 = vmax.f32 %v3972_v33, 0.0  ;;  %v3926_v53 = vadd.f32 %v3925_v50, %v9507_v52  ;;  %v7893_v33 = vld [vmem:[#allocation13 + $0x84] sm:$0xf]  ;;  %v7339_v50 = vld [vmem:[#allocation13 + $0x88] sm:$0xf0] }
 0x531   : > { %v7342_v57 = vor.u32 %v7893_v33, %v7339_v50  ;;  %4960 = vmatpush.bf16.msra.mxu2 %v7278_v27 }
 0x532   : > { %v4124_v22 = vpack.c.bf16 %v4104_v38, %v4102_v32 }
 0x533   : > { %v4069_v43 = vpop.f32.mrf.mxu3  ;;  %5009 = vmatpush.bf16.msrb.mxu3 %v7342_v57 }
 0x534   : > { %v4070_v48 = vadd.f32 %v4069_v43, %v4021_v42  ;;  %4361 = vmatmul.bf16.gmra.mxu0 %v4124_v22  ;;  %4459 = vmatmul.bf16.gmra.mxu2 %v4124_v22 }
 0x535   : > { %v3974_v19 = vpop.f32.mrf.mxu1  ;;  %v4023_v23 = vpop.f32.mrf.mxu2 }
 0x536   : > { %v4105_v54 = vmax.f32 %v4070_v48, 0.0  ;;  %v3975_v63 = vadd.f32 %v3974_v19, %v3926_v53  ;;  %v4024_v47 = vadd.f32 %v4023_v23, %v9510_v25  ;;  %v7273_v19 = vld [vmem:[#allocation13] sm:$0xf]  ;;  %v7878_v23 = vld [vmem:[#allocation13 + $0x4] sm:$0xf0] }
 0x537   : > { %v3927_v37 = vpop.f32.mrf.mxu0  ;;  %v7274_v18 = vor.u32 %v7878_v23, %v7273_v19 }
 0x538   : > { %v4125_v40 = vpack.c.bf16 %v4105_v54, %v4103_v30  ;;  %v3928_v3 = vadd.f32 %v3927_v37, %v9507_v52  ;;  %v4106_v11 = vmax.f32 %v3975_v63, 0.0  ;;  %v7924_v63 = vld [vmem:[#allocation15 + $0x78] sm:$0xff] }
 0x539   : > { %4862 = vmatpush.bf16.msra.mxu0 %v7274_v18  ;;  %5339 = vmatpush.bf16.msrb.mxu2 %v7924_v63 }
 0x53a   : > { %4410 = vmatmul.bf16.gmra.mxu1 %v4125_v40  ;;  %4508 = vmatmul.bf16.gmra.mxu3 %v4125_v40  ;;  %v7894_v40 = vld [vmem:[#allocation13 + $0x84] sm:$0xf0] }
 0x53b   : > { %v4072_v36 = vpop.f32.mrf.mxu3  ;;  %v7338_v53 = vor.u32 %v7894_v40, %v7337_v51  ;;  %v7922_v51 = vld [vmem:[#allocation15 + $0x68] sm:$0xff] }
 0x53c   : > { %v4073_v15 = vadd.f32 %v4072_v36, %v4024_v47 }
 0x53d   : > { %v3976_v61 = vpop.f32.mrf.mxu1  ;;  %v4025_v2 = vpop.f32.mrf.mxu2  ;;  %4911 = vmatpush.bf16.msra.mxu1 %v7338_v53  ;;  %5340 = vmatpush.bf16.msrb.mxu2 %v7923_v20 }
 0x53e   : > { %v3977_v4 = vadd.f32 %v3976_v61, %v3928_v3  ;;  %v4026_v17 = vadd.f32 %v4025_v2, %v9510_v25  ;;  %v4107_v26 = vmax.f32 %v4073_v15, 0.0 }
 0x53f   : > { %v3930_v62 = vpop.f32.mrf.mxu0 }
 0x540   : > { %v4108_v8 = vmax.f32 %v3977_v4, 0.0  ;;  %v3931_v45 = vadd.f32 %v3930_v62, %v9507_v52 }
 0x541   : > { %5290 = vmatpush.bf16.msrb.mxu1 %v7916_v10  ;;  %5341 = vmatpush.bf16.msrb.mxu2 %v7922_v51 }
 0x542   : > { %v4126_v49 = vpack.c.bf16 %v4108_v8, %v4106_v11 }
 0x543   : > { %v4074_v1 = vpop.f32.mrf.mxu3 }
 0x544   : > { %v4075_v21 = vadd.f32 %v4074_v1, %v4026_v17  ;;  %4366 = vmatmul.bf16.gmra.mxu0 %v4126_v49  ;;  %4464 = vmatmul.bf16.gmra.mxu2 %v4126_v49  ;;  %v4639_v49 = vld [vmem:[%s9913_s22 + $0x8] sm:$0xf] }
 0x545   : > { %v3979_v24 = vpop.f32.mrf.mxu1  ;;  %v4028_v16 = vpop.f32.mrf.mxu2  ;;  %v5112_v6 = vunpack.c.l.b16 %v4639_v49 }
 0x546   : > { %v4109_v59 = vmax.f32 %v4075_v21, 0.0  ;;  %v3980_v9 = vadd.f32 %v3979_v24, %v3931_v45  ;;  %v4029_v43 = vadd.f32 %v4028_v16, %v9510_v25 }
 0x547   : > { %v3932_v12 = vpop.f32.mrf.mxu0  ;;  %v5114_v21 = vpack.c.b16 %v5112_v6, %v5112_v6 }
 0x548   : > { %v4127_v5 = vpack.c.bf16 %v4109_v59, %v4107_v26  ;;  %v3933_v32 = vadd.f32 %v3932_v12, %v9507_v52  ;;  %v4110_v22 = vmax.f32 %v3980_v9, 0.0 }
 0x549   : > { %v5143_v26 = vsel %vm5141_vm2, %v5114_v21, 0 }
 0x54a   : > { %4415 = vmatmul.bf16.gmra.mxu1 %v4127_v5  ;;  %4513 = vmatmul.bf16.gmra.mxu3 %v4127_v5 }
 0x54b   : > { %v4077_v35 = vpop.f32.mrf.mxu3  ;;  %5151 = vmatpush.bf16.msrb.mxu0 %v5143_v26 }
 0x54c   : > { %v4078_v30 = vadd.f32 %v4077_v35, %v4029_v43 }
 0x54d   : > { %v3981_v38 = vpop.f32.mrf.mxu1  ;;  %v4030_v42 = vpop.f32.mrf.mxu2 }
 0x54e   : > { %v3982_v39 = vadd.f32 %v3981_v38, %v3933_v32  ;;  %v4031_v54 = vadd.f32 %v4030_v42, %v9510_v25  ;;  %v4111_v52 = vmax.f32 %v4078_v30, 0.0  ;;  %v4162_v25 = vld [vmem:[%s9909_s18] sm:$0x3] }
 0x54f   : > { %v9546_v36 = vperm.slane %v4162_v25, 0  ;;  %v9549_v61 = vperm.slane %v4162_v25, 1 }
 0x550   : > { %v4112_v48 = vmax.f32 %v3982_v39, 0.0 }
 0x552   : > { %v4128_v28 = vpack.c.bf16 %v4112_v48, %v4110_v22  ;;  %v7915_v22 = vld [vmem:[#allocation15 + $0x30] sm:$0xff] }
 0x553   : > { %v4079_v37 = vpop.f32.mrf.mxu3  ;;  %5291 = vmatpush.bf16.msrb.mxu1 %v7915_v22 }
 0x554   : > { %v4080_v44 = vadd.f32 %v4079_v37, %v4031_v54  ;;  %4371 = vmatmul.bf16.gmra.mxu0 %v4128_v28  ;;  %4469 = vmatmul.bf16.gmra.mxu2 %v4128_v28 }
 0x556   : > { %v4113_v46 = vmax.f32 %v4080_v44, 0.0 }
 0x558   : > { %v4129_v31 = vpack.c.bf16 %v4113_v46, %v4111_v52 }
 0x55a   : > { %4420 = vmatmul.bf16.gmra.mxu1 %v4129_v31  ;;  %4518 = vmatmul.bf16.gmra.mxu3 %v4129_v31 }
 0x561   : > { %v4337_v55 = vpop.f32.mrf.mxu0 }
 0x562   : > { %v4338_v41 = vadd.f32 %v4337_v55, %v9546_v36 }
 0x567   : > { %v4386_v58 = vpop.f32.mrf.mxu1  ;;  %v4435_v60 = vpop.f32.mrf.mxu2 }
 0x568   : > { %v4387_v0 = vadd.f32 %v4386_v58, %v4338_v41  ;;  %v4436_v15 = vadd.f32 %v4435_v60, %v9549_v61 }
 0x569   : > { %v4339_v56 = vpop.f32.mrf.mxu0 }
 0x56a   : > { %v4340_v2 = vadd.f32 %v4339_v56, %v9546_v36  ;;  %v4524_v8 = vmax.f32 %v4387_v0, 0.0 }
 0x56d   : > { %v4484_v3 = vpop.f32.mrf.mxu3 }
 0x56e   : > { %v4485_v13 = vadd.f32 %v4484_v3, %v4436_v15  ;;  %v7914_v3 = vld [vmem:[#allocation15 + $0x28] sm:$0xff] }
 0x56f   : > { %v4388_v4 = vpop.f32.mrf.mxu1  ;;  %v4437_v62 = vpop.f32.mrf.mxu2  ;;  %5292 = vmatpush.bf16.msrb.mxu1 %v7914_v3 }
 0x570   : > { %v4389_v11 = vadd.f32 %v4388_v4, %v4340_v2  ;;  %v4438_v7 = vadd.f32 %v4437_v62, %v9549_v61  ;;  %v4525_v59 = vmax.f32 %v4485_v13, 0.0  ;;  %v7921_v13 = vld [vmem:[#allocation15 + $0x60] sm:$0xff] }
 0x571   : > { %v4342_v47 = vpop.f32.mrf.mxu0  ;;  %5342 = vmatpush.bf16.msrb.mxu2 %v7921_v13 }
 0x572   : > { %v4526_v17 = vmax.f32 %v4389_v11, 0.0  ;;  %v4343_v29 = vadd.f32 %v4342_v47, %v9546_v36 }
 0x574   : > { %v9556_v1 = vpack.c.bf16 %v4526_v17, %v4524_v8 }
 0x575   : > { %v4486_v14 = vpop.f32.mrf.mxu3 }
 0x576   : > { %v4487_v34 = vadd.f32 %v4486_v14, %v4438_v7  ;;  %4863 = vmatmul.bf16.vlgmr.msra.gmra.mxu0 %v9556_v1  ;;  %4961 = vmatmul.bf16.vlgmr.msra.gmra.mxu2 %v9556_v1 }
 0x577   : > { %v4391_v24 = vpop.f32.mrf.mxu1  ;;  %v4440_v16 = vpop.f32.mrf.mxu2 }
 0x578   : > { %v4527_v5 = vmax.f32 %v4487_v34, 0.0  ;;  %v4392_v35 = vadd.f32 %v4391_v24, %v4343_v29  ;;  %v4441_v39 = vadd.f32 %v4440_v16, %v9549_v61  ;;  %v7913_v29 = vld [vmem:[#allocation15 + $0x20] sm:$0xff] }
 0x579   : > { %v4344_v12 = vpop.f32.mrf.mxu0  ;;  %5293 = vmatpush.bf16.msrb.mxu1 %v7913_v29 }
 0x57a   : > { %v9561_v45 = vpack.c.bf16 %v4527_v5, %v4525_v59  ;;  %v4345_v27 = vadd.f32 %v4344_v12, %v9546_v36  ;;  %v4528_v38 = vmax.f32 %v4392_v35, 0.0 }
 0x57c   : > { %4912 = vmatmul.bf16.vlgmr.msra.gmra.mxu1 %v9561_v45  ;;  %5010 = vmatmul.bf16.vlgmr.msrb.gmra.mxu3 %v9561_v45 }
 0x57d   : > { %v4489_v33 = vpop.f32.mrf.mxu3 }
 0x57e   : > { %v4490_v43 = vadd.f32 %v4489_v33, %v4441_v39 }
 0x57f   : > { %v4393_v50 = vpop.f32.mrf.mxu1  ;;  %v4442_v9 = vpop.f32.mrf.mxu2 }
 0x580   : > { %v4394_v32 = vadd.f32 %v4393_v50, %v4345_v27  ;;  %v4443_v48 = vadd.f32 %v4442_v9, %v9549_v61  ;;  %v4529_v18 = vmax.f32 %v4490_v43, 0.0  ;;  %v7920_v43 = vld [vmem:[#allocation15 + $0x58] sm:$0xff] }
 0x581   : > { %v4347_v57 = vpop.f32.mrf.mxu0  ;;  %5343 = vmatpush.bf16.msrb.mxu2 %v7920_v43  ;;  %v7929_v43 = vld [vmem:[%s9915_s24 + $0x18] sm:$0xff] }
 0x582   : > { %v4530_v42 = vmax.f32 %v4394_v32, 0.0  ;;  %v4348_v46 = vadd.f32 %v4347_v57, %v9546_v36 }
 0x584   : > { %v9569_v19 = vpack.c.bf16 %v4530_v42, %v4528_v38 }
 0x585   : > { %v4491_v23 = vpop.f32.mrf.mxu3 }
 0x586   : > { %v4492_v30 = vadd.f32 %v4491_v23, %v4443_v48  ;;  %4868 = vmatmul.bf16.gmra.mxu0 %v9569_v19  ;;  %4966 = vmatmul.bf16.gmra.mxu2 %v9569_v19 }
 0x587   : > { %v4396_v54 = vpop.f32.mrf.mxu1  ;;  %v4445_v28 = vpop.f32.mrf.mxu2 }
 0x588   : > { %v4531_v37 = vmax.f32 %v4492_v30, 0.0  ;;  %v4397_v31 = vadd.f32 %v4396_v54, %v4348_v46  ;;  %v4446_v41 = vadd.f32 %v4445_v28, %v9549_v61 }
 0x589   : > { %v4349_v44 = vpop.f32.mrf.mxu0 }
 0x58a   : > { %v9573_v52 = vpack.c.bf16 %v4531_v37, %v4529_v18  ;;  %v4350_v53 = vadd.f32 %v4349_v44, %v9546_v36  ;;  %v4532_v56 = vmax.f32 %v4397_v31, 0.0  ;;  %v7912_v31 = vld [vmem:[#allocation15 + $0x18] sm:$0xff] }
 0x58b   : > { %5294 = vmatpush.bf16.msrb.mxu1 %v7912_v31 }
 0x58c   : > { %4917 = vmatmul.bf16.gmra.mxu1 %v9573_v52  ;;  %5015 = vmatmul.bf16.gmra.mxu3 %v9573_v52 }
 0x58d   : > { %v4494_v40 = vpop.f32.mrf.mxu3 }
 0x58e   : > { %v4495_v0 = vadd.f32 %v4494_v40, %v4446_v41  ;;  %v7925_v40 = vld [vmem:[%s9913_s22] sm:$0xff] }
 0x58f   : > { %v4398_v55 = vpop.f32.mrf.mxu1  ;;  %v4447_v25 = vpop.f32.mrf.mxu2  ;;  %5152 = vmatpush.bf16.msrb.mxu0 %v7925_v40 }
 0x590   : > { %v4399_v58 = vadd.f32 %v4398_v55, %v4350_v53  ;;  %v4448_v2 = vadd.f32 %v4447_v25, %v9549_v61  ;;  %v4533_v15 = vmax.f32 %v4495_v0, 0.0 }
 0x591   : > { %v4352_v60 = vpop.f32.mrf.mxu0 }
 0x592   : > { %v4534_v63 = vmax.f32 %v4399_v58, 0.0  ;;  %v4353_v6 = vadd.f32 %v4352_v60, %v9546_v36 }
 0x594   : > { %v9581_v4 = vpack.c.bf16 %v4534_v63, %v4532_v56 }
 0x595   : > { %v4496_v62 = vpop.f32.mrf.mxu3 }
 0x596   : > { %v4497_v11 = vadd.f32 %v4496_v62, %v4448_v2  ;;  %4873 = vmatmul.bf16.gmra.mxu0 %v9581_v4  ;;  %4971 = vmatmul.bf16.gmra.mxu2 %v9581_v4 }
 0x597   : > { %v4401_v47 = vpop.f32.mrf.mxu1  ;;  %v4450_v8 = vpop.f32.mrf.mxu2 }
 0x598   : > { %v4535_v17 = vmax.f32 %v4497_v11, 0.0  ;;  %v4402_v14 = vadd.f32 %v4401_v47, %v4353_v6  ;;  %v4451_v5 = vadd.f32 %v4450_v8, %v9549_v61  ;;  %v7919_v11 = vld [vmem:[#allocation15 + $0x50] sm:$0xff]  ;;  %v7933_v47 = vld [vmem:[%s9915_s24 + $0x38] sm:$0xff] }
 0x599   : > { %v4354_v49 = vpop.f32.mrf.mxu0  ;;  %5344 = vmatpush.bf16.msrb.mxu2 %v7919_v11  ;;  %5527 = vmatpush.bf16.msra.mxu3 %v7933_v47  ;;  %v7926_v11 = vld [vmem:[%s9915_s24] sm:$0xff] }
 0x59a   : > { %v9585_v10 = vpack.c.bf16 %v4535_v17, %v4533_v15  ;;  %v4355_v21 = vadd.f32 %v4354_v49, %v9546_v36  ;;  %v4536_v59 = vmax.f32 %v4402_v14, 0.0 }
 0x59c   : > { %4922 = vmatmul.bf16.gmra.mxu1 %v9585_v10  ;;  %5020 = vmatmul.bf16.gmra.mxu3 %v9585_v10 }
 0x59d   : > { %v4499_v7 = vpop.f32.mrf.mxu3 }
 0x59e   : > { %v4500_v20 = vadd.f32 %v4499_v7, %v4451_v5  ;;  %v7932_v7 = vld [vmem:[%s9915_s24 + $0x30] sm:$0xff] }
 0x59f   : > { %v4403_v34 = vpop.f32.mrf.mxu1  ;;  %v4452_v24 = vpop.f32.mrf.mxu2  ;;  %5528 = vmatpush.bf16.msra.mxu3 %v7932_v7 }
 0x5a0   : > { %v4404_v16 = vadd.f32 %v4403_v34, %v4355_v21  ;;  %v4453_v33 = vadd.f32 %v4452_v24, %v9549_v61  ;;  %v4537_v57 = vmax.f32 %v4500_v20, 0.0 }
 0x5a1   : > { %v4357_v26 = vpop.f32.mrf.mxu0 }
 0x5a2   : > { %v4538_v12 = vmax.f32 %v4404_v16, 0.0  ;;  %v4358_v22 = vadd.f32 %v4357_v26, %v9546_v36  ;;  %v7911_v16 = vld [vmem:[#allocation15 + $0x10] sm:$0xff] }
 0x5a3   : > { %5295 = vmatpush.bf16.msrb.mxu1 %v7911_v16 }
 0x5a4   : > { %v9593_v35 = vpack.c.bf16 %v4538_v12, %v4536_v59  ;;  %v7931_v12 = vld [vmem:[%s9915_s24 + $0x28] sm:$0xff] }
 0x5a5   : > { %v4501_v27 = vpop.f32.mrf.mxu3  ;;  %5529 = vmatpush.bf16.msra.mxu3 %v7931_v12 }
 0x5a6   : > { %v4502_v50 = vadd.f32 %v4501_v27, %v4453_v33  ;;  %4878 = vmatmul.bf16.gmra.mxu0 %v9593_v35  ;;  %4976 = vmatmul.bf16.gmra.mxu2 %v9593_v35 }
 0x5a7   : > { %v4406_v9 = vpop.f32.mrf.mxu1  ;;  %v4455_v32 = vpop.f32.mrf.mxu2 }
 0x5a8   : > { %v4539_v38 = vmax.f32 %v4502_v50, 0.0  ;;  %v4407_v23 = vadd.f32 %v4406_v9, %v4358_v22  ;;  %v4456_v46 = vadd.f32 %v4455_v32, %v9549_v61  ;;  %v7930_v32 = vld [vmem:[%s9915_s24 + $0x20] sm:$0xff]  ;;  %v7918_v22 = vld [vmem:[#allocation15 + $0x48] sm:$0xff] }
 0x5a9   : > { %v4359_v39 = vpop.f32.mrf.mxu0  ;;  %5530 = vmatpush.bf16.msra.mxu3 %v7930_v32  ;;  %5345 = vmatpush.bf16.msrb.mxu2 %v7918_v22  ;;  %v4604_v32 = vld [vmem:[%s9911_s20] sm:$0x3] }
 0x5aa   : > { %v9597_v42 = vpack.c.bf16 %v4539_v38, %v4537_v57  ;;  %v4360_v30 = vadd.f32 %v4359_v39, %v9546_v36  ;;  %v4540_v44 = vmax.f32 %v4407_v23, 0.0 }
 0x5ac   : > { %4927 = vmatmul.bf16.gmra.mxu1 %v9597_v42  ;;  %5025 = vmatmul.bf16.gmra.mxu3 %v9597_v42 }
 0x5ad   : > { %v4504_v48 = vpop.f32.mrf.mxu3  ;;  %5531 = vmatpush.bf16.msra.mxu3 %v7929_v43  ;;  %v9688_v43 = vperm.slane %v4604_v32, 0 }
 0x5ae   : > { %v4505_v53 = vadd.f32 %v4504_v48, %v4456_v46  ;;  %v7910_v48 = vld [vmem:[#allocation15 + $0x8] sm:$0xff] }
 0x5af   : > { %v4408_v54 = vpop.f32.mrf.mxu1  ;;  %v4457_v28 = vpop.f32.mrf.mxu2  ;;  %5296 = vmatpush.bf16.msrb.mxu1 %v7910_v48  ;;  %v7941_v48 = vld [vmem:[%s9915_s24 + $0x78] sm:$0xff] }
 0x5b0   : > { %v4409_v18 = vadd.f32 %v4408_v54, %v4360_v30  ;;  %v4458_v55 = vadd.f32 %v4457_v28, %v9549_v61  ;;  %v4541_v63 = vmax.f32 %v4505_v53, 0.0  ;;  %5576 = vmatpush.bf16.msra.mxu0 %v7941_v48 }
 0x5b1   : > { %v4362_v37 = vpop.f32.mrf.mxu0 }
 0x5b2   : > { %v4542_v51 = vmax.f32 %v4409_v18, 0.0  ;;  %v4363_v62 = vadd.f32 %v4362_v37, %v9546_v36  ;;  %v7928_v37 = vld [vmem:[%s9915_s24 + $0x10] sm:$0xff] }
 0x5b3   : > { %5532 = vmatpush.bf16.msra.mxu3 %v7928_v37 }
 0x5b4   : > { %v9608_v25 = vpack.c.bf16 %v4542_v51, %v4540_v44 }
 0x5b5   : > { %v4506_v58 = vpop.f32.mrf.mxu3 }
 0x5b6   : > { %v4507_v60 = vadd.f32 %v4506_v58, %v4458_v55  ;;  %4883 = vmatmul.bf16.gmra.mxu0 %v9608_v25  ;;  %4981 = vmatmul.bf16.gmra.mxu2 %v9608_v25 }
 0x5b7   : > { %v4411_v56 = vpop.f32.mrf.mxu1  ;;  %v4460_v41 = vpop.f32.mrf.mxu2 }
 0x5b8   : > { %v4543_v3 = vmax.f32 %v4507_v60, 0.0  ;;  %v4412_v15 = vadd.f32 %v4411_v56, %v4363_v62  ;;  %v4461_v34 = vadd.f32 %v4460_v41, %v9549_v61  ;;  %v7927_v60 = vld [vmem:[%s9915_s24 + $0x8] sm:$0xff] }
 0x5b9   : > { %v4364_v0 = vpop.f32.mrf.mxu0  ;;  %5533 = vmatpush.bf16.msra.mxu3 %v7927_v60 }
 0x5ba   : > { %v9612_v2 = vpack.c.bf16 %v4543_v3, %v4541_v63  ;;  %v4365_v17 = vadd.f32 %v4364_v0, %v9546_v36  ;;  %v4544_v21 = vmax.f32 %v4412_v15, 0.0 }
 0x5bc   : > { %4932 = vmatmul.bf16.gmra.mxu1 %v9612_v2  ;;  %5030 = vmatmul.bf16.gmra.mxu3 %v9612_v2 }
 0x5bd   : > { %v4509_v8 = vpop.f32.mrf.mxu3  ;;  %5534 = vmatpush.bf16.msra.mxu3 %v7926_v11  ;;  %v7940_v11 = vld [vmem:[%s9915_s24 + $0x70] sm:$0xff] }
 0x5be   : > { %v4510_v26 = vadd.f32 %v4509_v8, %v4461_v34  ;;  %5577 = vmatpush.bf16.msra.mxu0 %v7940_v11 }
 0x5bf   : > { %v4413_v49 = vpop.f32.mrf.mxu1  ;;  %v4462_v6 = vpop.f32.mrf.mxu2 }
 0x5c0   : > { %v4414_v13 = vadd.f32 %v4413_v49, %v4365_v17  ;;  %v4463_v59 = vadd.f32 %v4462_v6, %v9549_v61  ;;  %v4545_v50 = vmax.f32 %v4510_v26, 0.0  ;;  %v7917_v17 = vld [vmem:[#allocation15 + $0x40] sm:$0xff] }
 0x5c1   : > { %v4367_v14 = vpop.f32.mrf.mxu0  ;;  %5346 = vmatpush.bf16.msrb.mxu2 %v7917_v17 }
 0x5c2   : > { %v4546_v24 = vmax.f32 %v4414_v13, 0.0  ;;  %v4368_v39 = vadd.f32 %v4367_v14, %v9546_v36 }
 0x5c4   : > { %v9626_v5 = vpack.c.bf16 %v4546_v24, %v4544_v21  ;;  %v7909_v21 = vld [vmem:[#allocation15] sm:$0xff] }
 0x5c5   : > { %v4511_v29 = vpop.f32.mrf.mxu3  ;;  %5297 = vmatpush.bf16.msrb.mxu1 %v7909_v21  ;;  %v7631_v21 = vld [vmem:[%s9681_s2 + $0x10] sm:$0xff] }
 0x5c6   : > { %v4512_v20 = vadd.f32 %v4511_v29, %v4463_v59  ;;  %4888 = vmatmul.bf16.gmra.mxu0 %v9626_v5  ;;  %4986 = vmatmul.bf16.gmra.mxu2 %v9626_v5 }
 0x5c7   : > { %v4416_v33 = vpop.f32.mrf.mxu1  ;;  %v4465_v27 = vpop.f32.mrf.mxu2 }
 0x5c8   : > { %v4547_v9 = vmax.f32 %v4512_v20, 0.0  ;;  %v4417_v30 = vadd.f32 %v4416_v33, %v4368_v39  ;;  %v4466_v40 = vadd.f32 %v4465_v27, %v9549_v61 }
 0x5c9   : > { %v4369_v57 = vpop.f32.mrf.mxu0 }
 0x5ca   : > { %v9636_v38 = vpack.c.bf16 %v4547_v9, %v4545_v50  ;;  %v4370_v54 = vadd.f32 %v4369_v57, %v9546_v36  ;;  %v4548_v51 = vmax.f32 %v4417_v30, 0.0 }
 0x5cc   : > { %4937 = vmatmul.bf16.gmra.mxu1 %v9636_v38  ;;  %5035 = vmatmul.bf16.gmra.mxu3 %v9636_v38 }
 0x5cd   : > { %v4514_v23 = vpop.f32.mrf.mxu3 }
 0x5ce   : > { %v4515_v53 = vadd.f32 %v4514_v23, %v4466_v40 }
 0x5cf   : > { %v4418_v28 = vpop.f32.mrf.mxu1  ;;  %v4467_v18 = vpop.f32.mrf.mxu2 }
 0x5d0   : > { %v4419_v44 = vadd.f32 %v4418_v28, %v4370_v54  ;;  %v4468_v55 = vadd.f32 %v4467_v18, %v9549_v61  ;;  %v4549_v0 = vmax.f32 %v4515_v53, 0.0  ;;  %v7949_v28 = vld [vmem:[%s9916_s25 + $0x38] sm:$0xff] }
 0x5d1   : > { %v4372_v46 = vpop.f32.mrf.mxu0  ;;  %5673 = vmatpush.bf16.msra.mxu1 %v7949_v28 }
 0x5d2   : > { %v4550_v31 = vmax.f32 %v4419_v44, 0.0  ;;  %v4373_v15 = vadd.f32 %v4372_v46, %v9546_v36  ;;  %v9699_v46 = vperm.slane %v4604_v32, 1 }
 0x5d4   : > { %v9650_v58 = vpack.c.bf16 %v4550_v31, %v4548_v51  ;;  %v7630_v51 = vld [vmem:[%s9681_s2 + $0x8] sm:$0xff] }
 0x5d5   : > { %v4516_v56 = vpop.f32.mrf.mxu3 }
 0x5d6   : > { %v4517_v41 = vadd.f32 %v4516_v56, %v4468_v55  ;;  %4893 = vmatmul.bf16.gmra.mxu0 %v9650_v58  ;;  %4991 = vmatmul.bf16.gmra.mxu2 %v9650_v58 }
 0x5d7   : > { %v4421_v63 = vpop.f32.mrf.mxu1  ;;  %v4470_v3 = vpop.f32.mrf.mxu2 }
 0x5d8   : > { %v4551_v62 = vmax.f32 %v4517_v41, 0.0  ;;  %v4422_v6 = vadd.f32 %v4421_v63, %v4373_v15  ;;  %v4471_v16 = vadd.f32 %v4470_v3, %v9549_v61 }
 0x5d9   : > { %v4374_v8 = vpop.f32.mrf.mxu0 }
 0x5da   : > { %v9660_v47 = vpack.c.bf16 %v4551_v62, %v4549_v0  ;;  %v4375_v13 = vadd.f32 %v4374_v8, %v9546_v36  ;;  %v4552_v24 = vmax.f32 %v4422_v6, 0.0 }
 0x5dc   : > { %4942 = vmatmul.bf16.gmra.mxu1 %v9660_v47  ;;  %5040 = vmatmul.bf16.gmra.mxu3 %v9660_v47 }
 0x5dd   : > { %v4519_v49 = vpop.f32.mrf.mxu3 }
 0x5de   : > { %v4520_v59 = vadd.f32 %v4519_v49, %v4471_v16  ;;  %v7948_v49 = vld [vmem:[%s9916_s25 + $0x30] sm:$0xff] }
 0x5df   : > { %v4423_v7 = vpop.f32.mrf.mxu1  ;;  %v4472_v34 = vpop.f32.mrf.mxu2  ;;  %5674 = vmatpush.bf16.msra.mxu1 %v7948_v49 }
 0x5e0   : > { %v4424_v14 = vadd.f32 %v4423_v7, %v4375_v13  ;;  %v4473_v12 = vadd.f32 %v4472_v34, %v9549_v61  ;;  %v4553_v36 = vmax.f32 %v4520_v59, 0.0  ;;  %v7629_v61 = vld [vmem:[%s9681_s2] sm:$0xff] }
 0x5e2   : > { %v4554_v26 = vmax.f32 %v4424_v14, 0.0 }
 0x5e4   : > { %v9668_v29 = vpack.c.bf16 %v4554_v26, %v4552_v24 }
 0x5e5   : > { %v4521_v20 = vpop.f32.mrf.mxu3 }
 0x5e6   : > { %v4522_v33 = vadd.f32 %v4521_v20, %v4473_v12  ;;  %4898 = vmatmul.bf16.gmra.mxu0 %v9668_v29  ;;  %4996 = vmatmul.bf16.gmra.mxu2 %v9668_v29 }
 0x5e8   : > { %v4555_v27 = vmax.f32 %v4522_v33, 0.0 }
 0x5ea   : > { %v9672_v50 = vpack.c.bf16 %v4555_v27, %v4553_v36 }
 0x5ec   : > { %4947 = vmatmul.bf16.gmra.mxu1 %v9672_v50  ;;  %5045 = vmatmul.bf16.gmra.mxu3 %v9672_v50 }
 0x5f3   : > { %v4864_v9 = vpop.f32.mrf.mxu0 }
 0x5f4   : > { %v4865_v30 = vadd.f32 %v4864_v9, %v9688_v43 }
 0x5f6   : > { %7435 = vmatmul.msk.bf16.vlgmr.msrb.gmra.mxu0 %vm5116_vm3, %v7629_v61  ;;  %v7939_v61 = vld [vmem:[%s9915_s24 + $0x68] sm:$0xff] }
 0x5f7   : > { %5578 = vmatpush.bf16.msra.mxu0 %v7939_v61 }
 0x5f9   : > { %v4913_v57 = vpop.f32.mrf.mxu1  ;;  %v4962_v39 = vpop.f32.mrf.mxu2 }
 0x5fa   : > { %v4914_v44 = vadd.f32 %v4913_v57, %v4865_v30  ;;  %v4963_v53 = vadd.f32 %v4962_v39, %v9699_v46  ;;  %v7947_v39 = vld [vmem:[%s9916_s25 + $0x28] sm:$0xff] }
 0x5fb   : > { %v4866_v22 = vpop.f32.mrf.mxu0  ;;  %5675 = vmatpush.bf16.msra.mxu1 %v7947_v39 }
 0x5fc   : > { %5535 = vmatmul.bf16.vlgmr.msra.gmra.mxu3 %v9556_v1  ;;  %v4867_v54 = vadd.f32 %v4866_v22, %v9688_v43 }
 0x5ff   : > { %v5011_v23 = vpop.f32.mrf.mxu3 }
 0x600   : > { %v5012_v56 = vadd.f32 %v5011_v23, %v4963_v53 }
 0x601   : > { %v4915_v18 = vpop.f32.mrf.mxu1  ;;  %v4964_v37 = vpop.f32.mrf.mxu2 }
 0x602   : > { %v4916_v1 = vadd.f32 %v4915_v18, %v4867_v54  ;;  %v4965_v55 = vadd.f32 %v4964_v37, %v9699_v46  ;;  %v7632_v54 = vld [vmem:[%s9681_s2 + $0x18] sm:$0xff] }
 0x603   : > { %v4869_v40 = vpop.f32.mrf.mxu0 }
 0x604   : > { %v5051_v31 = vpack.c.bf16 %v4916_v1, %v4914_v44  ;;  %v4870_v15 = vadd.f32 %v4869_v40, %v9688_v43 }
 0x606   : > { %7436 = vmatmul.msk.bf16.gmra.mxu0 %vm5116_vm3, %v7630_v51  ;;  %5298 = vmatmul.bf16.vlgmr.msrb.gmra.mxu1 %v5051_v31 }
 0x607   : > { %v5013_v60 = vpop.f32.mrf.mxu3 }
 0x608   : > { %v5014_v41 = vadd.f32 %v5013_v60, %v4965_v55  ;;  %v7938_v60 = vld [vmem:[%s9915_s24 + $0x60] sm:$0xff] }
 0x609   : > { %v4918_v63 = vpop.f32.mrf.mxu1  ;;  %v4967_v3 = vpop.f32.mrf.mxu2  ;;  %5579 = vmatpush.bf16.msra.mxu0 %v7938_v60 }
 0x60a   : > { %v5052_v0 = vpack.c.bf16 %v5014_v41, %v5012_v56  ;;  %v4919_v7 = vadd.f32 %v4918_v63, %v4870_v15  ;;  %v4968_v24 = vadd.f32 %v4967_v3, %v9699_v46  ;;  %v7946_v3 = vld [vmem:[%s9916_s25 + $0x20] sm:$0xff] }
 0x60b   : > { %v4871_v62 = vpop.f32.mrf.mxu0  ;;  %v7633_v15 = vld [vmem:[%s9681_s2 + $0x20] sm:$0xff]  ;;  %5676 = vmatpush.bf16.msra.mxu1 %v7946_v3 }
 0x60c   : > { %5347 = vmatmul.bf16.vlgmr.msrb.gmra.mxu2 %v5052_v0  ;;  %5540 = vmatmul.bf16.gmra.mxu3 %v9569_v19  ;;  %v4872_v17 = vadd.f32 %v4871_v62, %v9688_v43 }
 0x60f   : > { %v5016_v8 = vpop.f32.mrf.mxu3 }
 0x610   : > { %v5017_v59 = vadd.f32 %v5016_v8, %v4968_v24 }
 0x611   : > { %v4920_v6 = vpop.f32.mrf.mxu1  ;;  %v4969_v13 = vpop.f32.mrf.mxu2 }
 0x612   : > { %v4921_v14 = vadd.f32 %v4920_v6, %v4872_v17  ;;  %v4970_v16 = vadd.f32 %v4969_v13, %v9699_v46 }
 0x613   : > { %v4874_v19 = vpop.f32.mrf.mxu0 }
 0x614   : > { %v5053_v34 = vpack.c.bf16 %v4921_v14, %v4919_v7  ;;  %v4875_v32 = vadd.f32 %v4874_v19, %v9688_v43 }
 0x616   : > { %7437 = vmatmul.msk.bf16.gmra.mxu0 %vm5116_vm3, %v7631_v21  ;;  %5303 = vmatmul.bf16.gmra.mxu1 %v5053_v34 }
 0x617   : > { %v5018_v26 = vpop.f32.mrf.mxu3 }
 0x618   : > { %v5019_v12 = vadd.f32 %v5018_v26, %v4970_v16  ;;  %v7937_v16 = vld [vmem:[%s9915_s24 + $0x58] sm:$0xff] }
 0x619   : > { %v4923_v20 = vpop.f32.mrf.mxu1  ;;  %v4972_v33 = vpop.f32.mrf.mxu2  ;;  %5580 = vmatpush.bf16.msra.mxu0 %v7937_v16  ;;  %v7636_v16 = vld [vmem:[%s9681_s2 + $0x38] sm:$0xff] }
 0x61a   : > { %v5054_v36 = vpack.c.bf16 %v5019_v12, %v5017_v59  ;;  %v4924_v23 = vadd.f32 %v4923_v20, %v4875_v32  ;;  %v4973_v18 = vadd.f32 %v4972_v33, %v9699_v46  ;;  %v7945_v20 = vld [vmem:[%s9916_s25 + $0x18] sm:$0xff] }
 0x61b   : > { %v4876_v27 = vpop.f32.mrf.mxu0  ;;  %5677 = vmatpush.bf16.msra.mxu1 %v7945_v20 }
 0x61c   : > { %5352 = vmatmul.bf16.gmra.mxu2 %v5054_v36  ;;  %5545 = vmatmul.bf16.gmra.mxu3 %v9581_v4  ;;  %v4877_v57 = vadd.f32 %v4876_v27, %v9688_v43 }
 0x61f   : > { %v5021_v9 = vpop.f32.mrf.mxu3 }
 0x620   : > { %v5022_v1 = vadd.f32 %v5021_v9, %v4973_v18  ;;  %v7634_v9 = vld [vmem:[%s9681_s2 + $0x28] sm:$0xff] }
 0x621   : > { %v4925_v22 = vpop.f32.mrf.mxu1  ;;  %v4974_v48 = vpop.f32.mrf.mxu2 }
 0x622   : > { %v4926_v30 = vadd.f32 %v4925_v22, %v4877_v57  ;;  %v4975_v37 = vadd.f32 %v4974_v48, %v9699_v46 }
 0x623   : > { %v4879_v4 = vpop.f32.mrf.mxu0 }
 0x624   : > { %v5055_v28 = vpack.c.bf16 %v4926_v30, %v4924_v23  ;;  %v4880_v41 = vadd.f32 %v4879_v4, %v9688_v43 }
 0x626   : > { %7438 = vmatmul.msk.bf16.gmra.mxu0 %vm5116_vm3, %v7632_v54  ;;  %5308 = vmatmul.bf16.gmra.mxu1 %v5055_v28  ;;  %v7936_v28 = vld [vmem:[%s9915_s24 + $0x50] sm:$0xff] }
 0x627   : > { %v5023_v44 = vpop.f32.mrf.mxu3  ;;  %5581 = vmatpush.bf16.msra.mxu0 %v7936_v28  ;;  %v7942_v28 = vld [vmem:[%s9916_s25] sm:$0xff] }
 0x628   : > { %v5024_v51 = vadd.f32 %v5023_v44, %v4975_v37  ;;  %v7935_v37 = vld [vmem:[%s9915_s24 + $0x48] sm:$0xff] }
 0x629   : > { %v4928_v40 = vpop.f32.mrf.mxu1  ;;  %v4977_v31 = vpop.f32.mrf.mxu2 }
 0x62a   : > { %v5056_v53 = vpack.c.bf16 %v5024_v51, %v5022_v1  ;;  %v4929_v11 = vadd.f32 %v4928_v40, %v4880_v41  ;;  %v4978_v49 = vadd.f32 %v4977_v31, %v9699_v46  ;;  %v7944_v40 = vld [vmem:[%s9916_s25 + $0x10] sm:$0xff] }
 0x62b   : > { %v4881_v55 = vpop.f32.mrf.mxu0  ;;  %5582 = vmatpush.bf16.msra.mxu0 %v7935_v37  ;;  %5678 = vmatpush.bf16.msra.mxu1 %v7944_v40 }
 0x62c   : > { %5357 = vmatmul.bf16.gmra.mxu2 %v5056_v53  ;;  %5550 = vmatmul.bf16.gmra.mxu3 %v9593_v35  ;;  %v4882_v63 = vadd.f32 %v4881_v55, %v9688_v43 }
 0x62f   : > { %v5026_v56 = vpop.f32.mrf.mxu3 }
 0x630   : > { %v5027_v7 = vadd.f32 %v5026_v56, %v4978_v49  ;;  %v7934_v56 = vld [vmem:[%s9915_s24 + $0x40] sm:$0xff] }
 0x631   : > { %v4930_v0 = vpop.f32.mrf.mxu1  ;;  %v4979_v62 = vpop.f32.mrf.mxu2  ;;  %5583 = vmatpush.bf16.msra.mxu0 %v7934_v56 }
 0x632   : > { %v4931_v8 = vadd.f32 %v4930_v0, %v4882_v63  ;;  %v4980_v6 = vadd.f32 %v4979_v62, %v9699_v46 }
 0x633   : > { %v4884_v35 = vpop.f32.mrf.mxu0 }
 0x634   : > { %v5057_v17 = vpack.c.bf16 %v4931_v8, %v4929_v11  ;;  %v4885_v59 = vadd.f32 %v4884_v35, %v9688_v43 }
 0x636   : > { %7439 = vmatmul.msk.bf16.gmra.mxu0 %vm5116_vm3, %v7633_v15  ;;  %5313 = vmatmul.bf16.gmra.mxu1 %v5057_v17 }
 0x637   : > { %v5028_v13 = vpop.f32.mrf.mxu3 }
 0x638   : > { %v5029_v14 = vadd.f32 %v5028_v13, %v4980_v6  ;;  %v7943_v13 = vld [vmem:[%s9916_s25 + $0x8] sm:$0xff] }
 0x639   : > { %v4933_v21 = vpop.f32.mrf.mxu1  ;;  %v4982_v19 = vpop.f32.mrf.mxu2  ;;  %5679 = vmatpush.bf16.msra.mxu1 %v7943_v13 }
 0x63a   : > { %v5058_v34 = vpack.c.bf16 %v5029_v14, %v5027_v7  ;;  %v4934_v27 = vadd.f32 %v4933_v21, %v4885_v59  ;;  %v4983_v57 = vadd.f32 %v4982_v19, %v9699_v46 }
 0x63b   : > { %v4886_v24 = vpop.f32.mrf.mxu0 }
 0x63c   : > { %5362 = vmatmul.bf16.gmra.mxu2 %v5058_v34  ;;  %5555 = vmatmul.bf16.gmra.mxu3 %v9608_v25  ;;  %v4887_v12 = vadd.f32 %v4886_v24, %v9688_v43 }
 0x63d   : > { %5680 = vmatpush.bf16.msra.mxu1 %v7942_v28 }
 0x63f   : > { %v5031_v26 = vpop.f32.mrf.mxu3 }
 0x640   : > { %v5032_v48 = vadd.f32 %v5031_v26, %v4983_v57 }
 0x641   : > { %v4935_v33 = vpop.f32.mrf.mxu1  ;;  %v4984_v36 = vpop.f32.mrf.mxu2 }
 0x642   : > { %v4936_v61 = vadd.f32 %v4935_v33, %v4887_v12  ;;  %v4985_v39 = vadd.f32 %v4984_v36, %v9699_v46 }
 0x643   : > { %v4889_v25 = vpop.f32.mrf.mxu0 }
 0x644   : > { %v5059_v32 = vpack.c.bf16 %v4936_v61, %v4934_v27  ;;  %v4890_v1 = vadd.f32 %v4889_v25, %v9688_v43 }
 0x646   : > { %7440 = vmatmul.msk.bf16.gmra.mxu0 %vm5116_vm3, %v7634_v9  ;;  %5318 = vmatmul.bf16.gmra.mxu1 %v5059_v32 }
 0x647   : > { %v5033_v22 = vpop.f32.mrf.mxu3 }
 0x648   : > { %v5034_v23 = vadd.f32 %v5033_v22, %v4985_v39 }
 0x649   : > { %v4938_v30 = vpop.f32.mrf.mxu1  ;;  %v4987_v54 = vpop.f32.mrf.mxu2 }
 0x64a   : > { %v5060_v4 = vpack.c.bf16 %v5034_v23, %v5032_v48  ;;  %v4939_v55 = vadd.f32 %v4938_v30, %v4890_v1  ;;  %v4988_v3 = vadd.f32 %v4987_v54, %v9699_v46 }
 0x64b   : > { %v4891_v18 = vpop.f32.mrf.mxu0 }
 0x64c   : > { %5367 = vmatmul.bf16.gmra.mxu2 %v5060_v4  ;;  %5560 = vmatmul.bf16.gmra.mxu3 %v9626_v5  ;;  %v4892_v51 = vadd.f32 %v4891_v18, %v9688_v43  ;;  %v7635_v5 = vld [vmem:[%s9681_s2 + $0x30] sm:$0xff] }
 0x64f   : > { %v5036_v44 = vpop.f32.mrf.mxu3 }
 0x650   : > { %v5037_v11 = vadd.f32 %v5036_v44, %v4988_v3 }
 0x651   : > { %v4940_v31 = vpop.f32.mrf.mxu1  ;;  %v4989_v53 = vpop.f32.mrf.mxu2 }
 0x652   : > { %v4941_v60 = vadd.f32 %v4940_v31, %v4892_v51  ;;  %v4990_v0 = vadd.f32 %v4989_v53, %v9699_v46 }
 0x653   : > { %v4894_v41 = vpop.f32.mrf.mxu0 }
 0x654   : > { %v5061_v63 = vpack.c.bf16 %v4941_v60, %v4939_v55  ;;  %v4895_v7 = vadd.f32 %v4894_v41, %v9688_v43 }
 0x656   : > { %7441 = vmatmul.msk.bf16.gmra.mxu0 %vm5116_vm3, %v7635_v5  ;;  %5323 = vmatmul.bf16.gmra.mxu1 %v5061_v63 }
 0x657   : > { %v5038_v62 = vpop.f32.mrf.mxu3 }
 0x658   : > { %v5039_v8 = vadd.f32 %v5038_v62, %v4990_v0 }
 0x659   : > { %v4943_v15 = vpop.f32.mrf.mxu1  ;;  %v4992_v35 = vpop.f32.mrf.mxu2 }
 0x65a   : > { %v5062_v17 = vpack.c.bf16 %v5039_v8, %v5037_v11  ;;  %v4944_v34 = vadd.f32 %v4943_v15, %v4895_v7  ;;  %v4993_v12 = vadd.f32 %v4992_v35, %v9699_v46 }
 0x65b   : > { %v4896_v49 = vpop.f32.mrf.mxu0 }
 0x65c   : > { %5372 = vmatmul.bf16.gmra.mxu2 %v5062_v17  ;;  %5565 = vmatmul.bf16.gmra.mxu3 %v9650_v58  ;;  %v4897_v14 = vadd.f32 %v4896_v49, %v9688_v43 }
 0x65f   : > { %v5041_v6 = vpop.f32.mrf.mxu3 }
 0x660   : > { %v5042_v33 = vadd.f32 %v5041_v6, %v4993_v12 }
 0x661   : > { %v4945_v21 = vpop.f32.mrf.mxu1  ;;  %v4994_v19 = vpop.f32.mrf.mxu2 }
 0x662   : > { %v4946_v24 = vadd.f32 %v4945_v21, %v4897_v14  ;;  %v4995_v58 = vadd.f32 %v4994_v19, %v9699_v46 }
 0x663   : > { %v4899_v26 = vpop.f32.mrf.mxu0 }
 0x664   : > { %v5063_v59 = vpack.c.bf16 %v4946_v24, %v4944_v34  ;;  %v4900_v57 = vadd.f32 %v4899_v26, %v9688_v43 }
 0x666   : > { %7442 = vmatmul.msk.bf16.gmra.mxu0 %vm5116_vm3, %v7636_v16  ;;  %5328 = vmatmul.bf16.gmra.mxu1 %v5063_v59 }
 0x667   : > { %v5043_v20 = vpop.f32.mrf.mxu3 }
 0x668   : > { %v5044_v36 = vadd.f32 %v5043_v20, %v4995_v58 }
 0x669   : > { %v4948_v27 = vpop.f32.mrf.mxu1  ;;  %v4997_v61 = vpop.f32.mrf.mxu2 }
 0x66a   : > { %v5064_v9 = vpack.c.bf16 %v5044_v36, %v5042_v33  ;;  %v4949_v48 = vadd.f32 %v4948_v27, %v4900_v57  ;;  %v4998_v18 = vadd.f32 %v4997_v61, %v9699_v46 }
 0x66b   : > { %v4901_v25 = vpop.f32.mrf.mxu0 }
 0x66c   : > { %5377 = vmatmul.bf16.gmra.mxu2 %v5064_v9  ;;  %5570 = vmatmul.bf16.gmra.mxu3 %v9668_v29  ;;  %v4902_v39 = vadd.f32 %v4901_v25, %v9688_v43 }
 0x66f   : > { %v5046_v32 = vpop.f32.mrf.mxu3 }
 0x670   : > { %v5047_v43 = vadd.f32 %v5046_v32, %v4998_v18 }
 0x671   : > { %v4950_v22 = vpop.f32.mrf.mxu1  ;;  %v4999_v30 = vpop.f32.mrf.mxu2 }
 0x672   : > { %v4951_v23 = vadd.f32 %v4950_v22, %v4902_v39  ;;  %v5000_v37 = vadd.f32 %v4999_v30, %v9699_v46 }
 0x673   : > { %v5154_v54 = vpop.f32.mrf.mxu0 }
 0x674   : > { %v5065_v4 = vpack.c.bf16 %v4951_v23, %v4949_v48 }
 0x676   : > { %5333 = vmatmul.bf16.gmra.mxu1 %v5065_v4  ;;  %5584 = vmatmul.bf16.vlgmr.msra.gmra.mxu0 %v9561_v45  ;;  %v9799_v45 = vld [vmem:[%s9957_s28] ss:$0 sm:$0xff] }
 0x677   : > { %v5048_v29 = vpop.f32.mrf.mxu3 }
 0x678   : > { %v5049_v44 = vadd.f32 %v5048_v29, %v5000_v37 }
 0x67a   : > { %v5066_v1 = vpack.c.bf16 %v5049_v44, %v5047_v43 }
 0x67b   : > { %v5156_v51 = vpop.f32.mrf.mxu0 }
 0x67c   : > { %5382 = vmatmul.bf16.gmra.mxu2 %v5066_v1 }
 0x683   : > { %v5159_v40 = vpop.f32.mrf.mxu0  ;;  %v5299_v31 = vpop.f32.mrf.mxu1 }
 0x684   : > { %v5300_v5 = vadd.f32 %v5299_v31, %v5154_v54 }
 0x686   : > { %5589 = vmatmul.bf16.gmra.mxu0 %v9573_v52 }
 0x68b   : > { %v5161_v53 = vpop.f32.mrf.mxu0  ;;  %v5301_v55 = vpop.f32.mrf.mxu1 }
 0x68c   : > { %v5302_v63 = vadd.f32 %v5301_v55, %v5156_v51 }
 0x68f   : > { %v5348_v60 = vpop.f32.mrf.mxu2 }
 0x690   : > { %v5349_v41 = vadd.f32 %v5348_v60, %v5300_v5 }
 0x692   : > { %v5391_v0 = vadd.f32 %v9799_v45, %v5349_v41 }
 0x693   : > { %v5164_v56 = vpop.f32.mrf.mxu0  ;;  %v5304_v46 = vpop.f32.mrf.mxu1 }
 0x694   : > { %v5407_v15 = vmax.f32 %v5391_v0, 0.0  ;;  %v5305_v6 = vadd.f32 %v5304_v46, %v5159_v40 }
 0x696   : > { %5594 = vmatmul.bf16.gmra.mxu0 %v9585_v10 }
 0x697   : > { %v5350_v3 = vpop.f32.mrf.mxu2 }
 0x698   : > { %v5351_v62 = vadd.f32 %v5350_v3, %v5302_v63 }
 0x69a   : > { %v5392_v52 = vadd.f32 %v9799_v45, %v5351_v62 }
 0x69b   : > { %v5166_v11 = vpop.f32.mrf.mxu0  ;;  %v5306_v8 = vpop.f32.mrf.mxu1 }
 0x69c   : > { %v5408_v35 = vmax.f32 %v5392_v52, 0.0  ;;  %v5307_v21 = vadd.f32 %v5306_v8, %v5161_v53 }
 0x69e   : > { %v5423_v17 = vpack.c.bf16 %v5408_v35, %v5407_v15 }
 0x69f   : > { %v5353_v49 = vpop.f32.mrf.mxu2 }
 0x6a0   : > { %5681 = vmatmul.bf16.vlgmr.msra.gmra.mxu1 %v5423_v17  ;;  %v5354_v14 = vadd.f32 %v5353_v49, %v5305_v6 }
 0x6a2   : > { %v5393_v19 = vadd.f32 %v9799_v45, %v5354_v14 }
 0x6a3   : > { %v5169_v13 = vpop.f32.mrf.mxu0  ;;  %v5309_v7 = vpop.f32.mrf.mxu1 }
 0x6a4   : > { %v5409_v59 = vmax.f32 %v5393_v19, 0.0  ;;  %v5310_v33 = vadd.f32 %v5309_v7, %v5164_v56 }
 0x6a6   : > { %5599 = vmatmul.bf16.gmra.mxu0 %v9597_v42 }
 0x6a7   : > { %v5355_v10 = vpop.f32.mrf.mxu2 }
 0x6a8   : > { %v5356_v34 = vadd.f32 %v5355_v10, %v5307_v21 }
 0x6aa   : > { %v5394_v24 = vadd.f32 %v9799_v45, %v5356_v34 }
 0x6ab   : > { %v5171_v16 = vpop.f32.mrf.mxu0  ;;  %v5311_v26 = vpop.f32.mrf.mxu1 }
 0x6ac   : > { %v5410_v12 = vmax.f32 %v5394_v24, 0.0  ;;  %v5312_v9 = vadd.f32 %v5311_v26, %v5166_v11 }
 0x6ae   : > { %v5424_v58 = vpack.c.bf16 %v5410_v12, %v5409_v59 }
 0x6af   : > { %v5358_v20 = vpop.f32.mrf.mxu2 }
 0x6b0   : > { %5686 = vmatmul.bf16.gmra.mxu1 %v5424_v58  ;;  %v5359_v61 = vadd.f32 %v5358_v20, %v5310_v33 }
 0x6b2   : > { %v5395_v25 = vadd.f32 %v9799_v45, %v5359_v61 }
 0x6b3   : > { %v5174_v36 = vpop.f32.mrf.mxu0  ;;  %v5314_v27 = vpop.f32.mrf.mxu1 }
 0x6b4   : > { %v5411_v48 = vmax.f32 %v5395_v25, 0.0  ;;  %v5315_v4 = vadd.f32 %v5314_v27, %v5169_v13  ;;  %v5536_v25 = vpop.f32.mrf.mxu3 }
 0x6b6   : > { %5604 = vmatmul.bf16.gmra.mxu0 %v9612_v2 }
 0x6b7   : > { %v5360_v42 = vpop.f32.mrf.mxu2 }
 0x6b8   : > { %v5361_v32 = vadd.f32 %v5360_v42, %v5312_v9 }
 0x6ba   : > { %v5396_v57 = vadd.f32 %v9799_v45, %v5361_v32 }
 0x6bb   : > { %v5176_v39 = vpop.f32.mrf.mxu0  ;;  %v5316_v22 = vpop.f32.mrf.mxu1 }
 0x6bc   : > { %v5412_v23 = vmax.f32 %v5396_v57, 0.0  ;;  %v5317_v29 = vadd.f32 %v5316_v22, %v5171_v16 }
 0x6be   : > { %v5425_v30 = vpack.c.bf16 %v5412_v23, %v5411_v48 }
 0x6bf   : > { %v5363_v54 = vpop.f32.mrf.mxu2 }
 0x6c0   : > { %5691 = vmatmul.bf16.gmra.mxu1 %v5425_v30  ;;  %v5364_v37 = vadd.f32 %v5363_v54, %v5315_v4  ;;  %v5538_v4 = vpop.f32.mrf.mxu3 }
 0x6c2   : > { %v5397_v43 = vadd.f32 %v9799_v45, %v5364_v37 }
 0x6c3   : > { %v5179_v28 = vpop.f32.mrf.mxu0  ;;  %v5319_v18 = vpop.f32.mrf.mxu1 }
 0x6c4   : > { %v5413_v31 = vmax.f32 %v5397_v43, 0.0  ;;  %v5320_v5 = vadd.f32 %v5319_v18, %v5174_v36 }
 0x6c6   : > { %5609 = vmatmul.bf16.gmra.mxu0 %v9636_v38 }
 0x6c7   : > { %v5365_v2 = vpop.f32.mrf.mxu2 }
 0x6c8   : > { %v5366_v44 = vadd.f32 %v5365_v2, %v5317_v29 }
 0x6ca   : > { %v5398_v1 = vadd.f32 %v9799_v45, %v5366_v44 }
 0x6cb   : > { %v5181_v51 = vpop.f32.mrf.mxu0  ;;  %v5321_v40 = vpop.f32.mrf.mxu1 }
 0x6cc   : > { %v5414_v53 = vmax.f32 %v5398_v1, 0.0  ;;  %v5322_v63 = vadd.f32 %v5321_v40, %v5176_v39  ;;  %v5541_v40 = vpop.f32.mrf.mxu3 }
 0x6ce   : > { %v5426_v55 = vpack.c.bf16 %v5414_v53, %v5413_v31 }
 0x6cf   : > { %v5368_v60 = vpop.f32.mrf.mxu2 }
 0x6d0   : > { %5696 = vmatmul.bf16.gmra.mxu1 %v5426_v55  ;;  %v5369_v41 = vadd.f32 %v5368_v60, %v5320_v5  ;;  %v9826_v60 = vld [vmem:[%s9958_s27] ss:$0 sm:$0xff] }
 0x6d2   : > { %v5399_v3 = vadd.f32 %v9799_v45, %v5369_v41 }
 0x6d3   : > { %v5184_v56 = vpop.f32.mrf.mxu0  ;;  %v5324_v46 = vpop.f32.mrf.mxu1 }
 0x6d4   : > { %v5415_v11 = vmax.f32 %v5399_v3, 0.0  ;;  %v5325_v49 = vadd.f32 %v5324_v46, %v5179_v28  ;;  %v5543_v53 = vpop.f32.mrf.mxu3 }
 0x6d6   : > { %5614 = vmatmul.bf16.gmra.mxu0 %v9660_v47 }
 0x6d7   : > { %v5370_v38 = vpop.f32.mrf.mxu2 }
 0x6d8   : > { %v5371_v0 = vadd.f32 %v5370_v38, %v5322_v63 }
 0x6da   : > { %v5400_v62 = vadd.f32 %v9799_v45, %v5371_v0 }
 0x6db   : > { %v5326_v52 = vpop.f32.mrf.mxu1  ;;  %v5186_v15 = vpop.f32.mrf.mxu0 }
 0x6dc   : > { %v5416_v8 = vmax.f32 %v5400_v62, 0.0  ;;  %v5327_v7 = vadd.f32 %v5326_v52, %v5181_v51  ;;  %v5546_v63 = vpop.f32.mrf.mxu3 }
 0x6de   : > { %v5427_v35 = vpack.c.bf16 %v5416_v8, %v5415_v11 }
 0x6df   : > { %v5373_v17 = vpop.f32.mrf.mxu2 }
 0x6e0   : > { %5701 = vmatmul.bf16.gmra.mxu1 %v5427_v35  ;;  %v5374_v6 = vadd.f32 %v5373_v17, %v5325_v49 }
 0x6e2   : > { %v5401_v21 = vadd.f32 %v9799_v45, %v5374_v6 }
 0x6e3   : > { %v5329_v13 = vpop.f32.mrf.mxu1  ;;  %v5189_v14 = vpop.f32.mrf.mxu0 }
 0x6e4   : > { %v5417_v34 = vmax.f32 %v5401_v21, 0.0  ;;  %v5330_v58 = vadd.f32 %v5329_v13, %v5184_v56  ;;  %v5548_v49 = vpop.f32.mrf.mxu3 }
 0x6e6   : > { %5619 = vmatmul.bf16.gmra.mxu0 %v9672_v50 }
 0x6e7   : > { %v5375_v47 = vpop.f32.mrf.mxu2 }
 0x6e8   : > { %v5376_v10 = vadd.f32 %v5375_v47, %v5327_v7 }
 0x6ea   : > { %v5402_v19 = vadd.f32 %v9799_v45, %v5376_v10 }
 0x6eb   : > { %v5331_v26 = vpop.f32.mrf.mxu1  ;;  %v5191_v12 = vpop.f32.mrf.mxu0 }
 0x6ec   : > { %v5418_v24 = vmax.f32 %v5402_v19, 0.0  ;;  %v5332_v33 = vadd.f32 %v5331_v26, %v5186_v15 }
 0x6ee   : > { %v5428_v16 = vpack.c.bf16 %v5418_v24, %v5417_v34 }
 0x6ef   : > { %v5378_v59 = vpop.f32.mrf.mxu2 }
 0x6f0   : > { %5706 = vmatmul.bf16.gmra.mxu1 %v5428_v16  ;;  %v5379_v20 = vadd.f32 %v5378_v59, %v5330_v58 }
 0x6f2   : > { %v5403_v27 = vadd.f32 %v9799_v45, %v5379_v20 }
 0x6f3   : > { %v5334_v61 = vpop.f32.mrf.mxu1  ;;  %v5585_v9 = vpop.f32.mrf.mxu0 }
 0x6f4   : > { %v5419_v32 = vmax.f32 %v5403_v27, 0.0  ;;  %v5335_v48 = vadd.f32 %v5334_v61, %v5189_v14  ;;  %v5586_v55 = vadd.f32 %v5585_v9, %v5536_v25 }
 0x6f7   : > { %v5380_v36 = vpop.f32.mrf.mxu2 }
 0x6f8   : > { %v5381_v50 = vadd.f32 %v5380_v36, %v5332_v33 }
 0x6fa   : > { %v5404_v42 = vadd.f32 %v9799_v45, %v5381_v50 }
 0x6fb   : > { %v5336_v23 = vpop.f32.mrf.mxu1  ;;  %v5587_v30 = vpop.f32.mrf.mxu0 }
 0x6fc   : > { %v5420_v57 = vmax.f32 %v5404_v42, 0.0  ;;  %v5337_v28 = vadd.f32 %v5336_v23, %v5191_v12  ;;  %v5588_v38 = vadd.f32 %v5587_v30, %v5538_v4  ;;  %v9834_v12 = vpop.f32.mrf.mxu3 }
 0x6fe   : > { %v5429_v39 = vpack.c.bf16 %v5420_v57, %v5419_v32 }
 0x6ff   : > { %v5383_v22 = vpop.f32.mrf.mxu2 }
 0x700   : > { %5711 = vmatmul.bf16.gmra.mxu1 %v5429_v39  ;;  %v5384_v54 = vadd.f32 %v5383_v22, %v5335_v48 }
 0x702   : > { %v5405_v37 = vadd.f32 %v9799_v45, %v5384_v54 }
 0x703   : > { %v5590_v1 = vpop.f32.mrf.mxu0 }
 0x704   : > { %v5421_v43 = vmax.f32 %v5405_v37, 0.0  ;;  %v5591_v15 = vadd.f32 %v5590_v1, %v5541_v40 }
 0x707   : > { %v5385_v18 = vpop.f32.mrf.mxu2 }
 0x708   : > { %v5386_v29 = vadd.f32 %v5385_v18, %v5337_v28 }
 0x70a   : > { %v5406_v2 = vadd.f32 %v9799_v45, %v5386_v29  ;;  %v5553_v29 = vpop.f32.mrf.mxu3 }
 0x70b   : > { %v5592_v31 = vpop.f32.mrf.mxu0 }
 0x70c   : > { %v5422_v44 = vmax.f32 %v5406_v2, 0.0  ;;  %v5593_v10 = vadd.f32 %v5592_v31, %v5543_v53 }
 0x70e   : > { %v5430_v51 = vpack.c.bf16 %v5422_v44, %v5421_v43 }
 0x710   : > { %5716 = vmatmul.bf16.gmra.mxu1 %v5430_v51 }
 0x713   : > { %v5595_v41 = vpop.f32.mrf.mxu0 }
 0x714   : > { %v5596_v9 = vadd.f32 %v5595_v41, %v5546_v63 }
 0x71b   : > { %v5597_v35 = vpop.f32.mrf.mxu0 }
 0x71c   : > { %v5598_v1 = vadd.f32 %v5597_v35, %v5548_v49 }
 0x71d   : > { %v5682_v5 = vpop.f32.mrf.mxu1 }
 0x71e   : > { %v5683_v56 = vadd.f32 %v5682_v5, %v5586_v55 }
 0x720   : > { %v5725_v46 = vadd.f32 %v9826_v60, %v5683_v56 }
 0x722   : > { %v7603_v45 = vmul.f32 -1.442695, %v5725_v46 }
 0x723   : > { %v9831_v16 = vpop.f32.mrf.mxu0 }
 0x724   : > { %8071 = vpow2.f32 %v7603_v45 }
 0x725   : > { %v5684_v3 = vpop.f32.mrf.mxu1 }
 0x726   : > { %v5685_v0 = vadd.f32 %v5684_v3, %v5588_v38 }
 0x728   : > { %v5726_v62 = vadd.f32 %v9826_v60, %v5685_v0 }
 0x72a   : > { %v8072_v52 = vpop.eup %8071  ;;  %v7604_v11 = vmul.f32 -1.442695, %v5726_v62 }
 0x72b   : > { %v5789_v8 = vadd.f32 1.0, %v8072_v52  ;;  %v5602_v28 = vpop.f32.mrf.mxu0 }
 0x72c   : > { %8073 = vpow2.f32 %v7604_v11 }
 0x72d   : > { %8075 = vrcp.f32 %v5789_v8  ;;  %v5687_v17 = vpop.f32.mrf.mxu1  ;;  %v5816_v59 = vand.u32 2147483648, %v5789_v8  ;;  %v5814_v20 = vand.u32 2147483647, %v5789_v8  ;;  %vm5810_vm5 = vweird.f32 %v5789_v8 }
 0x72e   : > { %v5688_v6 = vadd.f32 %v5687_v17, %v5591_v15  ;;  %v5556_v17 = vpop.f32.mrf.mxu3 }
 0x72f   : > { %v5817_v42 = vor.u32 1.1754944e-38, %v5816_v59  ;;  %vm5815_vm8 = vcmp.eq.f32.partialorder %v5814_v20, 8.507059e+37 }
 0x730   : > { %v5727_v13 = vadd.f32 %v9826_v60, %v5688_v6 }
 0x732   : > { %v8074_v7 = vpop.eup %8073  ;;  %v7605_v14 = vmul.f32 -1.442695, %v5727_v13 }
 0x733   : > { %v8076_v47 = vpop.eup %8075  ;;  %v5790_v21 = vadd.f32 1.0, %v8074_v7  ;;  %v5605_v62 = vpop.f32.mrf.mxu0 }
 0x734   : > { %v5806_v19 = vmul.f32 %v8076_v47, %v5789_v8  ;;  %8077 = vpow2.f32 %v7605_v14  ;;  %vm5811_vm4 = vweird.f32 %v8076_v47  ;;  %v5601_v8 = vadd.f32 %v9831_v16, %v9834_v12 }
 0x735   : > { %8079 = vrcp.f32 %v5790_v21  ;;  %v5689_v34 = vpop.f32.mrf.mxu1  ;;  %vm5812_vm6 = vmor %vm5810_vm5, %vm5811_vm4  ;;  %v5831_v30 = vand.u32 2147483648, %v5790_v21  ;;  %v5829_v4 = vand.u32 2147483647, %v5790_v21  ;;  %vm5825_vm10 = vweird.f32 %v5790_v21 }
 0x736   : > { %v5807_v24 = vsub.f32 1.0, %v5806_v19  ;;  %v5690_v26 = vadd.f32 %v5689_v34, %v5593_v10  ;;  %v5603_v12 = vadd.f32 %v5602_v28, %v5553_v29 }
 0x737   : > { %v5832_v51 = vor.u32 1.1754944e-38, %v5831_v30  ;;  %vm5830_vm12 = vcmp.eq.f32.partialorder %v5829_v4, 8.507059e+37  ;;  %v5606_v4 = vadd.f32 %v5605_v62, %v5556_v17 }
 0x738   : > { %v5808_v58 = vmul.f32 %v8076_v47, %v5807_v24  ;;  %v5728_v33 = vadd.f32 %v9826_v60, %v5690_v26 }
 0x73a   : > { %v8078_v36 = vpop.eup %8077  ;;  %v5809_v27 = vadd.f32 %v8076_v47, %v5808_v58  ;;  %v7606_v50 = vmul.f32 -1.442695, %v5728_v33 }
 0x73b   : > { %v8080_v61 = vpop.eup %8079  ;;  %v5791_v25 = vadd.f32 1.0, %v8078_v36  ;;  %v5607_v36 = vpop.f32.mrf.mxu0 }
 0x73c   : > { %v5813_v32 = vsel %vm5812_vm6, %v8076_v47, %v5809_v27  ;;  %v5821_v57 = vmul.f32 %v8080_v61, %v5790_v21  ;;  %8081 = vpow2.f32 %v7606_v50  ;;  %vm5826_vm9 = vweird.f32 %v8080_v61 }
 0x73d   : > { %v5818_v39 = vsel %vm5815_vm8, %v5817_v42, %v5813_v32  ;;  %8083 = vrcp.f32 %v5791_v25  ;;  %v5692_v22 = vpop.f32.mrf.mxu1  ;;  %vm5827_vm11 = vmor %vm5825_vm10, %vm5826_vm9  ;;  %v5846_v41 = vand.u32 2147483648, %v5791_v25  ;;  %v5844_v63 = vand.u32 2147483647, %v5791_v25 }
 0x73e   : > { %6046 = vst.msk [vmem:[%s9840_s30] sm:$0xff] %vm6045_vm7, %v5818_v39  ;;  %v5822_v48 = vsub.f32 1.0, %v5821_v57  ;;  %v5693_v23 = vadd.f32 %v5692_v22, %v5596_v9  ;;  %vm5840_vm14 = vweird.f32 %v5791_v25  ;;  %v5558_v9 = vpop.f32.mrf.mxu3 }
 0x73f   : > { %v5847_v15 = vor.u32 1.1754944e-38, %v5846_v41  ;;  %vm5845_vm0 = vcmp.eq.f32.partialorder %v5844_v63, 8.507059e+37  ;;  %v5608_v63 = vadd.f32 %v5607_v36, %v5558_v9 }
 0x740   : > { %v5823_v54 = vmul.f32 %v8080_v61, %v5822_v48  ;;  %v5729_v18 = vadd.f32 %v9826_v60, %v5693_v23 }
 0x742   : > { %v8082_v37 = vpop.eup %8081  ;;  %v5824_v2 = vadd.f32 %v8080_v61, %v5823_v54  ;;  %v7607_v43 = vmul.f32 -1.442695, %v5729_v18 }
 0x743   : > { %v8084_v44 = vpop.eup %8083  ;;  %v5792_v40 = vadd.f32 1.0, %v8082_v37 }
 0x744   : > { %v5828_v31 = vsel %vm5827_vm11, %v8080_v61, %v5824_v2  ;;  %v5836_v53 = vmul.f32 %v8084_v44, %v5791_v25  ;;  %8085 = vpow2.f32 %v7607_v43  ;;  %vm5841_vm13 = vweird.f32 %v8084_v44 }
 0x745   : > { %v5833_v55 = vsel %vm5830_vm12, %v5832_v51, %v5828_v31  ;;  %8087 = vrcp.f32 %v5792_v40  ;;  %v5694_v5 = vpop.f32.mrf.mxu1  ;;  %vm5842_vm15 = vmor %vm5840_vm14, %vm5841_vm13  ;;  %v5861_v21 = vand.u32 2147483648, %v5792_v40  ;;  %v5859_v19 = vand.u32 2147483647, %v5792_v40 }
 0x746   : > { %6047 = vst.msk [vmem:[%s9840_s30 + $0x8] sm:$0xff] %vm6045_vm7, %v5833_v55  ;;  %v5837_v56 = vsub.f32 1.0, %v5836_v53  ;;  %v5695_v46 = vadd.f32 %v5694_v5, %v5598_v1  ;;  %vm5855_vm2 = vweird.f32 %v5792_v40  ;;  %v5561_v31 = vpop.f32.mrf.mxu3 }
 0x747   : > { %v5862_v58 = vor.u32 1.1754944e-38, %v5861_v21  ;;  %vm5860_vm4 = vcmp.eq.f32.partialorder %v5859_v19, 8.507059e+37 }
 0x748   : > { %v5838_v45 = vmul.f32 %v8084_v44, %v5837_v56  ;;  %v5730_v38 = vadd.f32 %v9826_v60, %v5695_v46 }
 0x74a   : > { %v8086_v3 = vpop.eup %8085  ;;  %v5839_v0 = vadd.f32 %v8084_v44, %v5838_v45  ;;  %v7608_v52 = vmul.f32 -1.442695, %v5730_v38 }
 0x74b   : > { %v8088_v11 = vpop.eup %8087  ;;  %v5793_v35 = vadd.f32 1.0, %v8086_v3 }
 0x74c   : > { %v5843_v49 = vsel %vm5842_vm15, %v8084_v44, %v5839_v0  ;;  %v5851_v6 = vmul.f32 %v8088_v11, %v5792_v40  ;;  %8089 = vpow2.f32 %v7608_v52  ;;  %vm5856_vm1 = vweird.f32 %v8088_v11  ;;  %v5610_v44 = vpop.f32.mrf.mxu0 }
 0x74d   : > { %v5848_v13 = vsel %vm5845_vm0, %v5847_v15, %v5843_v49  ;;  %8091 = vrcp.f32 %v5793_v35  ;;  %v5697_v7 = vpop.f32.mrf.mxu1  ;;  %vm5857_vm3 = vmor %vm5855_vm2, %vm5856_vm1  ;;  %v5876_v32 = vand.u32 2147483648, %v5793_v35  ;;  %v5874_v39 = vand.u32 2147483647, %v5793_v35 }
 0x74e   : > { %6048 = vst.msk [vmem:[%s9840_s30 + $0x10] sm:$0xff] %vm6045_vm7, %v5848_v13  ;;  %v5852_v14 = vsub.f32 1.0, %v5851_v6  ;;  %v5698_v47 = vadd.f32 %v5697_v7, %v5601_v8  ;;  %vm5870_vm6 = vweird.f32 %v5793_v35  ;;  %v5611_v19 = vadd.f32 %v5610_v44, %v5561_v31 }
 0x74f   : > { %v5877_v28 = vor.u32 1.1754944e-38, %v5876_v32  ;;  %vm5875_vm9 = vcmp.eq.f32.partialorder %v5874_v39, 8.507059e+37 }
 0x750   : > { %v5853_v10 = vmul.f32 %v8088_v11, %v5852_v14  ;;  %v5731_v34 = vadd.f32 %v9826_v60, %v5698_v47  ;;  %v5563_v14 = vpop.f32.mrf.mxu3 }
 0x752   : > { %v8090_v24 = vpop.eup %8089  ;;  %v5854_v16 = vadd.f32 %v8088_v11, %v5853_v10  ;;  %v7609_v26 = vmul.f32 -1.442695, %v5731_v34 }
 0x753   : > { %v8092_v59 = vpop.eup %8091  ;;  %v5794_v20 = vadd.f32 1.0, %v8090_v24 }
 0x754   : > { %v5858_v33 = vsel %vm5857_vm3, %v8088_v11, %v5854_v16  ;;  %v5866_v27 = vmul.f32 %v8092_v59, %v5793_v35  ;;  %8093 = vpow2.f32 %v7609_v26  ;;  %vm5871_vm5 = vweird.f32 %v8092_v59  ;;  %v5612_v17 = vpop.f32.mrf.mxu0 }
 0x755   : > { %v5863_v50 = vsel %vm5860_vm4, %v5862_v58, %v5858_v33  ;;  %8095 = vrcp.f32 %v5794_v20  ;;  %v5699_v61 = vpop.f32.mrf.mxu1  ;;  %vm5872_vm8 = vmor %vm5870_vm6, %vm5871_vm5  ;;  %v5891_v40 = vand.u32 2147483648, %v5794_v20  ;;  %v5889_v55 = vand.u32 2147483647, %v5794_v20 }
 0x756   : > { %6049 = vst.msk [vmem:[%s9840_s30 + $0x18] sm:$0xff] %vm6045_vm7, %v5863_v50  ;;  %v5867_v42 = vsub.f32 1.0, %v5866_v27  ;;  %v5700_v25 = vadd.f32 %v5699_v61, %v5603_v12  ;;  %vm5885_vm11 = vweird.f32 %v5794_v20 }
 0x757   : > { %v5892_v38 = vor.u32 1.1754944e-38, %v5891_v40  ;;  %vm5890_vm13 = vcmp.eq.f32.partialorder %v5889_v55, 8.507059e+37 }
 0x758   : > { %v5868_v57 = vmul.f32 %v8092_v59, %v5867_v42  ;;  %v5732_v22 = vadd.f32 %v9826_v60, %v5700_v25 }
 0x75a   : > { %v8094_v48 = vpop.eup %8093  ;;  %v5869_v23 = vadd.f32 %v8092_v59, %v5868_v57  ;;  %v7610_v30 = vmul.f32 -1.442695, %v5732_v22  ;;  %v5613_v57 = vadd.f32 %v5612_v17, %v5563_v14 }
 0x75b   : > { %v8096_v54 = vpop.eup %8095  ;;  %v5795_v18 = vadd.f32 1.0, %v8094_v48  ;;  %v5566_v48 = vpop.f32.mrf.mxu3 }
 0x75c   : > { %v5873_v37 = vsel %vm5872_vm8, %v8092_v59, %v5869_v23  ;;  %v5881_v29 = vmul.f32 %v8096_v54, %v5794_v20  ;;  %8097 = vpow2.f32 %v7610_v30  ;;  %vm5886_vm10 = vweird.f32 %v8096_v54  ;;  %v5615_v9 = vpop.f32.mrf.mxu0 }
 0x75d   : > { %v5878_v2 = vsel %vm5875_vm9, %v5877_v28, %v5873_v37  ;;  %8099 = vrcp.f32 %v5795_v18  ;;  %v5702_v43 = vpop.f32.mrf.mxu1  ;;  %vm5887_vm12 = vmor %vm5885_vm11, %vm5886_vm10  ;;  %v5906_v35 = vand.u32 2147483648, %v5795_v18  ;;  %v5904_v6 = vand.u32 2147483647, %v5795_v18 }
 0x75e   : > { %6050 = vst.msk [vmem:[%s9840_s30 + $0x20] sm:$0xff] %vm6045_vm7, %v5878_v2  ;;  %v5882_v1 = vsub.f32 1.0, %v5881_v29  ;;  %v5703_v51 = vadd.f32 %v5702_v43, %v5606_v4  ;;  %vm5900_vm15 = vweird.f32 %v5795_v18  ;;  %v5616_v31 = vadd.f32 %v5615_v9, %v5566_v48 }
 0x75f   : > { %v5907_v34 = vor.u32 1.1754944e-38, %v5906_v35  ;;  %vm5905_vm1 = vcmp.eq.f32.partialorder %v5904_v6, 8.507059e+37 }
 0x760   : > { %v5883_v53 = vmul.f32 %v8096_v54, %v5882_v1  ;;  %v5733_v5 = vadd.f32 %v9826_v60, %v5703_v51 }
 0x762   : > { %v8098_v56 = vpop.eup %8097  ;;  %v5884_v46 = vadd.f32 %v8096_v54, %v5883_v53  ;;  %v7611_v41 = vmul.f32 -1.442695, %v5733_v5 }
 0x763   : > { %v8100_v45 = vpop.eup %8099  ;;  %v5796_v3 = vadd.f32 1.0, %v8098_v56 }
 0x764   : > { %v5888_v0 = vsel %vm5887_vm12, %v8096_v54, %v5884_v46  ;;  %v5896_v62 = vmul.f32 %v8100_v45, %v5795_v18  ;;  %8101 = vpow2.f32 %v7611_v41  ;;  %vm5901_vm14 = vweird.f32 %v8100_v45  ;;  %v5617_v5 = vpop.f32.mrf.mxu0 }
 0x765   : > { %v5893_v52 = vsel %vm5890_vm13, %v5892_v38, %v5888_v0  ;;  %8103 = vrcp.f32 %v5796_v3  ;;  %v5704_v11 = vpop.f32.mrf.mxu1  ;;  %vm5902_vm0 = vmor %vm5900_vm15, %vm5901_vm14  ;;  %v5921_v33 = vand.u32 2147483648, %v5796_v3  ;;  %v5919_v27 = vand.u32 2147483647, %v5796_v3 }
 0x766   : > { %6051 = vst.msk [vmem:[%s9840_s30 + $0x28] sm:$0xff] %vm6045_vm7, %v5893_v52  ;;  %v5897_v8 = vsub.f32 1.0, %v5896_v62  ;;  %v5705_v15 = vadd.f32 %v5704_v11, %v5608_v63  ;;  %vm5915_vm3 = vweird.f32 %v5796_v3  ;;  %v5568_v63 = vpop.f32.mrf.mxu3 }
 0x767   : > { %v5922_v39 = vor.u32 1.1754944e-38, %v5921_v33  ;;  %vm5920_vm5 = vcmp.eq.f32.partialorder %v5919_v27, 8.507059e+37 }
 0x768   : > { %v5898_v49 = vmul.f32 %v8100_v45, %v5897_v8  ;;  %v5734_v13 = vadd.f32 %v9826_v60, %v5705_v15 }
 0x76a   : > { %v8102_v7 = vpop.eup %8101  ;;  %v5899_v47 = vadd.f32 %v8100_v45, %v5898_v49  ;;  %v7612_v21 = vmul.f32 -1.442695, %v5734_v13  ;;  %v5618_v49 = vadd.f32 %v5617_v5, %v5568_v63 }
 0x76b   : > { %v8104_v10 = vpop.eup %8103  ;;  %v5797_v24 = vadd.f32 1.0, %v8102_v7 }
 0x76c   : > { %v5903_v16 = vsel %vm5902_vm0, %v8100_v45, %v5899_v47  ;;  %v5911_v26 = vmul.f32 %v8104_v10, %v5796_v3  ;;  %8105 = vpow2.f32 %v7612_v21  ;;  %vm5916_vm2 = vweird.f32 %v8104_v10 }
 0x76d   : > { %v5908_v59 = vsel %vm5905_vm1, %v5907_v34, %v5903_v16  ;;  %8107 = vrcp.f32 %v5797_v24  ;;  %v5707_v12 = vpop.f32.mrf.mxu1  ;;  %vm5917_vm4 = vmor %vm5915_vm3, %vm5916_vm2  ;;  %v5936_v37 = vand.u32 2147483648, %v5797_v24  ;;  %v5934_v2 = vand.u32 2147483647, %v5797_v24 }
 0x76e   : > { %6052 = vst.msk [vmem:[%s9840_s30 + $0x30] sm:$0xff] %vm6045_vm7, %v5908_v59  ;;  %v5912_v58 = vsub.f32 1.0, %v5911_v26  ;;  %v5708_v20 = vadd.f32 %v5707_v12, %v5611_v19  ;;  %vm5930_vm8 = vweird.f32 %v5797_v24  ;;  %v5571_v16 = vpop.f32.mrf.mxu3 }
 0x76f   : > { %v5937_v53 = vor.u32 1.1754944e-38, %v5936_v37  ;;  %vm5935_vm10 = vcmp.eq.f32.partialorder %v5934_v2, 8.507059e+37 }
 0x770   : > { %v5913_v36 = vmul.f32 %v8104_v10, %v5912_v58  ;;  %v5735_v50 = vadd.f32 %v9826_v60, %v5708_v20 }
 0x772   : > { %v8106_v61 = vpop.eup %8105  ;;  %v5914_v42 = vadd.f32 %v8104_v10, %v5913_v36  ;;  %v7613_v25 = vmul.f32 -1.442695, %v5735_v50 }
 0x773   : > { %v8108_v32 = vpop.eup %8107  ;;  %v5798_v22 = vadd.f32 1.0, %v8106_v61 }
 0x774   : > { %v5918_v23 = vsel %vm5917_vm4, %v8104_v10, %v5914_v42  ;;  %v5926_v30 = vmul.f32 %v8108_v32, %v5797_v24  ;;  %8109 = vpow2.f32 %v7613_v25  ;;  %vm5931_vm6 = vweird.f32 %v8108_v32  ;;  %v5620_v10 = vpop.f32.mrf.mxu0 }
 0x775   : > { %v5923_v54 = vsel %vm5920_vm5, %v5922_v39, %v5918_v23  ;;  %8111 = vrcp.f32 %v5798_v22  ;;  %v5709_v4 = vpop.f32.mrf.mxu1  ;;  %vm5932_vm9 = vmor %vm5930_vm8, %vm5931_vm6  ;;  %v5951_v0 = vand.u32 2147483648, %v5798_v22  ;;  %v5949_v52 = vand.u32 2147483647, %v5798_v22 }
 0x776   : > { %6053 = vst.msk [vmem:[%s9840_s30 + $0x38] sm:$0xff] %vm6045_vm7, %v5923_v54  ;;  %v5927_v28 = vsub.f32 1.0, %v5926_v30  ;;  %v5710_v18 = vadd.f32 %v5709_v4, %v5613_v57  ;;  %vm5945_vm12 = vweird.f32 %v5798_v22  ;;  %v5621_v27 = vadd.f32 %v5620_v10, %v5571_v16 }
 0x777   : > { %v5952_v6 = vor.u32 1.1754944e-38, %v5951_v0  ;;  %vm5950_vm14 = vcmp.eq.f32.partialorder %v5949_v52, 8.507059e+37 }
 0x778   : > { %v5928_v29 = vmul.f32 %v8108_v32, %v5927_v28  ;;  %v5736_v43 = vadd.f32 %v9826_v60, %v5710_v18  ;;  %v5573_v28 = vpop.f32.mrf.mxu3 }
 0x77a   : > { %v8110_v44 = vpop.eup %8109  ;;  %v5929_v1 = vadd.f32 %v8108_v32, %v5928_v29  ;;  %v7614_v51 = vmul.f32 -1.442695, %v5736_v43 }
 0x77b   : > { %v8112_v40 = vpop.eup %8111  ;;  %v5799_v55 = vadd.f32 1.0, %v8110_v44 }
 0x77c   : > { %v5933_v56 = vsel %vm5932_vm9, %v8108_v32, %v5929_v1  ;;  %v5941_v46 = vmul.f32 %v8112_v40, %v5798_v22  ;;  %8113 = vpow2.f32 %v7614_v51  ;;  %vm5946_vm11 = vweird.f32 %v8112_v40  ;;  %v5622_v48 = vpop.f32.mrf.mxu0 }
 0x77d   : > { %v5938_v41 = vsel %vm5935_vm10, %v5937_v53, %v5933_v56  ;;  %8115 = vrcp.f32 %v5799_v55  ;;  %v5712_v45 = vpop.f32.mrf.mxu1  ;;  %vm5947_vm13 = vmor %vm5945_vm12, %vm5946_vm11  ;;  %v5966_v24 = vand.u32 2147483648, %v5799_v55  ;;  %v5964_v59 = vand.u32 2147483647, %v5799_v55 }
 0x77e   : > { %6054 = vst.msk [vmem:[%s9840_s30 + $0x40] sm:$0xff] %vm6045_vm7, %v5938_v41  ;;  %v5942_v38 = vsub.f32 1.0, %v5941_v46  ;;  %v5713_v3 = vadd.f32 %v5712_v45, %v5616_v31  ;;  %vm5960_vm0 = vweird.f32 %v5799_v55  ;;  %v5623_v2 = vadd.f32 %v5622_v48, %v5573_v28 }
 0x77f   : > { %v5967_v50 = vor.u32 1.1754944e-38, %v5966_v24  ;;  %vm5965_vm2 = vcmp.eq.f32.partialorder %v5964_v59, 8.507059e+37 }
 0x780   : > { %v5943_v62 = vmul.f32 %v8112_v40, %v5942_v38  ;;  %v5737_v11 = vadd.f32 %v9826_v60, %v5713_v3 }
 0x782   : > { %v8114_v8 = vpop.eup %8113  ;;  %v5944_v15 = vadd.f32 %v8112_v40, %v5943_v62  ;;  %v7615_v35 = vmul.f32 -1.442695, %v5737_v11 }
 0x783   : > { %v8116_v17 = vpop.eup %8115  ;;  %v5800_v13 = vadd.f32 1.0, %v8114_v8 }
 0x784   : > { %v5948_v7 = vsel %vm5947_vm13, %v8112_v40, %v5944_v15  ;;  %v5956_v14 = vmul.f32 %v8116_v17, %v5799_v55  ;;  %8117 = vpow2.f32 %v7615_v35  ;;  %vm5961_vm15 = vweird.f32 %v8116_v17 }
 0x785   : > { %v5953_v47 = vsel %vm5950_vm14, %v5952_v6, %v5948_v7  ;;  %8119 = vrcp.f32 %v5800_v13  ;;  %v5714_v21 = vpop.f32.mrf.mxu1  ;;  %vm5962_vm1 = vmor %vm5960_vm0, %vm5961_vm15  ;;  %v5981_v22 = vand.u32 2147483648, %v5800_v13  ;;  %v5979_v30 = vand.u32 2147483647, %v5800_v13 }
 0x786   : > { %6055 = vst.msk [vmem:[%s9840_s30 + $0x48] sm:$0xff] %vm6045_vm7, %v5953_v47  ;;  %v5957_v19 = vsub.f32 1.0, %v5956_v14  ;;  %v5715_v34 = vadd.f32 %v5714_v21, %v5618_v49  ;;  %vm5975_vm4 = vweird.f32 %v5800_v13 }
 0x787   : > { %v5982_v43 = vor.u32 1.1754944e-38, %v5981_v22  ;;  %vm5980_vm6 = vcmp.eq.f32.partialorder %v5979_v30, 8.507059e+37 }
 0x788   : > { %v5958_v26 = vmul.f32 %v8116_v17, %v5957_v19  ;;  %v5738_v12 = vadd.f32 %v9826_v60, %v5715_v34 }
 0x78a   : > { %v8118_v58 = vpop.eup %8117  ;;  %v5959_v20 = vadd.f32 %v8116_v17, %v5958_v26  ;;  %v7616_v33 = vmul.f32 -1.442695, %v5738_v12 }
 0x78b   : > { %v8120_v36 = vpop.eup %8119  ;;  %v5801_v61 = vadd.f32 1.0, %v8118_v58 }
 0x78c   : > { %v5963_v9 = vsel %vm5962_vm1, %v8116_v17, %v5959_v20  ;;  %v5971_v42 = vmul.f32 %v8120_v36, %v5800_v13  ;;  %8121 = vpow2.f32 %v7616_v33  ;;  %vm5976_vm3 = vweird.f32 %v8120_v36 }
 0x78d   : > { %v5968_v25 = vsel %vm5965_vm2, %v5967_v50, %v5963_v9  ;;  %8123 = vrcp.f32 %v5801_v61  ;;  %v5717_v32 = vpop.f32.mrf.mxu1  ;;  %vm5977_vm5 = vmor %vm5975_vm4, %vm5976_vm3  ;;  %v5996_v5 = vand.u32 2147483648, %v5801_v61  ;;  %v5994_v46 = vand.u32 2147483647, %v5801_v61 }
 0x78e   : > { %6056 = vst.msk [vmem:[%s9840_s30 + $0x50] sm:$0xff] %vm6045_vm7, %v5968_v25  ;;  %v5972_v57 = vsub.f32 1.0, %v5971_v42  ;;  %v5718_v39 = vadd.f32 %v5717_v32, %v5621_v27  ;;  %vm5990_vm9 = vweird.f32 %v5801_v61 }
 0x78f   : > { %v5997_v0 = vor.u32 1.1754944e-38, %v5996_v5  ;;  %vm5995_vm11 = vcmp.eq.f32.partialorder %v5994_v46, 8.507059e+37 }
 0x790   : > { %v5973_v23 = vmul.f32 %v8120_v36, %v5972_v57  ;;  %v5739_v54 = vadd.f32 %v9826_v60, %v5718_v39 }
 0x792   : > { %v8122_v4 = vpop.eup %8121  ;;  %v5974_v18 = vadd.f32 %v8120_v36, %v5973_v23  ;;  %v7617_v37 = vmul.f32 -1.442695, %v5739_v54 }
 0x793   : > { %v8124_v29 = vpop.eup %8123  ;;  %v5802_v44 = vadd.f32 1.0, %v8122_v4 }
 0x794   : > { %v5978_v1 = vsel %vm5977_vm5, %v8120_v36, %v5974_v18  ;;  %v5986_v51 = vmul.f32 %v8124_v29, %v5801_v61  ;;  %8125 = vpow2.f32 %v7617_v37  ;;  %vm5991_vm8 = vweird.f32 %v8124_v29 }
 0x795   : > { %v5983_v40 = vsel %vm5980_vm6, %v5982_v43, %v5978_v1  ;;  %8127 = vrcp.f32 %v5802_v44  ;;  %v5719_v31 = vpop.f32.mrf.mxu1  ;;  %vm5992_vm10 = vmor %vm5990_vm9, %vm5991_vm8  ;;  %v6011_v35 = vand.u32 2147483648, %v5802_v44  ;;  %v6009_v17 = vand.u32 2147483647, %v5802_v44 }
 0x796   : > { %6057 = vst.msk [vmem:[%s9840_s30 + $0x58] sm:$0xff] %vm6045_vm7, %v5983_v40  ;;  %v5987_v53 = vsub.f32 1.0, %v5986_v51  ;;  %v5720_v55 = vadd.f32 %v5719_v31, %v5623_v2  ;;  %vm6005_vm13 = vweird.f32 %v5802_v44 }
 0x797   : > { %v6012_v7 = vor.u32 1.1754944e-38, %v6011_v35  ;;  %vm6010_vm15 = vcmp.eq.f32.partialorder %v6009_v17, 8.507059e+37 }
 0x798   : > { %v5988_v56 = vmul.f32 %v8124_v29, %v5987_v53  ;;  %v5740_v41 = vadd.f32 %v9826_v60, %v5720_v55 }
 0x79a   : > { %v8126_v45 = vpop.eup %8125  ;;  %v5989_v63 = vadd.f32 %v8124_v29, %v5988_v56  ;;  %v7618_v38 = vmul.f32 -1.442695, %v5740_v41 }
 0x79b   : > { %v8128_v3 = vpop.eup %8127  ;;  %v5803_v62 = vadd.f32 1.0, %v8126_v45 }
 0x79c   : > { %v5993_v52 = vsel %vm5992_vm10, %v8124_v29, %v5989_v63  ;;  %v6001_v11 = vmul.f32 %v8128_v3, %v5802_v44  ;;  %8129 = vpow2.f32 %v7618_v38  ;;  %vm6006_vm12 = vweird.f32 %v8128_v3 }
 0x79d   : > { %v5998_v8 = vsel %vm5995_vm11, %v5997_v0, %v5993_v52  ;;  %8131 = vrcp.f32 %v5803_v62  ;;  %vm6007_vm14 = vmor %vm6005_vm13, %vm6006_vm12  ;;  %v6026_v34 = vand.u32 2147483648, %v5803_v62  ;;  %v6024_v16 = vand.u32 2147483647, %v5803_v62 }
 0x79e   : > { %6058 = vst.msk [vmem:[%s9840_s30 + $0x60] sm:$0xff] %vm6045_vm7, %v5998_v8  ;;  %v6002_v15 = vsub.f32 1.0, %v6001_v11  ;;  %vm6020_vm1 = vweird.f32 %v5803_v62 }
 0x79f   : > { %v6027_v12 = vor.u32 1.1754944e-38, %v6026_v34  ;;  %vm6025_vm3 = vcmp.eq.f32.partialorder %v6024_v16, 8.507059e+37 }
 0x7a0   : > { %v6003_v60 = vmul.f32 %v8128_v3, %v6002_v15 }
 0x7a2   : > { %v8130_v49 = vpop.eup %8129  ;;  %v6004_v6 = vadd.f32 %v8128_v3, %v6003_v60 }
 0x7a3   : > { %v8132_v13 = vpop.eup %8131  ;;  %v5804_v14 = vadd.f32 1.0, %v8130_v49 }
 0x7a4   : > { %v6008_v47 = vsel %vm6007_vm14, %v8128_v3, %v6004_v6  ;;  %v6016_v21 = vmul.f32 %v8132_v13, %v5803_v62  ;;  %vm6021_vm0 = vweird.f32 %v8132_v13 }
 0x7a5   : > { %v6013_v10 = vsel %vm6010_vm15, %v6012_v7, %v6008_v47  ;;  %8133 = vrcp.f32 %v5804_v14  ;;  %vm6022_vm2 = vmor %vm6020_vm1, %vm6021_vm0  ;;  %v6041_v27 = vand.u32 2147483648, %v5804_v14  ;;  %v6039_v61 = vand.u32 2147483647, %v5804_v14 }
 0x7a6   : > { %6059 = vst.msk [vmem:[%s9840_s30 + $0x68] sm:$0xff] %vm6045_vm7, %v6013_v10  ;;  %v6017_v19 = vsub.f32 1.0, %v6016_v21  ;;  %vm6035_vm5 = vweird.f32 %v5804_v14 }
 0x7a7   : > { %v6042_v42 = vor.u32 1.1754944e-38, %v6041_v27  ;;  %vm6040_vm8 = vcmp.eq.f32.partialorder %v6039_v61, 8.507059e+37 }
 0x7a8   : > { %v6018_v24 = vmul.f32 %v8132_v13, %v6017_v19 }
 0x7aa   : > { %v6019_v26 = vadd.f32 %v8132_v13, %v6018_v24 }
 0x7ab   : > { %v8134_v59 = vpop.eup %8133 }
 0x7ac   : > { %v6023_v58 = vsel %vm6022_vm2, %v8132_v13, %v6019_v26  ;;  %v6031_v20 = vmul.f32 %v8134_v59, %v5804_v14  ;;  %vm6036_vm4 = vweird.f32 %v8134_v59 }
 0x7ad   : > { %v6028_v33 = vsel %vm6025_vm3, %v6027_v12, %v6023_v58  ;;  %vm6037_vm6 = vmor %vm6035_vm5, %vm6036_vm4 }
 0x7ae   : > { %6060 = vst.msk [vmem:[%s9840_s30 + $0x70] sm:$0xff] %vm6045_vm7, %v6028_v33  ;;  %v6032_v36 = vsub.f32 1.0, %v6031_v20 }
 0x7b0   : > { %v6033_v50 = vmul.f32 %v8134_v59, %v6032_v36 }
 0x7b2   : > { %v6034_v9 = vadd.f32 %v8134_v59, %v6033_v50 }
 0x7b4   : > { %v6038_v25 = vsel %vm6037_vm6, %v8134_v59, %v6034_v9 }
 0x7b5   : > { %v6043_v32 = vsel %vm6040_vm8, %v6042_v42, %v6038_v25 }
 0x7b6   : > { %6061 = vst.msk [vmem:[%s9840_s30 + $0x78] sm:$0xff] %vm6045_vm7, %v6043_v32 }
 0x7b7 PF: > { %s42_s7 = sadd.s32 1, %s8439_s7  }
 0x7b8   : > { %p39_p7 = scmp.ge.s32.totalorder %s42_s7, 4  }
 0x7ba   :  { %41 = sbr.rel (!%p39_p7) target bundleno = 23 (0x17), region = 198 }
 0x7bf   :  { %6084 = vsyncpa [#allocation3], 1 }
 0x7c0   :  { %6086 = vsyncpa [#allocation3 + $0x1], 1 }
 0x7c1   :  { %6087 = vsyncpa [#allocation5], 1 }
 0x7c2   :  { %6088 = vsyncpa [#allocation8], 1 }
 0x7c3   :  { %6089 = vsyncpa [#allocation11], 1 }
 0x7c4   :  { %6090 = vsyncpa [#allocation14], 1 }

</bundles_post_ra>
